<compile_context>
chip_gen: v6e
topology: v6e:2x2x1
jax: 0.10.0
libtpu: 0.0.40
codegen_flags: <defaults>
</compile_context>

<pallas_src>
import functools

import jax
import jax.numpy as jnp
from jax.experimental import pallas as pl
from jax.experimental.pallas import tpu as pltpu


def _round_up(x, m):
    return ((x + m - 1) // m) * m


def _choose_time_chunk(T, time_chunk):
    """Prefer an exact divisor of T (no padded tail, no per-step masking);
    fall back to padding + masking only when every divisor would make the
    chunks unreasonably small."""
    tc = max(1, min(T, time_chunk))
    if T % tc == 0:
        return tc
    best = 1
    for cand in range(tc, 0, -1):
        if T % cand == 0:
            best = cand
            break
    if best * 2 >= tc or best >= 8:
        return best
    return tc


def _choose_batch_block(Bp, num_dir):
    """When the direction axis is trivial (D == 1), expose batch parallelism
    so the second TensorCore on v7x has work; harmless on v5e/v6e."""
    if num_dir == 1 and Bp >= 16 and (Bp // 2) % 8 == 0:
        return Bp // 2
    return Bp


def _choose_unroll(chunk, batch_block, hidden_pad):
    """Unroll as much as the vreg file allows: ~6 (8,128) state/gate tiles are
    live per in-flight step (h, c, 4*Hp gate slab)."""
    tiles_per_step = max(1, batch_block // 8) * max(1, hidden_pad // 128) * 6
    unroll = 8
    while unroll > 1 and tiles_per_step * unroll > 48:
        unroll //= 2
    return max(1, min(unroll, chunk))


def _vmem_limit_bytes(x, wih, whh, bias, chunk, batch_block, hidden_pad,
                      vmem_cap):
    """Explicit scoped-VMEM budget: double-buffered blocks + state scratch."""
    D_in, _, _, K = x.shape
    Hp = hidden_pad
    per_block = (D_in * chunk * batch_block * K * x.dtype.itemsize      # x chunk
                 + D_in * K * 4 * Hp * wih.dtype.itemsize               # w_ih
                 + Hp * 4 * Hp * whh.dtype.itemsize                     # w_hh
                 + 4 * Hp * bias.dtype.itemsize                         # bias
                 + chunk * batch_block * Hp * 4                         # out chunk
                 + batch_block * Hp * 4)                                # c_n
    est = 2 * per_block + 2 * batch_block * Hp * 4
    limit = max(32 << 20, (est * 5) // 4 + (4 << 20))
    return int(min(limit, vmem_cap - (2 << 20)))


# ----------------------------------------------------------------------------
# Pallas kernel: one LSTM layer, one (direction, batch-block, time-chunk) step.
# ----------------------------------------------------------------------------
def _lstm_chunk_kernel(x_ref, wih_ref, whh_ref, bias_ref, out_ref, cn_ref,
                       h_sc, c_sc, *, hidden_pad, seq_len, chunk, num_chunks,
                       num_in, masked, unroll):
    d = pl.program_id(0)          # direction   (parallel)
    c = pl.program_id(2)          # time chunk  (sequential recurrence; MUST be
    #                               the innermost grid axis: h/c scratch carries
    #                               across it and is reset at c == 0)
    Hp, Tc, C = hidden_pad, chunk, num_chunks

    @pl.when(c == 0)
    def _():
        h_sc[...] = jnp.zeros_like(h_sc)
        c_sc[...] = jnp.zeros_like(c_sc)

    whh = whh_ref[...]                               # (Hp, 4Hp)   compute dtype
    bias = bias_ref[...]                             # (1, 4Hp)    f32
    wih = [wih_ref[di] for di in range(num_in)]      # each (K, 4Hp)

    if masked:  # only emitted when T was padded up to C*Tc
        time_block = (1 - d) * c + d * (C - 1 - c)
        base_t = time_block * Tc

    def step(i, carry):
        # Reverse direction walks the chunk backwards; the global chunk order
        # is already reversed by the BlockSpec index_map (no [::-1] copies).
        ti = jnp.where(d == 0, i, Tc - 1 - i)

        h_prev = h_sc[...]
        c_prev = c_sc[...]

        # Recurrent projection (the serial critical path) ...
        gates = bias + jnp.dot(h_prev.astype(whh.dtype), whh,
                               preferred_element_type=jnp.float32)
        # ... plus the in-kernel input projection: independent of h, so it
        # overlaps under unrolling, and the gate slab never touches HBM.
        for di in range(num_in):
            gates = gates + jnp.dot(x_ref[di, ti].astype(wih[di].dtype),
                                    wih[di],
                                    preferred_element_type=jnp.float32)

        # Gate order [i, f, o, g]: one contiguous sigmoid slab + one tanh.
        sig = jax.nn.sigmoid(gates[:, :3 * Hp])
        i_g = sig[:, 0 * Hp:1 * Hp]
        f_g = sig[:, 1 * Hp:2 * Hp]
        o_g = sig[:, 2 * Hp:3 * Hp]
        g_g = jnp.tanh(gates[:, 3 * Hp:])

        c_new = f_g * c_prev + i_g * g_g
        h_new = o_g * jnp.tanh(c_new)

        if masked:
            valid = (base_t + ti) < seq_len
            h_new = jnp.where(valid, h_new, h_prev)
            c_new = jnp.where(valid, c_new, c_prev)

        h_sc[...] = h_new
        c_sc[...] = c_new
        out_ref[ti] = h_new.astype(out_ref.dtype)
        return carry

    jax.lax.fori_loop(0, Tc, step, 0, unroll=unroll)

    @pl.when(c == C - 1)
    def _():
        cn_ref[...] = c_sc[...].astype(cn_ref.dtype)


# ----------------------------------------------------------------------------
# Wrapper: one (possibly bidirectional) LSTM layer.
# ----------------------------------------------------------------------------
def lstm_layer_pallas(x, wih, whh, bias, *, hidden_pad, seq_len, chunk,
                      batch_block, vmem_cap):
    """x    : (D_in, Tp, Bp, K)   float32  (Tp = C*chunk, Bp % 8 == 0)
       wih  : (D, D_in, K, 4*Hp)  compute dtype, gate order [i,f,o,g], padded
       whh  : (D, Hp, 4*Hp)       compute dtype
       bias : (D, 1, 4*Hp)        float32
       Returns out (D, Tp, Bp, Hp) f32 and c_n (D, Bp, Hp) f32."""
    D_in, Tp, Bp, K = x.shape
    D = whh.shape[0]
    Hp = hidden_pad
    Tc = chunk
    C = Tp // Tc
    NB = Bp // batch_block
    masked = (Tp != seq_len)
    unroll = _choose_unroll(Tc, batch_block, Hp)

    kernel = functools.partial(
        _lstm_chunk_kernel, hidden_pad=Hp, seq_len=seq_len, chunk=Tc,
        num_chunks=C, num_in=D_in, masked=masked, unroll=unroll)

    def tblk(d, c):   # reverse direction walks the chunks backwards in time
        return (1 - d) * c + d * (C - 1 - c)

    out, c_n = pl.pallas_call(
        kernel,
        out_shape=(
            jax.ShapeDtypeStruct((D, Tp, Bp, Hp), jnp.float32),
            jax.ShapeDtypeStruct((D, Bp, Hp), jnp.float32),
        ),
        grid_spec=pltpu.PrefetchScalarGridSpec(
            num_scalar_prefetch=0,
            grid=(D, NB, C),
            in_specs=[
                # Raw input chunk (all input directions): the gate projection
                # happens in-kernel, so no precomputed gate slab hits HBM.
                pl.BlockSpec((D_in, Tc, batch_block, K),
                             lambda d, b, c: (0, tblk(d, c), b, 0)),
                # Per-direction weights / bias: constant block across (b, c),
                # so the pipeliner skips re-DMAs after the first chunk.
                # TODO(synk): pipeline_mode=pl.Buffered(1) on the weight specs
                # would drop their second pipeline buffer (helps v7x 64 MiB).
                pl.BlockSpec((None, D_in, K, 4 * Hp),
                             lambda d, b, c: (d, 0, 0, 0)),
                pl.BlockSpec((None, Hp, 4 * Hp), lambda d, b, c: (d, 0, 0)),
                pl.BlockSpec((None, 1, 4 * Hp), lambda d, b, c: (d, 0, 0)),
            ],
            out_specs=[
                pl.BlockSpec((None, Tc, batch_block, Hp),
                             lambda d, b, c: (d, tblk(d, c), b, 0)),
                pl.BlockSpec((None, batch_block, Hp),
                             lambda d, b, c: (d, b, 0)),
            ],
            scratch_shapes=[
                pltpu.VMEM((batch_block, Hp), jnp.float32),   # h state
                pltpu.VMEM((batch_block, Hp), jnp.float32),   # c state
            ],
        ),
        compiler_params=pltpu.CompilerParams(
            # Directions / batch blocks are independent recurrences (megacore
            # on v7x); time chunks are strictly sequential.
            dimension_semantics=("parallel", "parallel", "arbitrary"),
            vmem_limit_bytes=_vmem_limit_bytes(
                x, wih, whh, bias, Tc, batch_block, Hp, vmem_cap)),
    )(x, wih, whh, bias)
    return out, c_n


# ----------------------------------------------------------------------------
# Parameter prep: PyTorch layout -> transposed, gate-reordered, padded layout.
# ----------------------------------------------------------------------------
def _gate_reorder_pad(w_t, H, Hp):
    """(K, 4H) PyTorch gate order [i,f,g,o] -> (K, 4Hp) kernel order [i,f,o,g],
    zero-padded per gate to Hp lanes (padded lanes of h/c then stay exactly 0:
    sigmoid(0)=0.5 gates a zero cell, tanh(0)=0)."""
    K = w_t.shape[0]
    g = w_t.reshape(K, 4, H)[:, (0, 1, 3, 2), :]
    if Hp != H:
        g = jnp.pad(g, ((0, 0), (0, 0), (0, Hp - H)))
    return g.reshape(K, 4 * Hp)


def _prep_direction_params(w_ih, w_hh, b_ih, b_hh, H, Hp, num_in,
                           compute_dtype):
    wih_t = _gate_reorder_pad(jnp.transpose(w_ih).astype(jnp.float32), H, Hp)
    if num_in == 1:
        wih_b = wih_t[None]                               # (1, E, 4Hp)
    else:
        # Rows 0..H are the forward-direction input features, H..2H backward.
        wih_b = wih_t.reshape(num_in, H, 4 * Hp)
        wih_b = jnp.pad(wih_b, ((0, 0), (0, Hp - H), (0, 0)))  # zero pad rows
    whh_t = _gate_reorder_pad(jnp.transpose(w_hh).astype(jnp.float32), H, Hp)
    whh_t = jnp.pad(whh_t, ((0, Hp - H), (0, 0)))               # (Hp, 4Hp)
    bias = _gate_reorder_pad((b_ih + b_hh).astype(jnp.float32)[None, :], H, Hp)
    return (wih_b.astype(compute_dtype), whh_t.astype(compute_dtype), bias)


# ----------------------------------------------------------------------------
# Encoder: uniform(-0.1, 0.1) weights, zero biases (matching _init_weights),
# multi-layer / bidirectional stacking, whole forward jitted.
# ----------------------------------------------------------------------------
class Encoder:
    def __init__(self, embedding_dim, hidden_dim, lstm_layers, dropout, bidir,
                 key, time_chunk=64, compute_dtype=jnp.bfloat16):
        self.embedding_dim = embedding_dim
        self.hidden_dim = hidden_dim
        self.lstm_layers = lstm_layers
        self.dropout = dropout        # eval mode: inter-layer dropout unused
        self.bidir = bidir
        self.num_dir = 2 if bidir else 1
        self.hidden_pad = _round_up(hidden_dim, 128)  # lane-dense gates/output
        self.time_chunk = time_chunk
        self.compute_dtype = compute_dtype

        try:
            info = pltpu.get_tpu_info()
            self.vmem_cap = int(getattr(info, "vmem_capacity_bytes", 64 << 20))
        except Exception:
            self.vmem_cap = 64 << 20   # smallest per-TC VMEM across v5e/v6e/v7x

        # Raw PyTorch-layout params (kept for reference checks).
        self.params = {}
        for layer in range(lstm_layers):
            in_dim = embedding_dim if layer == 0 else hidden_dim * self.num_dir
            for d in range(self.num_dir):
                sfx = f"l{layer}" + ("_reverse" if d == 1 else "")
                key, k1, k2 = jax.random.split(key, 3)
                self.params[f"weight_ih_{sfx}"] = jax.random.uniform(
                    k1, (4 * hidden_dim, in_dim), jnp.float32, -0.1, 0.1)
                self.params[f"weight_hh_{sfx}"] = jax.random.uniform(
                    k2, (4 * hidden_dim, hidden_dim), jnp.float32, -0.1, 0.1)
                self.params[f"bias_ih_{sfx}"] = jnp.zeros((4 * hidden_dim,),
                                                          jnp.float32)
                self.params[f"bias_hh_{sfx}"] = jnp.zeros((4 * hidden_dim,),
                                                          jnp.float32)

        # Pre-transpose / reorder / pad / stack ONCE here (not per forward).
        layer_params = []
        for layer in range(lstm_layers):
            num_in = 1 if layer == 0 else self.num_dir
            wihs, whhs, bs = [], [], []
            for d in range(self.num_dir):
                sfx = f"l{layer}" + ("_reverse" if d == 1 else "")
                wih_b, whh_t, b = _prep_direction_params(
                    self.params[f"weight_ih_{sfx}"],
                    self.params[f"weight_hh_{sfx}"],
                    self.params[f"bias_ih_{sfx}"],
                    self.params[f"bias_hh_{sfx}"],
                    hidden_dim, self.hidden_pad, num_in, compute_dtype)
                wihs.append(wih_b); whhs.append(whh_t); bs.append(b)
            layer_params.append(
                (jnp.stack(wihs, 0), jnp.stack(whhs, 0), jnp.stack(bs, 0)))
        layer_params = tuple(layer_params)

        H, Hp, D = hidden_dim, self.hidden_pad, self.num_dir
        tchunk, vmem_cap = time_chunk, self.vmem_cap

        def _fwd(x):
            T, B, _ = x.shape
            Tc = _choose_time_chunk(T, tchunk)
            C = pl.cdiv(T, Tc)
            Tp = C * Tc
            Bp = _round_up(B, 8)                      # sublane-dense batch
            Bblk = _choose_batch_block(Bp, D)

            xin = jnp.pad(x.astype(jnp.float32),
                          ((0, Tp - T), (0, Bp - B), (0, 0)))[None]  # (1,Tp,Bp,E)

            h_ns, c_ns = [], []
            layer_in = xin
            for (wih, whh, b) in layer_params:
                out, c_n = lstm_layer_pallas(
                    layer_in, wih, whh, b, hidden_pad=Hp, seq_len=T,
                    chunk=Tc, batch_block=Bblk, vmem_cap=vmem_cap)
                hs = [out[0, T - 1, :B, :H]]          # fwd h_n = output at T-1
                if D == 2:
                    hs.append(out[1, 0, :B, :H])      # rev h_n = output at 0
                h_ns.append(jnp.stack(hs, 0))
                c_ns.append(c_n[:, :B, :H])
                # Next layer consumes the Hp-padded, direction-major output
                # directly (its W_ih rows for padded lanes are zero) -> no
                # concat / slice pass between layers.
                layer_in = out
            final = jnp.transpose(layer_in[:, :T, :B, :H], (1, 2, 0, 3))
            final = final.reshape(T, B, D * H)
            return final, (jnp.concatenate(h_ns, 0), jnp.concatenate(c_ns, 0))

        self._forward = jax.jit(_fwd)

    def init_hidden(self, bsz):
        shape = (self.lstm_layers * self.num_dir, bsz, self.hidden_dim)
        return jnp.zeros(shape, jnp.float32), jnp.zeros(shape, jnp.float32)

    def forward(self, x):
        """x: (T, B, E). Returns output (T, B, D*H), (h_n, c_n)."""
        # TODO(synk): the original Encoder.forward() body is `pass`; we expose
        # the underlying nn.LSTM forward, which is what the module encapsulates.
        return self._forward(x)


# ----------------------------------------------------------------------------
# Pure-JAX reference (PyTorch nn.LSTM semantics) for correctness checks.
# ----------------------------------------------------------------------------
def _lstm_layer_ref(x, w_ih, w_hh, b_ih, b_hh):
    H = w_hh.shape[1]
    B = x.shape[1]

    def step(carry, x_t):
        h, c = carry
        gates = x_t @ w_ih.T + h @ w_hh.T + b_ih + b_hh
        i = jax.nn.sigmoid(gates[:, 0 * H:1 * H])
        f = jax.nn.sigmoid(gates[:, 1 * H:2 * H])
        g = jnp.tanh(gates[:, 2 * H:3 * H])
        o = jax.nn.sigmoid(gates[:, 3 * H:4 * H])
        c = f * c + i * g
        h = o * jnp.tanh(c)
        return (h, c), h

    init = (jnp.zeros((B, H), jnp.float32), jnp.zeros((B, H), jnp.float32))
    (h_n, c_n), out = jax.lax.scan(step, init, x)
    return out, h_n[None], c_n[None]


def _encoder_ref(x, params, lstm_layers, num_dir):
    h_ns, c_ns = [], []
    layer_in = x
    for layer in range(lstm_layers):
        dir_outs = []
        for d in range(num_dir):
            sfx = f"l{layer}" + ("_reverse" if d == 1 else "")
            inp = layer_in if d == 0 else layer_in[::-1]
            out, h_n, c_n = _lstm_layer_ref(
                inp, params[f"weight_ih_{sfx}"], params[f"weight_hh_{sfx}"],
                params[f"bias_ih_{sfx}"], params[f"bias_hh_{sfx}"])
            if d == 1:
                out = out[::-1]
            dir_outs.append(out); h_ns.append(h_n); c_ns.append(c_n)
        layer_in = jnp.concatenate(dir_outs, axis=-1)
    return layer_in, jnp.concatenate(h_ns, 0), jnp.concatenate(c_ns, 0)


if __name__ == "__main__":
    key = jax.random.PRNGKey(0)

    # --- Test 1: unidirectional single layer, fp32 compute (tight check). ---
    T, B, E, H = 8, 2, 32, 32
    key, xk, pk = jax.random.split(key, 3)
    x = jax.random.normal(xk, (T, B, E), jnp.float32)
    enc = Encoder(E, H, 1, 0.0, False, pk, compute_dtype=jnp.float32)
    out, (h_n, c_n) = enc.forward(x)
    out, h_n, c_n = jax.block_until_ready((out, h_n, c_n))
    r_out, r_hn, r_cn = _encoder_ref(x, enc.params, 1, 1)
    assert jnp.allclose(out, r_out, atol=1e-4, rtol=1e-4), float(jnp.abs(out - r_out).max())
    assert jnp.allclose(h_n, r_hn, atol=1e-4, rtol=1e-4)
    assert jnp.allclose(c_n, r_cn, atol=1e-4, rtol=1e-4)

    # --- Test 2: bidirectional 2-layer stack, multi-chunk (adaptive divisor
    # chunking, T=10 / chunk=2), default bf16 MXU compute with fp32
    # accumulation -> compared against the fp32 reference at loose tolerance.
    T2, B2 = 10, 2
    key, xk2, pk2 = jax.random.split(key, 3)
    x2 = jax.random.normal(xk2, (T2, B2, E), jnp.float32)
    enc2 = Encoder(E, H, 2, 0.0, True, pk2, time_chunk=4)
    out2, (h_n2, c_n2) = enc2.forward(x2)
    out2, h_n2, c_n2 = jax.block_until_ready((out2, h_n2, c_n2))
    r_out2, r_hn2, r_cn2 = _encoder_ref(x2, enc2.params, 2, 2)
    assert jnp.allclose(out2, r_out2, atol=5e-2, rtol=5e-2), float(jnp.abs(out2 - r_out2).max())
    assert jnp.allclose(h_n2, r_hn2, atol=5e-2, rtol=5e-2)
    assert jnp.allclose(c_n2, r_cn2, atol=5e-2, rtol=5e-2)

    # --- Test 3: bidirectional, T=7 (no usable divisor of the chunk) ->
    # exercises the padded time tail + per-step masking and the reversed
    # chunk order together; fp32 compute for a tight check. ---
    T3, B3 = 7, 3
    key, xk3, pk3 = jax.random.split(key, 3)
    x3 = jax.random.normal(xk3, (T3, B3, E), jnp.float32)
    enc3 = Encoder(E, H, 1, 0.0, True, pk3, time_chunk=4,
                   compute_dtype=jnp.float32)
    out3, (h_n3, c_n3) = enc3.forward(x3)
    out3, h_n3, c_n3 = jax.block_until_ready((out3, h_n3, c_n3))
    r_out3, r_hn3, r_cn3 = _encoder_ref(x3, enc3.params, 1, 2)
    assert jnp.allclose(out3, r_out3, atol=1e-4, rtol=1e-4), float(jnp.abs(out3 - r_out3).max())
    assert jnp.allclose(h_n3, r_hn3, atol=1e-4, rtol=1e-4)
    assert jnp.allclose(c_n3, r_cn3, atol=1e-4, rtol=1e-4)

    print("KERNEL_OK")
</pallas_src>

<mosaic_0001>
module attributes {stable_mosaic.version = 11 : i64} {
  func.func @_lstm_chunk_kernel(%arg0: i32, %arg1: i32, %arg2: i32, %arg3: memref<1x8x8x32xf32, #tpu.memory_space<vmem>>, %arg4: memref<1x1x32x512xf32, #tpu.memory_space<vmem>>, %arg5: memref<1x128x512xf32, #tpu.memory_space<vmem>>, %arg6: memref<1x1x512xf32, #tpu.memory_space<vmem>>, %arg7: memref<1x8x8x128xf32, #tpu.memory_space<vmem>>, %arg8: memref<1x8x128xf32, #tpu.memory_space<vmem>>, %arg9: memref<8x128xf32, #tpu.memory_space<vmem>>, %arg10: memref<8x128xf32, #tpu.memory_space<vmem>>) attributes {dimension_semantics = [#tpu.dimension_semantics<parallel>, #tpu.dimension_semantics<parallel>, #tpu.dimension_semantics<arbitrary>], iteration_bounds = array<i64: 1, 1, 1>, scalar_prefetch = 0 : i64, scratch_operands = 2 : i64, tpu.core_type = #tpu.core_type<tc>, window_params = [{transform_indices = @transform_0, window_bounds = array<i64: 1, 8, 8, 32>}, {transform_indices = @transform_1, window_bounds = array<i64: 1, 1, 32, 512>}, {transform_indices = @transform_2, window_bounds = array<i64: 1, 128, 512>}, {transform_indices = @transform_3, window_bounds = array<i64: 1, 1, 512>}, {transform_indices = @transform_4, window_bounds = array<i64: 1, 8, 8, 128>}, {transform_indices = @transform_5, window_bounds = array<i64: 1, 8, 128>}]} {
    %c0_i32 = arith.constant 0 : i32
    %0 = arith.cmpi eq, %arg2, %c0_i32 : i32
    %1 = arith.extui %0 : i1 to i32
    %c0_i32_0 = arith.constant 0 : i32
    %2 = arith.cmpi ne, %1, %c0_i32_0 : i32
    scf.if %2 {
      %cst_164 = arith.constant 0.000000e+00 : f32
      %292 = vector.broadcast %cst_164 : f32 to vector<8x128xf32>
      %c0_165 = arith.constant 0 : index
      %c0_166 = arith.constant 0 : index
      %293 = vector.load %arg9[%c0_165, %c0_166] : memref<8x128xf32, #tpu.memory_space<vmem>>, vector<8x128xf32>
      tpu.vector_store %arg9[%c0_165, %c0_166], %292 {strides = array<i32>} : memref<8x128xf32, #tpu.memory_space<vmem>>, vector<8x128xf32>,
      %cst_167 = arith.constant 0.000000e+00 : f32
      %294 = vector.broadcast %cst_167 : f32 to vector<8x128xf32>
      %c0_168 = arith.constant 0 : index
      %c0_169 = arith.constant 0 : index
      %295 = vector.load %arg10[%c0_168, %c0_169] : memref<8x128xf32, #tpu.memory_space<vmem>>, vector<8x128xf32>
      tpu.vector_store %arg10[%c0_168, %c0_169], %294 {strides = array<i32>} : memref<8x128xf32, #tpu.memory_space<vmem>>, vector<8x128xf32>,
    } else {
    }
    %c0 = arith.constant 0 : index
    %c0_1 = arith.constant 0 : index
    %c0_2 = arith.constant 0 : index
    %3 = vector.load %arg5[%c0, %c0_1, %c0_2] : memref<1x128x512xf32, #tpu.memory_space<vmem>>, vector<1x128x512xf32>
    %4 = vector.shape_cast %3 : vector<1x128x512xf32> to vector<128x512xf32>
    %c0_3 = arith.constant 0 : index
    %c0_4 = arith.constant 0 : index
    %c0_5 = arith.constant 0 : index
    %5 = vector.load %arg6[%c0_3, %c0_4, %c0_5] : memref<1x1x512xf32, #tpu.memory_space<vmem>>, vector<1x1x512xf32>
    %6 = vector.shape_cast %5 : vector<1x1x512xf32> to vector<1x512xf32>
    %c0_6 = arith.constant 0 : index
    %c0_7 = arith.constant 0 : index
    %c0_8 = arith.constant 0 : index
    %c0_9 = arith.constant 0 : index
    %7 = vector.load %arg4[%c0_6, %c0_7, %c0_8, %c0_9] : memref<1x1x32x512xf32, #tpu.memory_space<vmem>>, vector<1x1x32x512xf32>
    %8 = vector.shape_cast %7 : vector<1x1x32x512xf32> to vector<32x512xf32>
    %c0_i32_10 = arith.constant 0 : i32
    %c0_i32_11 = arith.constant 0 : i32
    %9 = arith.cmpi eq, %arg0, %c0_i32_11 : i32
    %c7_i32 = arith.constant 7 : i32
    %10 = arith.subi %c7_i32, %c0_i32_10 : i32
    %11 = arith.select %9, %c0_i32_10, %10 : i32
    %c0_12 = arith.constant 0 : index
    %c0_13 = arith.constant 0 : index
    %12 = vector.load %arg9[%c0_12, %c0_13] : memref<8x128xf32, #tpu.memory_space<vmem>>, vector<8x128xf32>
    %c0_14 = arith.constant 0 : index
    %c0_15 = arith.constant 0 : index
    %13 = vector.load %arg10[%c0_14, %c0_15] : memref<8x128xf32, #tpu.memory_space<vmem>>, vector<8x128xf32>
    %cst = arith.constant dense<0.000000e+00> : vector<8x512xf32>
    %14 = tpu.matmul %12, %4, %cst {dimension_numbers = #tpu.dot_dimension_numbers<[1], [0], [0], [1], [0, 0, 1, 1], [], []>} : vector<8x128xf32>, vector<128x512xf32>, vector<8x512xf32> -> vector<8x512xf32>
    %15 = vector.broadcast %6 : vector<1x512xf32> to vector<8x512xf32>
    %16 = arith.addf %15, %14 : vector<8x512xf32>
    %c0_16 = arith.constant 0 : index
    %17 = arith.index_cast %11 : i32 to index
    %c0_17 = arith.constant 0 : index
    %c0_18 = arith.constant 0 : index
    %18 = vector.load %arg3[%c0_16, %17, %c0_17, %c0_18] : memref<1x8x8x32xf32, #tpu.memory_space<vmem>>, vector<1x1x8x32xf32>
    %19 = vector.shape_cast %18 : vector<1x1x8x32xf32> to vector<8x32xf32>
    %cst_19 = arith.constant dense<0.000000e+00> : vector<8x512xf32>
    %20 = tpu.matmul %19, %8, %cst_19 {dimension_numbers = #tpu.dot_dimension_numbers<[1], [0], [0], [1], [0, 0, 1, 1], [], []>} : vector<8x32xf32>, vector<32x512xf32>, vector<8x512xf32> -> vector<8x512xf32>
    %21 = arith.addf %16, %20 : vector<8x512xf32>
    %22 = vector.extract_strided_slice %21 {offsets = [0, 0], sizes = [8, 384], strides = [1, 1]} : vector<8x512xf32> to vector<8x384xf32>
    %23 = arith.negf %22 : vector<8x384xf32>
    %24 = math.exp %23 : vector<8x384xf32>
    %cst_20 = arith.constant 1.000000e+00 : f32
    %25 = vector.broadcast %cst_20 : f32 to vector<8x384xf32>
    %26 = arith.addf %25, %24 : vector<8x384xf32>
    %27 = arith.divf %25, %26 : vector<8x384xf32>
    %28 = vector.extract_strided_slice %27 {offsets = [0, 0], sizes = [8, 128], strides = [1, 1]} : vector<8x384xf32> to vector<8x128xf32>
    %29 = vector.extract_strided_slice %27 {offsets = [0, 128], sizes = [8, 128], strides = [1, 1]} : vector<8x384xf32> to vector<8x128xf32>
    %30 = vector.extract_strided_slice %27 {offsets = [0, 256], sizes = [8, 128], strides = [1, 1]} : vector<8x384xf32> to vector<8x128xf32>
    %31 = vector.extract_strided_slice %21 {offsets = [0, 384], sizes = [8, 128], strides = [1, 1]} : vector<8x512xf32> to vector<8x128xf32>
    %32 = math.tanh %31 : vector<8x128xf32>
    %33 = arith.mulf %29, %13 : vector<8x128xf32>
    %34 = arith.mulf %28, %32 : vector<8x128xf32>
    %35 = arith.addf %33, %34 : vector<8x128xf32>
    %36 = math.tanh %35 : vector<8x128xf32>
    %37 = arith.mulf %30, %36 : vector<8x128xf32>
    %c0_21 = arith.constant 0 : index
    %c0_22 = arith.constant 0 : index
    %38 = vector.load %arg9[%c0_21, %c0_22] : memref<8x128xf32, #tpu.memory_space<vmem>>, vector<8x128xf32>
    tpu.vector_store %arg9[%c0_21, %c0_22], %37 {strides = array<i32>} : memref<8x128xf32, #tpu.memory_space<vmem>>, vector<8x128xf32>,
    %c0_23 = arith.constant 0 : index
    %c0_24 = arith.constant 0 : index
    %39 = vector.load %arg10[%c0_23, %c0_24] : memref<8x128xf32, #tpu.memory_space<vmem>>, vector<8x128xf32>
    tpu.vector_store %arg10[%c0_23, %c0_24], %35 {strides = array<i32>} : memref<8x128xf32, #tpu.memory_space<vmem>>, vector<8x128xf32>,
    %c0_25 = arith.constant 0 : index
    %40 = arith.index_cast %11 : i32 to index
    %c0_26 = arith.constant 0 : index
    %c0_27 = arith.constant 0 : index
    %41 = vector.load %arg7[%c0_25, %40, %c0_26, %c0_27] : memref<1x8x8x128xf32, #tpu.memory_space<vmem>>, vector<1x1x8x128xf32>
    %42 = vector.shape_cast %41 : vector<1x1x8x128xf32> to vector<8x128xf32>
    %43 = vector.shape_cast %37 : vector<8x128xf32> to vector<1x1x8x128xf32>
    tpu.vector_store %arg7[%c0_25, %40, %c0_26, %c0_27], %43 {strides = array<i32>} : memref<1x8x8x128xf32, #tpu.memory_space<vmem>>, vector<1x1x8x128xf32>,
    %c1_i32 = arith.constant 1 : i32
    %c0_i32_28 = arith.constant 0 : i32
    %44 = arith.cmpi eq, %arg0, %c0_i32_28 : i32
    %c7_i32_29 = arith.constant 7 : i32
    %45 = arith.subi %c7_i32_29, %c1_i32 : i32
    %46 = arith.select %44, %c1_i32, %45 : i32
    %c0_30 = arith.constant 0 : index
    %c0_31 = arith.constant 0 : index
    %47 = vector.load %arg9[%c0_30, %c0_31] : memref<8x128xf32, #tpu.memory_space<vmem>>, vector<8x128xf32>
    %c0_32 = arith.constant 0 : index
    %c0_33 = arith.constant 0 : index
    %48 = vector.load %arg10[%c0_32, %c0_33] : memref<8x128xf32, #tpu.memory_space<vmem>>, vector<8x128xf32>
    %cst_34 = arith.constant dense<0.000000e+00> : vector<8x512xf32>
    %49 = tpu.matmul %47, %4, %cst_34 {dimension_numbers = #tpu.dot_dimension_numbers<[1], [0], [0], [1], [0, 0, 1, 1], [], []>} : vector<8x128xf32>, vector<128x512xf32>, vector<8x512xf32> -> vector<8x512xf32>
    %50 = vector.broadcast %6 : vector<1x512xf32> to vector<8x512xf32>
    %51 = arith.addf %50, %49 : vector<8x512xf32>
    %c0_35 = arith.constant 0 : index
    %52 = arith.index_cast %46 : i32 to index
    %c0_36 = arith.constant 0 : index
    %c0_37 = arith.constant 0 : index
    %53 = vector.load %arg3[%c0_35, %52, %c0_36, %c0_37] : memref<1x8x8x32xf32, #tpu.memory_space<vmem>>, vector<1x1x8x32xf32>
    %54 = vector.shape_cast %53 : vector<1x1x8x32xf32> to vector<8x32xf32>
    %cst_38 = arith.constant dense<0.000000e+00> : vector<8x512xf32>
    %55 = tpu.matmul %54, %8, %cst_38 {dimension_numbers = #tpu.dot_dimension_numbers<[1], [0], [0], [1], [0, 0, 1, 1], [], []>} : vector<8x32xf32>, vector<32x512xf32>, vector<8x512xf32> -> vector<8x512xf32>
    %56 = arith.addf %51, %55 : vector<8x512xf32>
    %57 = vector.extract_strided_slice %56 {offsets = [0, 0], sizes = [8, 384], strides = [1, 1]} : vector<8x512xf32> to vector<8x384xf32>
    %58 = arith.negf %57 : vector<8x384xf32>
    %59 = math.exp %58 : vector<8x384xf32>
    %cst_39 = arith.constant 1.000000e+00 : f32
    %60 = vector.broadcast %cst_39 : f32 to vector<8x384xf32>
    %61 = arith.addf %60, %59 : vector<8x384xf32>
    %62 = arith.divf %60, %61 : vector<8x384xf32>
    %63 = vector.extract_strided_slice %62 {offsets = [0, 0], sizes = [8, 128], strides = [1, 1]} : vector<8x384xf32> to vector<8x128xf32>
    %64 = vector.extract_strided_slice %62 {offsets = [0, 128], sizes = [8, 128], strides = [1, 1]} : vector<8x384xf32> to vector<8x128xf32>
    %65 = vector.extract_strided_slice %62 {offsets = [0, 256], sizes = [8, 128], strides = [1, 1]} : vector<8x384xf32> to vector<8x128xf32>
    %66 = vector.extract_strided_slice %56 {offsets = [0, 384], sizes = [8, 128], strides = [1, 1]} : vector<8x512xf32> to vector<8x128xf32>
    %67 = math.tanh %66 : vector<8x128xf32>
    %68 = arith.mulf %64, %48 : vector<8x128xf32>
    %69 = arith.mulf %63, %67 : vector<8x128xf32>
    %70 = arith.addf %68, %69 : vector<8x128xf32>
    %71 = math.tanh %70 : vector<8x128xf32>
    %72 = arith.mulf %65, %71 : vector<8x128xf32>
    %c0_40 = arith.constant 0 : index
    %c0_41 = arith.constant 0 : index
    %73 = vector.load %arg9[%c0_40, %c0_41] : memref<8x128xf32, #tpu.memory_space<vmem>>, vector<8x128xf32>
    tpu.vector_store %arg9[%c0_40, %c0_41], %72 {strides = array<i32>} : memref<8x128xf32, #tpu.memory_space<vmem>>, vector<8x128xf32>,
    %c0_42 = arith.constant 0 : index
    %c0_43 = arith.constant 0 : index
    %74 = vector.load %arg10[%c0_42, %c0_43] : memref<8x128xf32, #tpu.memory_space<vmem>>, vector<8x128xf32>
    tpu.vector_store %arg10[%c0_42, %c0_43], %70 {strides = array<i32>} : memref<8x128xf32, #tpu.memory_space<vmem>>, vector<8x128xf32>,
    %c0_44 = arith.constant 0 : index
    %75 = arith.index_cast %46 : i32 to index
    %c0_45 = arith.constant 0 : index
    %c0_46 = arith.constant 0 : index
    %76 = vector.load %arg7[%c0_44, %75, %c0_45, %c0_46] : memref<1x8x8x128xf32, #tpu.memory_space<vmem>>, vector<1x1x8x128xf32>
    %77 = vector.shape_cast %76 : vector<1x1x8x128xf32> to vector<8x128xf32>
    %78 = vector.shape_cast %72 : vector<8x128xf32> to vector<1x1x8x128xf32>
    tpu.vector_store %arg7[%c0_44, %75, %c0_45, %c0_46], %78 {strides = array<i32>} : memref<1x8x8x128xf32, #tpu.memory_space<vmem>>, vector<1x1x8x128xf32>,
    %c2_i32 = arith.constant 2 : i32
    %c0_i32_47 = arith.constant 0 : i32
    %79 = arith.cmpi eq, %arg0, %c0_i32_47 : i32
    %c7_i32_48 = arith.constant 7 : i32
    %80 = arith.subi %c7_i32_48, %c2_i32 : i32
    %81 = arith.select %79, %c2_i32, %80 : i32
    %c0_49 = arith.constant 0 : index
    %c0_50 = arith.constant 0 : index
    %82 = vector.load %arg9[%c0_49, %c0_50] : memref<8x128xf32, #tpu.memory_space<vmem>>, vector<8x128xf32>
    %c0_51 = arith.constant 0 : index
    %c0_52 = arith.constant 0 : index
    %83 = vector.load %arg10[%c0_51, %c0_52] : memref<8x128xf32, #tpu.memory_space<vmem>>, vector<8x128xf32>
    %cst_53 = arith.constant dense<0.000000e+00> : vector<8x512xf32>
    %84 = tpu.matmul %82, %4, %cst_53 {dimension_numbers = #tpu.dot_dimension_numbers<[1], [0], [0], [1], [0, 0, 1, 1], [], []>} : vector<8x128xf32>, vector<128x512xf32>, vector<8x512xf32> -> vector<8x512xf32>
    %85 = vector.broadcast %6 : vector<1x512xf32> to vector<8x512xf32>
    %86 = arith.addf %85, %84 : vector<8x512xf32>
    %c0_54 = arith.constant 0 : index
    %87 = arith.index_cast %81 : i32 to index
    %c0_55 = arith.constant 0 : index
    %c0_56 = arith.constant 0 : index
    %88 = vector.load %arg3[%c0_54, %87, %c0_55, %c0_56] : memref<1x8x8x32xf32, #tpu.memory_space<vmem>>, vector<1x1x8x32xf32>
    %89 = vector.shape_cast %88 : vector<1x1x8x32xf32> to vector<8x32xf32>
    %cst_57 = arith.constant dense<0.000000e+00> : vector<8x512xf32>
    %90 = tpu.matmul %89, %8, %cst_57 {dimension_numbers = #tpu.dot_dimension_numbers<[1], [0], [0], [1], [0, 0, 1, 1], [], []>} : vector<8x32xf32>, vector<32x512xf32>, vector<8x512xf32> -> vector<8x512xf32>
    %91 = arith.addf %86, %90 : vector<8x512xf32>
    %92 = vector.extract_strided_slice %91 {offsets = [0, 0], sizes = [8, 384], strides = [1, 1]} : vector<8x512xf32> to vector<8x384xf32>
    %93 = arith.negf %92 : vector<8x384xf32>
    %94 = math.exp %93 : vector<8x384xf32>
    %cst_58 = arith.constant 1.000000e+00 : f32
    %95 = vector.broadcast %cst_58 : f32 to vector<8x384xf32>
    %96 = arith.addf %95, %94 : vector<8x384xf32>
    %97 = arith.divf %95, %96 : vector<8x384xf32>
    %98 = vector.extract_strided_slice %97 {offsets = [0, 0], sizes = [8, 128], strides = [1, 1]} : vector<8x384xf32> to vector<8x128xf32>
    %99 = vector.extract_strided_slice %97 {offsets = [0, 128], sizes = [8, 128], strides = [1, 1]} : vector<8x384xf32> to vector<8x128xf32>
    %100 = vector.extract_strided_slice %97 {offsets = [0, 256], sizes = [8, 128], strides = [1, 1]} : vector<8x384xf32> to vector<8x128xf32>
    %101 = vector.extract_strided_slice %91 {offsets = [0, 384], sizes = [8, 128], strides = [1, 1]} : vector<8x512xf32> to vector<8x128xf32>
    %102 = math.tanh %101 : vector<8x128xf32>
    %103 = arith.mulf %99, %83 : vector<8x128xf32>
    %104 = arith.mulf %98, %102 : vector<8x128xf32>
    %105 = arith.addf %103, %104 : vector<8x128xf32>
    %106 = math.tanh %105 : vector<8x128xf32>
    %107 = arith.mulf %100, %106 : vector<8x128xf32>
    %c0_59 = arith.constant 0 : index
    %c0_60 = arith.constant 0 : index
    %108 = vector.load %arg9[%c0_59, %c0_60] : memref<8x128xf32, #tpu.memory_space<vmem>>, vector<8x128xf32>
    tpu.vector_store %arg9[%c0_59, %c0_60], %107 {strides = array<i32>} : memref<8x128xf32, #tpu.memory_space<vmem>>, vector<8x128xf32>,
    %c0_61 = arith.constant 0 : index
    %c0_62 = arith.constant 0 : index
    %109 = vector.load %arg10[%c0_61, %c0_62] : memref<8x128xf32, #tpu.memory_space<vmem>>, vector<8x128xf32>
    tpu.vector_store %arg10[%c0_61, %c0_62], %105 {strides = array<i32>} : memref<8x128xf32, #tpu.memory_space<vmem>>, vector<8x128xf32>,
    %c0_63 = arith.constant 0 : index
    %110 = arith.index_cast %81 : i32 to index
    %c0_64 = arith.constant 0 : index
    %c0_65 = arith.constant 0 : index
    %111 = vector.load %arg7[%c0_63, %110, %c0_64, %c0_65] : memref<1x8x8x128xf32, #tpu.memory_space<vmem>>, vector<1x1x8x128xf32>
    %112 = vector.shape_cast %111 : vector<1x1x8x128xf32> to vector<8x128xf32>
    %113 = vector.shape_cast %107 : vector<8x128xf32> to vector<1x1x8x128xf32>
    tpu.vector_store %arg7[%c0_63, %110, %c0_64, %c0_65], %113 {strides = array<i32>} : memref<1x8x8x128xf32, #tpu.memory_space<vmem>>, vector<1x1x8x128xf32>,
    %c3_i32 = arith.constant 3 : i32
    %c0_i32_66 = arith.constant 0 : i32
    %114 = arith.cmpi eq, %arg0, %c0_i32_66 : i32
    %c7_i32_67 = arith.constant 7 : i32
    %115 = arith.subi %c7_i32_67, %c3_i32 : i32
    %116 = arith.select %114, %c3_i32, %115 : i32
    %c0_68 = arith.constant 0 : index
    %c0_69 = arith.constant 0 : index
    %117 = vector.load %arg9[%c0_68, %c0_69] : memref<8x128xf32, #tpu.memory_space<vmem>>, vector<8x128xf32>
    %c0_70 = arith.constant 0 : index
    %c0_71 = arith.constant 0 : index
    %118 = vector.load %arg10[%c0_70, %c0_71] : memref<8x128xf32, #tpu.memory_space<vmem>>, vector<8x128xf32>
    %cst_72 = arith.constant dense<0.000000e+00> : vector<8x512xf32>
    %119 = tpu.matmul %117, %4, %cst_72 {dimension_numbers = #tpu.dot_dimension_numbers<[1], [0], [0], [1], [0, 0, 1, 1], [], []>} : vector<8x128xf32>, vector<128x512xf32>, vector<8x512xf32> -> vector<8x512xf32>
    %120 = vector.broadcast %6 : vector<1x512xf32> to vector<8x512xf32>
    %121 = arith.addf %120, %119 : vector<8x512xf32>
    %c0_73 = arith.constant 0 : index
    %122 = arith.index_cast %116 : i32 to index
    %c0_74 = arith.constant 0 : index
    %c0_75 = arith.constant 0 : index
    %123 = vector.load %arg3[%c0_73, %122, %c0_74, %c0_75] : memref<1x8x8x32xf32, #tpu.memory_space<vmem>>, vector<1x1x8x32xf32>
    %124 = vector.shape_cast %123 : vector<1x1x8x32xf32> to vector<8x32xf32>
    %cst_76 = arith.constant dense<0.000000e+00> : vector<8x512xf32>
    %125 = tpu.matmul %124, %8, %cst_76 {dimension_numbers = #tpu.dot_dimension_numbers<[1], [0], [0], [1], [0, 0, 1, 1], [], []>} : vector<8x32xf32>, vector<32x512xf32>, vector<8x512xf32> -> vector<8x512xf32>
    %126 = arith.addf %121, %125 : vector<8x512xf32>
    %127 = vector.extract_strided_slice %126 {offsets = [0, 0], sizes = [8, 384], strides = [1, 1]} : vector<8x512xf32> to vector<8x384xf32>
    %128 = arith.negf %127 : vector<8x384xf32>
    %129 = math.exp %128 : vector<8x384xf32>
    %cst_77 = arith.constant 1.000000e+00 : f32
    %130 = vector.broadcast %cst_77 : f32 to vector<8x384xf32>
    %131 = arith.addf %130, %129 : vector<8x384xf32>
    %132 = arith.divf %130, %131 : vector<8x384xf32>
    %133 = vector.extract_strided_slice %132 {offsets = [0, 0], sizes = [8, 128], strides = [1, 1]} : vector<8x384xf32> to vector<8x128xf32>
    %134 = vector.extract_strided_slice %132 {offsets = [0, 128], sizes = [8, 128], strides = [1, 1]} : vector<8x384xf32> to vector<8x128xf32>
    %135 = vector.extract_strided_slice %132 {offsets = [0, 256], sizes = [8, 128], strides = [1, 1]} : vector<8x384xf32> to vector<8x128xf32>
    %136 = vector.extract_strided_slice %126 {offsets = [0, 384], sizes = [8, 128], strides = [1, 1]} : vector<8x512xf32> to vector<8x128xf32>
    %137 = math.tanh %136 : vector<8x128xf32>
    %138 = arith.mulf %134, %118 : vector<8x128xf32>
    %139 = arith.mulf %133, %137 : vector<8x128xf32>
    %140 = arith.addf %138, %139 : vector<8x128xf32>
    %141 = math.tanh %140 : vector<8x128xf32>
    %142 = arith.mulf %135, %141 : vector<8x128xf32>
    %c0_78 = arith.constant 0 : index
    %c0_79 = arith.constant 0 : index
    %143 = vector.load %arg9[%c0_78, %c0_79] : memref<8x128xf32, #tpu.memory_space<vmem>>, vector<8x128xf32>
    tpu.vector_store %arg9[%c0_78, %c0_79], %142 {strides = array<i32>} : memref<8x128xf32, #tpu.memory_space<vmem>>, vector<8x128xf32>,
    %c0_80 = arith.constant 0 : index
    %c0_81 = arith.constant 0 : index
    %144 = vector.load %arg10[%c0_80, %c0_81] : memref<8x128xf32, #tpu.memory_space<vmem>>, vector<8x128xf32>
    tpu.vector_store %arg10[%c0_80, %c0_81], %140 {strides = array<i32>} : memref<8x128xf32, #tpu.memory_space<vmem>>, vector<8x128xf32>,
    %c0_82 = arith.constant 0 : index
    %145 = arith.index_cast %116 : i32 to index
    %c0_83 = arith.constant 0 : index
    %c0_84 = arith.constant 0 : index
    %146 = vector.load %arg7[%c0_82, %145, %c0_83, %c0_84] : memref<1x8x8x128xf32, #tpu.memory_space<vmem>>, vector<1x1x8x128xf32>
    %147 = vector.shape_cast %146 : vector<1x1x8x128xf32> to vector<8x128xf32>
    %148 = vector.shape_cast %142 : vector<8x128xf32> to vector<1x1x8x128xf32>
    tpu.vector_store %arg7[%c0_82, %145, %c0_83, %c0_84], %148 {strides = array<i32>} : memref<1x8x8x128xf32, #tpu.memory_space<vmem>>, vector<1x1x8x128xf32>,
    %c4_i32 = arith.constant 4 : i32
    %c0_i32_85 = arith.constant 0 : i32
    %149 = arith.cmpi eq, %arg0, %c0_i32_85 : i32
    %c7_i32_86 = arith.constant 7 : i32
    %150 = arith.subi %c7_i32_86, %c4_i32 : i32
    %151 = arith.select %149, %c4_i32, %150 : i32
    %c0_87 = arith.constant 0 : index
    %c0_88 = arith.constant 0 : index
    %152 = vector.load %arg9[%c0_87, %c0_88] : memref<8x128xf32, #tpu.memory_space<vmem>>, vector<8x128xf32>
    %c0_89 = arith.constant 0 : index
    %c0_90 = arith.constant 0 : index
    %153 = vector.load %arg10[%c0_89, %c0_90] : memref<8x128xf32, #tpu.memory_space<vmem>>, vector<8x128xf32>
    %cst_91 = arith.constant dense<0.000000e+00> : vector<8x512xf32>
    %154 = tpu.matmul %152, %4, %cst_91 {dimension_numbers = #tpu.dot_dimension_numbers<[1], [0], [0], [1], [0, 0, 1, 1], [], []>} : vector<8x128xf32>, vector<128x512xf32>, vector<8x512xf32> -> vector<8x512xf32>
    %155 = vector.broadcast %6 : vector<1x512xf32> to vector<8x512xf32>
    %156 = arith.addf %155, %154 : vector<8x512xf32>
    %c0_92 = arith.constant 0 : index
    %157 = arith.index_cast %151 : i32 to index
    %c0_93 = arith.constant 0 : index
    %c0_94 = arith.constant 0 : index
    %158 = vector.load %arg3[%c0_92, %157, %c0_93, %c0_94] : memref<1x8x8x32xf32, #tpu.memory_space<vmem>>, vector<1x1x8x32xf32>
    %159 = vector.shape_cast %158 : vector<1x1x8x32xf32> to vector<8x32xf32>
    %cst_95 = arith.constant dense<0.000000e+00> : vector<8x512xf32>
    %160 = tpu.matmul %159, %8, %cst_95 {dimension_numbers = #tpu.dot_dimension_numbers<[1], [0], [0], [1], [0, 0, 1, 1], [], []>} : vector<8x32xf32>, vector<32x512xf32>, vector<8x512xf32> -> vector<8x512xf32>
    %161 = arith.addf %156, %160 : vector<8x512xf32>
    %162 = vector.extract_strided_slice %161 {offsets = [0, 0], sizes = [8, 384], strides = [1, 1]} : vector<8x512xf32> to vector<8x384xf32>
    %163 = arith.negf %162 : vector<8x384xf32>
    %164 = math.exp %163 : vector<8x384xf32>
    %cst_96 = arith.constant 1.000000e+00 : f32
    %165 = vector.broadcast %cst_96 : f32 to vector<8x384xf32>
    %166 = arith.addf %165, %164 : vector<8x384xf32>
    %167 = arith.divf %165, %166 : vector<8x384xf32>
    %168 = vector.extract_strided_slice %167 {offsets = [0, 0], sizes = [8, 128], strides = [1, 1]} : vector<8x384xf32> to vector<8x128xf32>
    %169 = vector.extract_strided_slice %167 {offsets = [0, 128], sizes = [8, 128], strides = [1, 1]} : vector<8x384xf32> to vector<8x128xf32>
    %170 = vector.extract_strided_slice %167 {offsets = [0, 256], sizes = [8, 128], strides = [1, 1]} : vector<8x384xf32> to vector<8x128xf32>
    %171 = vector.extract_strided_slice %161 {offsets = [0, 384], sizes = [8, 128], strides = [1, 1]} : vector<8x512xf32> to vector<8x128xf32>
    %172 = math.tanh %171 : vector<8x128xf32>
    %173 = arith.mulf %169, %153 : vector<8x128xf32>
    %174 = arith.mulf %168, %172 : vector<8x128xf32>
    %175 = arith.addf %173, %174 : vector<8x128xf32>
    %176 = math.tanh %175 : vector<8x128xf32>
    %177 = arith.mulf %170, %176 : vector<8x128xf32>
    %c0_97 = arith.constant 0 : index
    %c0_98 = arith.constant 0 : index
    %178 = vector.load %arg9[%c0_97, %c0_98] : memref<8x128xf32, #tpu.memory_space<vmem>>, vector<8x128xf32>
    tpu.vector_store %arg9[%c0_97, %c0_98], %177 {strides = array<i32>} : memref<8x128xf32, #tpu.memory_space<vmem>>, vector<8x128xf32>,
    %c0_99 = arith.constant 0 : index
    %c0_100 = arith.constant 0 : index
    %179 = vector.load %arg10[%c0_99, %c0_100] : memref<8x128xf32, #tpu.memory_space<vmem>>, vector<8x128xf32>
    tpu.vector_store %arg10[%c0_99, %c0_100], %175 {strides = array<i32>} : memref<8x128xf32, #tpu.memory_space<vmem>>, vector<8x128xf32>,
    %c0_101 = arith.constant 0 : index
    %180 = arith.index_cast %151 : i32 to index
    %c0_102 = arith.constant 0 : index
    %c0_103 = arith.constant 0 : index
    %181 = vector.load %arg7[%c0_101, %180, %c0_102, %c0_103] : memref<1x8x8x128xf32, #tpu.memory_space<vmem>>, vector<1x1x8x128xf32>
    %182 = vector.shape_cast %181 : vector<1x1x8x128xf32> to vector<8x128xf32>
    %183 = vector.shape_cast %177 : vector<8x128xf32> to vector<1x1x8x128xf32>
    tpu.vector_store %arg7[%c0_101, %180, %c0_102, %c0_103], %183 {strides = array<i32>} : memref<1x8x8x128xf32, #tpu.memory_space<vmem>>, vector<1x1x8x128xf32>,
    %c5_i32 = arith.constant 5 : i32
    %c0_i32_104 = arith.constant 0 : i32
    %184 = arith.cmpi eq, %arg0, %c0_i32_104 : i32
    %c7_i32_105 = arith.constant 7 : i32
    %185 = arith.subi %c7_i32_105, %c5_i32 : i32
    %186 = arith.select %184, %c5_i32, %185 : i32
    %c0_106 = arith.constant 0 : index
    %c0_107 = arith.constant 0 : index
    %187 = vector.load %arg9[%c0_106, %c0_107] : memref<8x128xf32, #tpu.memory_space<vmem>>, vector<8x128xf32>
    %c0_108 = arith.constant 0 : index
    %c0_109 = arith.constant 0 : index
    %188 = vector.load %arg10[%c0_108, %c0_109] : memref<8x128xf32, #tpu.memory_space<vmem>>, vector<8x128xf32>
    %cst_110 = arith.constant dense<0.000000e+00> : vector<8x512xf32>
    %189 = tpu.matmul %187, %4, %cst_110 {dimension_numbers = #tpu.dot_dimension_numbers<[1], [0], [0], [1], [0, 0, 1, 1], [], []>} : vector<8x128xf32>, vector<128x512xf32>, vector<8x512xf32> -> vector<8x512xf32>
    %190 = vector.broadcast %6 : vector<1x512xf32> to vector<8x512xf32>
    %191 = arith.addf %190, %189 : vector<8x512xf32>
    %c0_111 = arith.constant 0 : index
    %192 = arith.index_cast %186 : i32 to index
    %c0_112 = arith.constant 0 : index
    %c0_113 = arith.constant 0 : index
    %193 = vector.load %arg3[%c0_111, %192, %c0_112, %c0_113] : memref<1x8x8x32xf32, #tpu.memory_space<vmem>>, vector<1x1x8x32xf32>
    %194 = vector.shape_cast %193 : vector<1x1x8x32xf32> to vector<8x32xf32>
    %cst_114 = arith.constant dense<0.000000e+00> : vector<8x512xf32>
    %195 = tpu.matmul %194, %8, %cst_114 {dimension_numbers = #tpu.dot_dimension_numbers<[1], [0], [0], [1], [0, 0, 1, 1], [], []>} : vector<8x32xf32>, vector<32x512xf32>, vector<8x512xf32> -> vector<8x512xf32>
    %196 = arith.addf %191, %195 : vector<8x512xf32>
    %197 = vector.extract_strided_slice %196 {offsets = [0, 0], sizes = [8, 384], strides = [1, 1]} : vector<8x512xf32> to vector<8x384xf32>
    %198 = arith.negf %197 : vector<8x384xf32>
    %199 = math.exp %198 : vector<8x384xf32>
    %cst_115 = arith.constant 1.000000e+00 : f32
    %200 = vector.broadcast %cst_115 : f32 to vector<8x384xf32>
    %201 = arith.addf %200, %199 : vector<8x384xf32>
    %202 = arith.divf %200, %201 : vector<8x384xf32>
    %203 = vector.extract_strided_slice %202 {offsets = [0, 0], sizes = [8, 128], strides = [1, 1]} : vector<8x384xf32> to vector<8x128xf32>
    %204 = vector.extract_strided_slice %202 {offsets = [0, 128], sizes = [8, 128], strides = [1, 1]} : vector<8x384xf32> to vector<8x128xf32>
    %205 = vector.extract_strided_slice %202 {offsets = [0, 256], sizes = [8, 128], strides = [1, 1]} : vector<8x384xf32> to vector<8x128xf32>
    %206 = vector.extract_strided_slice %196 {offsets = [0, 384], sizes = [8, 128], strides = [1, 1]} : vector<8x512xf32> to vector<8x128xf32>
    %207 = math.tanh %206 : vector<8x128xf32>
    %208 = arith.mulf %204, %188 : vector<8x128xf32>
    %209 = arith.mulf %203, %207 : vector<8x128xf32>
    %210 = arith.addf %208, %209 : vector<8x128xf32>
    %211 = math.tanh %210 : vector<8x128xf32>
    %212 = arith.mulf %205, %211 : vector<8x128xf32>
    %c0_116 = arith.constant 0 : index
    %c0_117 = arith.constant 0 : index
    %213 = vector.load %arg9[%c0_116, %c0_117] : memref<8x128xf32, #tpu.memory_space<vmem>>, vector<8x128xf32>
    tpu.vector_store %arg9[%c0_116, %c0_117], %212 {strides = array<i32>} : memref<8x128xf32, #tpu.memory_space<vmem>>, vector<8x128xf32>,
    %c0_118 = arith.constant 0 : index
    %c0_119 = arith.constant 0 : index
    %214 = vector.load %arg10[%c0_118, %c0_119] : memref<8x128xf32, #tpu.memory_space<vmem>>, vector<8x128xf32>
    tpu.vector_store %arg10[%c0_118, %c0_119], %210 {strides = array<i32>} : memref<8x128xf32, #tpu.memory_space<vmem>>, vector<8x128xf32>,
    %c0_120 = arith.constant 0 : index
    %215 = arith.index_cast %186 : i32 to index
    %c0_121 = arith.constant 0 : index
    %c0_122 = arith.constant 0 : index
    %216 = vector.load %arg7[%c0_120, %215, %c0_121, %c0_122] : memref<1x8x8x128xf32, #tpu.memory_space<vmem>>, vector<1x1x8x128xf32>
    %217 = vector.shape_cast %216 : vector<1x1x8x128xf32> to vector<8x128xf32>
    %218 = vector.shape_cast %212 : vector<8x128xf32> to vector<1x1x8x128xf32>
    tpu.vector_store %arg7[%c0_120, %215, %c0_121, %c0_122], %218 {strides = array<i32>} : memref<1x8x8x128xf32, #tpu.memory_space<vmem>>, vector<1x1x8x128xf32>,
    %c6_i32 = arith.constant 6 : i32
    %c0_i32_123 = arith.constant 0 : i32
    %219 = arith.cmpi eq, %arg0, %c0_i32_123 : i32
    %c7_i32_124 = arith.constant 7 : i32
    %220 = arith.subi %c7_i32_124, %c6_i32 : i32
    %221 = arith.select %219, %c6_i32, %220 : i32
    %c0_125 = arith.constant 0 : index
    %c0_126 = arith.constant 0 : index
    %222 = vector.load %arg9[%c0_125, %c0_126] : memref<8x128xf32, #tpu.memory_space<vmem>>, vector<8x128xf32>
    %c0_127 = arith.constant 0 : index
    %c0_128 = arith.constant 0 : index
    %223 = vector.load %arg10[%c0_127, %c0_128] : memref<8x128xf32, #tpu.memory_space<vmem>>, vector<8x128xf32>
    %cst_129 = arith.constant dense<0.000000e+00> : vector<8x512xf32>
    %224 = tpu.matmul %222, %4, %cst_129 {dimension_numbers = #tpu.dot_dimension_numbers<[1], [0], [0], [1], [0, 0, 1, 1], [], []>} : vector<8x128xf32>, vector<128x512xf32>, vector<8x512xf32> -> vector<8x512xf32>
    %225 = vector.broadcast %6 : vector<1x512xf32> to vector<8x512xf32>
    %226 = arith.addf %225, %224 : vector<8x512xf32>
    %c0_130 = arith.constant 0 : index
    %227 = arith.index_cast %221 : i32 to index
    %c0_131 = arith.constant 0 : index
    %c0_132 = arith.constant 0 : index
    %228 = vector.load %arg3[%c0_130, %227, %c0_131, %c0_132] : memref<1x8x8x32xf32, #tpu.memory_space<vmem>>, vector<1x1x8x32xf32>
    %229 = vector.shape_cast %228 : vector<1x1x8x32xf32> to vector<8x32xf32>
    %cst_133 = arith.constant dense<0.000000e+00> : vector<8x512xf32>
    %230 = tpu.matmul %229, %8, %cst_133 {dimension_numbers = #tpu.dot_dimension_numbers<[1], [0], [0], [1], [0, 0, 1, 1], [], []>} : vector<8x32xf32>, vector<32x512xf32>, vector<8x512xf32> -> vector<8x512xf32>
    %231 = arith.addf %226, %230 : vector<8x512xf32>
    %232 = vector.extract_strided_slice %231 {offsets = [0, 0], sizes = [8, 384], strides = [1, 1]} : vector<8x512xf32> to vector<8x384xf32>
    %233 = arith.negf %232 : vector<8x384xf32>
    %234 = math.exp %233 : vector<8x384xf32>
    %cst_134 = arith.constant 1.000000e+00 : f32
    %235 = vector.broadcast %cst_134 : f32 to vector<8x384xf32>
    %236 = arith.addf %235, %234 : vector<8x384xf32>
    %237 = arith.divf %235, %236 : vector<8x384xf32>
    %238 = vector.extract_strided_slice %237 {offsets = [0, 0], sizes = [8, 128], strides = [1, 1]} : vector<8x384xf32> to vector<8x128xf32>
    %239 = vector.extract_strided_slice %237 {offsets = [0, 128], sizes = [8, 128], strides = [1, 1]} : vector<8x384xf32> to vector<8x128xf32>
    %240 = vector.extract_strided_slice %237 {offsets = [0, 256], sizes = [8, 128], strides = [1, 1]} : vector<8x384xf32> to vector<8x128xf32>
    %241 = vector.extract_strided_slice %231 {offsets = [0, 384], sizes = [8, 128], strides = [1, 1]} : vector<8x512xf32> to vector<8x128xf32>
    %242 = math.tanh %241 : vector<8x128xf32>
    %243 = arith.mulf %239, %223 : vector<8x128xf32>
    %244 = arith.mulf %238, %242 : vector<8x128xf32>
    %245 = arith.addf %243, %244 : vector<8x128xf32>
    %246 = math.tanh %245 : vector<8x128xf32>
    %247 = arith.mulf %240, %246 : vector<8x128xf32>
    %c0_135 = arith.constant 0 : index
    %c0_136 = arith.constant 0 : index
    %248 = vector.load %arg9[%c0_135, %c0_136] : memref<8x128xf32, #tpu.memory_space<vmem>>, vector<8x128xf32>
    tpu.vector_store %arg9[%c0_135, %c0_136], %247 {strides = array<i32>} : memref<8x128xf32, #tpu.memory_space<vmem>>, vector<8x128xf32>,
    %c0_137 = arith.constant 0 : index
    %c0_138 = arith.constant 0 : index
    %249 = vector.load %arg10[%c0_137, %c0_138] : memref<8x128xf32, #tpu.memory_space<vmem>>, vector<8x128xf32>
    tpu.vector_store %arg10[%c0_137, %c0_138], %245 {strides = array<i32>} : memref<8x128xf32, #tpu.memory_space<vmem>>, vector<8x128xf32>,
    %c0_139 = arith.constant 0 : index
    %250 = arith.index_cast %221 : i32 to index
    %c0_140 = arith.constant 0 : index
    %c0_141 = arith.constant 0 : index
    %251 = vector.load %arg7[%c0_139, %250, %c0_140, %c0_141] : memref<1x8x8x128xf32, #tpu.memory_space<vmem>>, vector<1x1x8x128xf32>
    %252 = vector.shape_cast %251 : vector<1x1x8x128xf32> to vector<8x128xf32>
    %253 = vector.shape_cast %247 : vector<8x128xf32> to vector<1x1x8x128xf32>
    tpu.vector_store %arg7[%c0_139, %250, %c0_140, %c0_141], %253 {strides = array<i32>} : memref<1x8x8x128xf32, #tpu.memory_space<vmem>>, vector<1x1x8x128xf32>,
    %c7_i32_142 = arith.constant 7 : i32
    %c0_i32_143 = arith.constant 0 : i32
    %254 = arith.cmpi eq, %arg0, %c0_i32_143 : i32
    %c7_i32_144 = arith.constant 7 : i32
    %255 = arith.subi %c7_i32_144, %c7_i32_142 : i32
    %256 = arith.select %254, %c7_i32_142, %255 : i32
    %c0_145 = arith.constant 0 : index
    %c0_146 = arith.constant 0 : index
    %257 = vector.load %arg9[%c0_145, %c0_146] : memref<8x128xf32, #tpu.memory_space<vmem>>, vector<8x128xf32>
    %c0_147 = arith.constant 0 : index
    %c0_148 = arith.constant 0 : index
    %258 = vector.load %arg10[%c0_147, %c0_148] : memref<8x128xf32, #tpu.memory_space<vmem>>, vector<8x128xf32>
    %cst_149 = arith.constant dense<0.000000e+00> : vector<8x512xf32>
    %259 = tpu.matmul %257, %4, %cst_149 {dimension_numbers = #tpu.dot_dimension_numbers<[1], [0], [0], [1], [0, 0, 1, 1], [], []>} : vector<8x128xf32>, vector<128x512xf32>, vector<8x512xf32> -> vector<8x512xf32>
    %260 = vector.broadcast %6 : vector<1x512xf32> to vector<8x512xf32>
    %261 = arith.addf %260, %259 : vector<8x512xf32>
    %c0_150 = arith.constant 0 : index
    %262 = arith.index_cast %256 : i32 to index
    %c0_151 = arith.constant 0 : index
    %c0_152 = arith.constant 0 : index
    %263 = vector.load %arg3[%c0_150, %262, %c0_151, %c0_152] : memref<1x8x8x32xf32, #tpu.memory_space<vmem>>, vector<1x1x8x32xf32>
    %264 = vector.shape_cast %263 : vector<1x1x8x32xf32> to vector<8x32xf32>
    %cst_153 = arith.constant dense<0.000000e+00> : vector<8x512xf32>
    %265 = tpu.matmul %264, %8, %cst_153 {dimension_numbers = #tpu.dot_dimension_numbers<[1], [0], [0], [1], [0, 0, 1, 1], [], []>} : vector<8x32xf32>, vector<32x512xf32>, vector<8x512xf32> -> vector<8x512xf32>
    %266 = arith.addf %261, %265 : vector<8x512xf32>
    %267 = vector.extract_strided_slice %266 {offsets = [0, 0], sizes = [8, 384], strides = [1, 1]} : vector<8x512xf32> to vector<8x384xf32>
    %268 = arith.negf %267 : vector<8x384xf32>
    %269 = math.exp %268 : vector<8x384xf32>
    %cst_154 = arith.constant 1.000000e+00 : f32
    %270 = vector.broadcast %cst_154 : f32 to vector<8x384xf32>
    %271 = arith.addf %270, %269 : vector<8x384xf32>
    %272 = arith.divf %270, %271 : vector<8x384xf32>
    %273 = vector.extract_strided_slice %272 {offsets = [0, 0], sizes = [8, 128], strides = [1, 1]} : vector<8x384xf32> to vector<8x128xf32>
    %274 = vector.extract_strided_slice %272 {offsets = [0, 128], sizes = [8, 128], strides = [1, 1]} : vector<8x384xf32> to vector<8x128xf32>
    %275 = vector.extract_strided_slice %272 {offsets = [0, 256], sizes = [8, 128], strides = [1, 1]} : vector<8x384xf32> to vector<8x128xf32>
    %276 = vector.extract_strided_slice %266 {offsets = [0, 384], sizes = [8, 128], strides = [1, 1]} : vector<8x512xf32> to vector<8x128xf32>
    %277 = math.tanh %276 : vector<8x128xf32>
    %278 = arith.mulf %274, %258 : vector<8x128xf32>
    %279 = arith.mulf %273, %277 : vector<8x128xf32>
    %280 = arith.addf %278, %279 : vector<8x128xf32>
    %281 = math.tanh %280 : vector<8x128xf32>
    %282 = arith.mulf %275, %281 : vector<8x128xf32>
    %c0_155 = arith.constant 0 : index
    %c0_156 = arith.constant 0 : index
    %283 = vector.load %arg9[%c0_155, %c0_156] : memref<8x128xf32, #tpu.memory_space<vmem>>, vector<8x128xf32>
    tpu.vector_store %arg9[%c0_155, %c0_156], %282 {strides = array<i32>} : memref<8x128xf32, #tpu.memory_space<vmem>>, vector<8x128xf32>,
    %c0_157 = arith.constant 0 : index
    %c0_158 = arith.constant 0 : index
    %284 = vector.load %arg10[%c0_157, %c0_158] : memref<8x128xf32, #tpu.memory_space<vmem>>, vector<8x128xf32>
    tpu.vector_store %arg10[%c0_157, %c0_158], %280 {strides = array<i32>} : memref<8x128xf32, #tpu.memory_space<vmem>>, vector<8x128xf32>,
    %c0_159 = arith.constant 0 : index
    %285 = arith.index_cast %256 : i32 to index
    %c0_160 = arith.constant 0 : index
    %c0_161 = arith.constant 0 : index
    %286 = vector.load %arg7[%c0_159, %285, %c0_160, %c0_161] : memref<1x8x8x128xf32, #tpu.memory_space<vmem>>, vector<1x1x8x128xf32>
    %287 = vector.shape_cast %286 : vector<1x1x8x128xf32> to vector<8x128xf32>
    %288 = vector.shape_cast %282 : vector<8x128xf32> to vector<1x1x8x128xf32>
    tpu.vector_store %arg7[%c0_159, %285, %c0_160, %c0_161], %288 {strides = array<i32>} : memref<1x8x8x128xf32, #tpu.memory_space<vmem>>, vector<1x1x8x128xf32>,
    %c8_i32 = arith.constant 8 : i32
    %c0_i32_162 = arith.constant 0 : i32
    %289 = arith.cmpi eq, %arg2, %c0_i32_162 : i32
    %290 = arith.extui %289 : i1 to i32
    %c0_i32_163 = arith.constant 0 : i32
    %291 = arith.cmpi ne, %290, %c0_i32_163 : i32
    scf.if %291 {
      %c0_164 = arith.constant 0 : index
      %c0_165 = arith.constant 0 : index
      %292 = vector.load %arg10[%c0_164, %c0_165] : memref<8x128xf32, #tpu.memory_space<vmem>>, vector<8x128xf32>
      %c0_166 = arith.constant 0 : index
      %c0_167 = arith.constant 0 : index
      %c0_168 = arith.constant 0 : index
      %293 = vector.load %arg8[%c0_166, %c0_167, %c0_168] : memref<1x8x128xf32, #tpu.memory_space<vmem>>, vector<1x8x128xf32>
      %294 = vector.shape_cast %293 : vector<1x8x128xf32> to vector<8x128xf32>
      %295 = vector.shape_cast %292 : vector<8x128xf32> to vector<1x8x128xf32>
      tpu.vector_store %arg8[%c0_166, %c0_167, %c0_168], %295 {strides = array<i32>} : memref<1x8x128xf32, #tpu.memory_space<vmem>>, vector<1x8x128xf32>,
    } else {
    }
    return
  }
  func.func @transform_0(%arg0: i32, %arg1: i32, %arg2: i32) -> (i32, i32, i32, i32) {
    %c1_i32 = arith.constant 1 : i32
    %0 = arith.subi %c1_i32, %arg0 : i32
    %1 = arith.muli %0, %arg2 : i32
    %c0_i32 = arith.constant 0 : i32
    %2 = arith.subi %c0_i32, %arg2 : i32
    %3 = arith.muli %arg0, %2 : i32
    %4 = arith.addi %1, %3 : i32
    %c0_i32_0 = arith.constant 0 : i32
    %c0_i32_1 = arith.constant 0 : i32
    %c0_i32_2 = arith.constant 0 : i32
    return %c0_i32_0, %4, %arg1, %c0_i32_1 : i32, i32, i32, i32
  }
  func.func @transform_1(%arg0: i32, %arg1: i32, %arg2: i32) -> (i32, i32, i32, i32) {
    %c0_i32 = arith.constant 0 : i32
    %c0_i32_0 = arith.constant 0 : i32
    %c0_i32_1 = arith.constant 0 : i32
    %c0_i32_2 = arith.constant 0 : i32
    return %arg0, %c0_i32, %c0_i32_0, %c0_i32_1 : i32, i32, i32, i32
  }
  func.func @transform_2(%arg0: i32, %arg1: i32, %arg2: i32) -> (i32, i32, i32) {
    %c0_i32 = arith.constant 0 : i32
    %c0_i32_0 = arith.constant 0 : i32
    %c0_i32_1 = arith.constant 0 : i32
    return %arg0, %c0_i32, %c0_i32_0 : i32, i32, i32
  }
  func.func @transform_3(%arg0: i32, %arg1: i32, %arg2: i32) -> (i32, i32, i32) {
    %c0_i32 = arith.constant 0 : i32
    %c0_i32_0 = arith.constant 0 : i32
    %c0_i32_1 = arith.constant 0 : i32
    return %arg0, %c0_i32, %c0_i32_0 : i32, i32, i32
  }
  func.func @transform_4(%arg0: i32, %arg1: i32, %arg2: i32) -> (i32, i32, i32, i32) {
    %c1_i32 = arith.constant 1 : i32
    %0 = arith.subi %c1_i32, %arg0 : i32
    %1 = arith.muli %0, %arg2 : i32
    %c0_i32 = arith.constant 0 : i32
    %2 = arith.subi %c0_i32, %arg2 : i32
    %3 = arith.muli %arg0, %2 : i32
    %4 = arith.addi %1, %3 : i32
    %c0_i32_0 = arith.constant 0 : i32
    %c0_i32_1 = arith.constant 0 : i32
    return %arg0, %4, %arg1, %c0_i32_0 : i32, i32, i32, i32
  }
  func.func @transform_5(%arg0: i32, %arg1: i32, %arg2: i32) -> (i32, i32, i32) {
    %c0_i32 = arith.constant 0 : i32
    %c0_i32_0 = arith.constant 0 : i32
    return %arg0, %arg1, %c0_i32 : i32, i32, i32
  }
}

</mosaic_0001>

<bundles_post_ra>
// kernel: _fwd.1
= control target key start
LH: loop header
LB: loop body
LE: loop exit
PB: predicated region body
PF: predicated region fallthrough
CT: control target
= control target key end

     0   :  { %11 = vsyncpa [#allocation5], 0  ;;  %s4424_s0 = inlined_call_operand.vmem [shape: f32[1,8,8,32], index: 0, kind: input, shape index: {}]   ;;  %s4425_s1 = inlined_call_operand.hbm [shape: f32[1,1,32,512], index: 1, kind: input, shape index: {}]   ;;  %s4426_s2 = inlined_call_operand.hbm [shape: f32[1,128,512], index: 2, kind: input, shape index: {}]   ;;  %s4427_s3 = inlined_call_operand.vmem [shape: f32[1,1,512], index: 3, kind: input, shape index: {}]   ;;  %s4428_s4 = inlined_call_operand.vmem [shape: f32[1,8,8,128], index: 4, kind: output, shape index: {0}]   ;;  %s4429_s5 = inlined_call_operand.vmem [shape: f32[1,8,128], index: 5, kind: output, shape index: {1}]  }
   0x1   :  { %12 = vsyncpa [#allocation7], 0  ;;  %s3255_s18 = smov [#allocation4]  }
   0x2   :  { %s36_s19 = sshll.u32 %s3255_s18, 4  ;;  %s37_s19 = int_to_ptr.vmem [resolvable:$true] %s36_s19 }
   0x3   :  { %s3219_s20 = scalar_lea.vmem %s37_s19, 2048  ;;  %p3224_p1 = scmp.lt.s32.totalorder %s37_s19, %s37_s19 }
   0x4   :  { %p3220_p0 = scmp.ne.s32.totalorder %s37_s19, %s3219_s20  ;;  %p3225_p2 = scmp.lt.s32.totalorder %s3219_s20, %s3219_s20 }
   0x6   :  { %p3226_p3 = por %p3225_p2, %p3224_p1 }
   0x8   :  { %p3227_p4 = pnand %p3226_p3, %p3220_p0 }
   0xa   :  { %3230 = shalt.err (!%p3227_p4)
}
   0xb   :  { %s3256_s21 = smov 512   ;;  %s3257_s22 = smov 32  }
   0xc   :  { %42 = dma.hbm_to_vmem [thread:$0]  %s4425_s1, 2048, %s37_s19, [#allocation5], %s3256_s21, %s3256_s21, %s3257_s22  }
   0xd   :  { %s3258_s25 = smov [#allocation6]  }
   0xe   :  { %s48_s26 = sshll.u32 %s3258_s25, 4  ;;  %s49_s26 = int_to_ptr.vmem [resolvable:$true] %s48_s26 }
   0xf   :  { %s3239_s27 = scalar_lea.vmem %s49_s26, 8192  ;;  %p3244_p6 = scmp.lt.s32.totalorder %s49_s26, %s49_s26 }
  0x10   :  { %p3240_p5 = scmp.ne.s32.totalorder %s49_s26, %s3239_s27  ;;  %p3245_p7 = scmp.lt.s32.totalorder %s3239_s27, %s3239_s27 }
  0x12   :  { %p3246_p8 = por %p3245_p7, %p3244_p6 }
  0x14   :  { %p3247_p9 = pnand %p3246_p8, %p3240_p5 }
  0x16   :  { %3250 = shalt.err (!%p3247_p9)
}
  0x17   :  { %54 = dma.hbm_to_vmem [thread:$0]  %s4426_s2, 8192, %s49_s26, [#allocation7], %s3256_s21, %s3256_s21, %s3257_s22  }
  0x18   :  { %3251 = dma.done.wait [#allocation5], 2048  }
  0x19   :  { %3252 = vsyncadd [#allocation5], 4294965248 }
  0x1a   :  { %3253 = dma.done.wait [#allocation7], 8192  }
  0x1b   :  { %3254 = vsyncadd [#allocation7], 4294959104  ;;  %v4430_v0 = vmov 0.0   ;;  %v3298_v1 = vld [vmem:[#allocation6 + $0x1e8] sm:$0xff]  ;;  %v3300_v2 = vld [vmem:[#allocation6 + $0x1e0] sm:$0xff]  ;;  %vm376_vm0 = vcmask 261120  }
  0x1c   :  { %270 = vmatprep.mubr.f32.mxu0 %v4430_v0  ;;  %341 = vmatprep.mubr.f32.mxu1 %v4430_v0  ;;  %v3302_v3 = vld [vmem:[#allocation6 + $0x1c8] sm:$0xff]  ;;  %v3305_v4 = vld [vmem:[#allocation6 + $0x1c0] sm:$0xff]  ;;  %v3316_v8 = vld [vmem:[#allocation6 + $0x1f8] sm:$0xff] }
  0x1d   :  { %206 = vmatprep.subr.mxu0 %v3298_v1  ;;  %v3308_v5 = vld [vmem:[#allocation6 + $0x1a8] sm:$0xff]  ;;  %v3311_v6 = vld [vmem:[#allocation6 + $0x1a0] sm:$0xff]  ;;  %v3318_v9 = vld [vmem:[#allocation6 + $0x1f0] sm:$0xff]  ;;  %277 = vmatprep.subr.mxu1 %v3316_v8 }
  0x1e   :  { %207 = vmatpush1.msra.mxu0 %v3300_v2  ;;  %v3314_v7 = vld [vmem:[#allocation6 + $0x188] sm:$0xff]  ;;  %v3321_v10 = vld [vmem:[#allocation6 + $0x180] sm:$0xff]  ;;  %v3324_v11 = vld [vmem:[#allocation6 + $0x1d8] sm:$0xff]  ;;  %278 = vmatpush1.msra.mxu1 %v3318_v9 }
  0x1f   :  { %208 = vmatprep.subr.mxu0 %v3302_v3  ;;  %v3327_v12 = vld [vmem:[#allocation6 + $0x168] sm:$0xff]  ;;  %v3330_v13 = vld [vmem:[#allocation6 + $0x1d0] sm:$0xff]  ;;  %v3332_v14 = vld [vmem:[#allocation6 + $0x1b8] sm:$0xff]  ;;  %279 = vmatprep.subr.mxu1 %v3324_v11 }
  0x20   :  { %209 = vmatpush1.msra.mxu0 %v3305_v4  ;;  %v3335_v15 = vld [vmem:[#allocation6 + $0x160] sm:$0xff]  ;;  %v3338_v16 = vld [vmem:[#allocation6 + $0x1b0] sm:$0xff]  ;;  %v3341_v17 = vld [vmem:[#allocation6 + $0x148] sm:$0xff]  ;;  %280 = vmatpush1.msra.mxu1 %v3330_v13 }
  0x21   :  { %210 = vmatprep.subr.mxu0 %v3308_v5  ;;  %v3344_v18 = vld [vmem:[#allocation6 + $0x198] sm:$0xff]  ;;  %v3347_v19 = vld [vmem:[#allocation6 + $0x140] sm:$0xff]  ;;  %281 = vmatprep.subr.mxu1 %v3332_v14  ;;  %v3350_v20 = vld [vmem:[#allocation6 + $0x190] sm:$0xff] }
  0x22   :  { %211 = vmatpush1.msra.mxu0 %v3311_v6  ;;  %v3353_v21 = vld [vmem:[#allocation6 + $0x128] sm:$0xff]  ;;  %282 = vmatpush1.msra.mxu1 %v3338_v16  ;;  %v3356_v22 = vld [vmem:[#allocation6 + $0x178] sm:$0xff]  ;;  %v3359_v23 = vld [vmem:[#allocation6 + $0x120] sm:$0xff] }
  0x23   :  { %212 = vmatprep.subr.mxu0 %v3314_v7  ;;  %4600 = vst [vmem:[#allocation10_spill] sm:$0xff] %v3359_v23  ;;  %283 = vmatprep.subr.mxu1 %v3344_v18  ;;  %v3362_v24 = vld [vmem:[#allocation6 + $0x170] sm:$0xff]  ;;  %v3365_v25 = vld [vmem:[#allocation6 + $0x108] sm:$0xff]  ;;  %v3368_v26 = vld [vmem:[#allocation6 + $0x158] sm:$0xff] }
  0x24   :  { %213 = vmatpush1.msra.mxu0 %v3321_v10  ;;  %4601 = vst [vmem:[#allocation11_spill] sm:$0xff] %v3365_v25  ;;  %284 = vmatpush1.msra.mxu1 %v3350_v20  ;;  %v3371_v27 = vld [vmem:[#allocation6 + $0x100] sm:$0xff]  ;;  %v3374_v28 = vld [vmem:[#allocation6 + $0x150] sm:$0xff]  ;;  %v3377_v29 = vld [vmem:[#allocation6 + $0xe8] sm:$0xff] }
  0x25   :  { %214 = vmatprep.subr.mxu0 %v3327_v12  ;;  %4602 = vst [vmem:[#allocation12_spill] sm:$0xff] %v3371_v27  ;;  %285 = vmatprep.subr.mxu1 %v3356_v22  ;;  %4603 = vst [vmem:[#allocation13_spill] sm:$0xff] %v3377_v29  ;;  %v3380_v30 = vld [vmem:[#allocation6 + $0x138] sm:$0xff]  ;;  %v3383_v31 = vld [vmem:[#allocation6 + $0xe0] sm:$0xff] }
  0x26   :  { %215 = vmatpush1.msra.mxu0 %v3335_v15  ;;  %286 = vmatpush1.msra.mxu1 %v3362_v24  ;;  %4604 = vst [vmem:[#allocation14_spill] sm:$0xff] %v3383_v31  ;;  %v3386_v32 = vld [vmem:[#allocation6 + $0x130] sm:$0xff]  ;;  %v3389_v33 = vld [vmem:[#allocation6 + $0xc8] sm:$0xff]  ;;  %v3392_v34 = vld [vmem:[#allocation6 + $0x118] sm:$0xff] }
  0x27   :  { %216 = vmatprep.subr.mxu0 %v3341_v17  ;;  %287 = vmatprep.subr.mxu1 %v3368_v26  ;;  %4605 = vst [vmem:[#allocation15_spill] sm:$0xff] %v3386_v32  ;;  %4606 = vst [vmem:[#allocation16_spill] sm:$0xff] %v3389_v33  ;;  %v3395_v35 = vld [vmem:[#allocation6 + $0xc0] sm:$0xff]  ;;  %v3398_v36 = vld [vmem:[#allocation6 + $0x110] sm:$0xff] }
  0x28   :  { %217 = vmatpush1.msra.mxu0 %v3347_v19  ;;  %288 = vmatpush1.msra.mxu1 %v3374_v28  ;;  %4607 = vst [vmem:[#allocation17_spill] sm:$0xff] %v3392_v34  ;;  %4608 = vst [vmem:[#allocation18_spill] sm:$0xff] %v3395_v35  ;;  %v3401_v37 = vld [vmem:[#allocation6 + $0xa8] sm:$0xff]  ;;  %v3404_v38 = vld [vmem:[#allocation6 + $0xf8] sm:$0xff] }
  0x29   :  { %218 = vmatprep.subr.mxu0 %v3353_v21  ;;  %289 = vmatprep.subr.mxu1 %v3380_v30  ;;  %4609 = vst [vmem:[#allocation19_spill] sm:$0xff] %v3398_v36  ;;  %4610 = vst [vmem:[#allocation20_spill] sm:$0xff] %v3401_v37  ;;  %v3407_v39 = vld [vmem:[#allocation6 + $0xa0] sm:$0xff]  ;;  %v3410_v40 = vld [vmem:[#allocation6 + $0xf0] sm:$0xff] }
  0x2a   :  { %219 = vmatpush1.msra.mxu0 %v3359_v23  ;;  %290 = vmatpush1.msra.mxu1 %v3386_v32  ;;  %4611 = vst [vmem:[#allocation21_spill] sm:$0xff] %v3404_v38  ;;  %4612 = vst [vmem:[#allocation22_spill] sm:$0xff] %v3407_v39  ;;  %v3413_v41 = vld [vmem:[#allocation6 + $0x88] sm:$0xff]  ;;  %v3416_v42 = vld [vmem:[#allocation6 + $0xd8] sm:$0xff] }
  0x2b   :  { %220 = vmatprep.subr.mxu0 %v3365_v25  ;;  %291 = vmatprep.subr.mxu1 %v3392_v34  ;;  %4613 = vst [vmem:[#allocation23_spill] sm:$0xff] %v3410_v40  ;;  %4614 = vst [vmem:[#allocation24_spill] sm:$0xff] %v3413_v41  ;;  %v3419_v43 = vld [vmem:[#allocation6 + $0x80] sm:$0xff]  ;;  %v3422_v44 = vld [vmem:[#allocation6 + $0xd0] sm:$0xff] }
  0x2c   :  { %221 = vmatpush1.msra.mxu0 %v3371_v27  ;;  %292 = vmatpush1.msra.mxu1 %v3398_v36  ;;  %4615 = vst [vmem:[#allocation25_spill] sm:$0xff] %v3416_v42  ;;  %4616 = vst [vmem:[#allocation26_spill] sm:$0xff] %v3419_v43  ;;  %v3425_v45 = vld [vmem:[#allocation6 + $0x68] sm:$0xff]  ;;  %v3428_v46 = vld [vmem:[#allocation6 + $0xb8] sm:$0xff] }
  0x2d   :  { %222 = vmatprep.subr.mxu0 %v3377_v29  ;;  %293 = vmatprep.subr.mxu1 %v3404_v38  ;;  %4617 = vst [vmem:[#allocation27_spill] sm:$0xff] %v3422_v44  ;;  %4618 = vst [vmem:[#allocation28_spill] sm:$0xff] %v3425_v45  ;;  %v3431_v47 = vld [vmem:[#allocation6 + $0x60] sm:$0xff]  ;;  %v3434_v48 = vld [vmem:[#allocation6 + $0xb0] sm:$0xff] }
  0x2e   :  { %223 = vmatpush1.msra.mxu0 %v3383_v31  ;;  %294 = vmatpush1.msra.mxu1 %v3410_v40  ;;  %4619 = vst [vmem:[#allocation29_spill] sm:$0xff] %v3428_v46  ;;  %4620 = vst [vmem:[#allocation30_spill] sm:$0xff] %v3431_v47  ;;  %v3437_v49 = vld [vmem:[#allocation6 + $0x48] sm:$0xff]  ;;  %v3440_v50 = vld [vmem:[#allocation6 + $0x98] sm:$0xff] }
  0x2f   :  { %224 = vmatprep.subr.mxu0 %v3389_v33  ;;  %295 = vmatprep.subr.mxu1 %v3416_v42  ;;  %4621 = vst [vmem:[#allocation31_spill] sm:$0xff] %v3434_v48  ;;  %4622 = vst [vmem:[#allocation32_spill] sm:$0xff] %v3437_v49  ;;  %v3443_v51 = vld [vmem:[#allocation6 + $0x40] sm:$0xff]  ;;  %v3446_v52 = vld [vmem:[#allocation6 + $0x90] sm:$0xff] }
  0x30   :  { %225 = vmatpush1.msra.mxu0 %v3395_v35  ;;  %296 = vmatpush1.msra.mxu1 %v3422_v44  ;;  %4623 = vst [vmem:[#allocation33_spill] sm:$0xff] %v3440_v50  ;;  %4624 = vst [vmem:[#allocation34_spill] sm:$0xff] %v3443_v51  ;;  %v3449_v53 = vld [vmem:[#allocation6 + $0x28] sm:$0xff]  ;;  %v3452_v54 = vld [vmem:[#allocation6 + $0x78] sm:$0xff] }
  0x31   :  { %226 = vmatprep.subr.mxu0 %v3401_v37  ;;  %297 = vmatprep.subr.mxu1 %v3428_v46  ;;  %4625 = vst [vmem:[#allocation35_spill] sm:$0xff] %v3446_v52  ;;  %4626 = vst [vmem:[#allocation36_spill] sm:$0xff] %v3449_v53  ;;  %v3455_v55 = vld [vmem:[#allocation6 + $0x20] sm:$0xff]  ;;  %v3458_v56 = vld [vmem:[#allocation6 + $0x70] sm:$0xff] }
  0x32   :  { %227 = vmatpush1.msra.mxu0 %v3407_v39  ;;  %298 = vmatpush1.msra.mxu1 %v3434_v48  ;;  %4627 = vst [vmem:[#allocation37_spill] sm:$0xff] %v3452_v54  ;;  %4628 = vst [vmem:[#allocation38_spill] sm:$0xff] %v3455_v55  ;;  %v3461_v57 = vld [vmem:[#allocation6 + $0x8] sm:$0xff]  ;;  %v3464_v58 = vld [vmem:[#allocation6 + $0x58] sm:$0xff] }
  0x33   :  { %228 = vmatprep.subr.mxu0 %v3413_v41  ;;  %299 = vmatprep.subr.mxu1 %v3440_v50  ;;  %4629 = vst [vmem:[#allocation39_spill] sm:$0xff] %v3458_v56  ;;  %4630 = vst [vmem:[#allocation40_spill] sm:$0xff] %v3461_v57  ;;  %v3467_v59 = vld [vmem:[#allocation6] sm:$0xff]  ;;  %v3470_v60 = vld [vmem:[#allocation6 + $0x50] sm:$0xff] }
  0x34   :  { %229 = vmatpush1.msra.mxu0 %v3419_v43  ;;  %300 = vmatpush1.msra.mxu1 %v3446_v52  ;;  %4631 = vst [vmem:[#allocation41_spill] sm:$0xff] %v3464_v58  ;;  %4632 = vst [vmem:[#allocation42_spill] sm:$0xff] %v3467_v59  ;;  %v3473_v61 = vld [vmem:[#allocation4 + $0x68] sm:$0xff]  ;;  %v3477_v62 = vld [vmem:[#allocation4 + $0x60] sm:$0xff] }
  0x35   :  { %230 = vmatprep.subr.mxu0 %v3425_v45  ;;  %301 = vmatprep.subr.mxu1 %v3452_v54  ;;  %4633 = vst [vmem:[#allocation43_spill] sm:$0xff] %v3470_v60  ;;  %4634 = vst [vmem:[#allocation44_spill] sm:$0xff] %v3473_v61  ;;  %v3480_v63 = vld [vmem:[#allocation6 + $0x38] sm:$0xff]  ;;  %v3483_v0 = vld [vmem:[#allocation4 + $0x48] sm:$0xff] }
  0x36   :  { %231 = vmatpush1.msra.mxu0 %v3431_v47  ;;  %302 = vmatpush1.msra.mxu1 %v3458_v56  ;;  %4635 = vst [vmem:[#allocation45_spill] sm:$0xff] %v3477_v62  ;;  %4636 = vst [vmem:[#allocation46_spill] sm:$0xff] %v3480_v63  ;;  %v3490_v56 = vld [vmem:[#allocation6 + $0x30] sm:$0xff] }
  0x37   :  { %232 = vmatprep.subr.mxu0 %v3437_v49  ;;  %303 = vmatprep.subr.mxu1 %v3464_v58  ;;  %4637 = vst [vmem:[#allocation47_spill] sm:$0xff] %v3483_v0  ;;  %4640 = vst [vmem:[#allocation49_spill] sm:$0xff] %v3490_v56  ;;  %v3496_v58 = vld [vmem:[#allocation6 + $0x18] sm:$0xff] }
  0x38   :  { %233 = vmatpush1.msra.mxu0 %v3443_v51  ;;  %304 = vmatpush1.msra.mxu1 %v3470_v60  ;;  %4642 = vst [vmem:[#allocation51_spill] sm:$0xff] %v3496_v58  ;;  %v3502_v60 = vld [vmem:[#allocation6 + $0x10] sm:$0xff] }
  0x39   :  { %234 = vmatprep.subr.mxu0 %v3449_v53  ;;  %v4638_v53 = vmov 0.0   ;;  %305 = vmatprep.subr.mxu1 %v3480_v63  ;;  %4644 = vst [vmem:[#allocation53_spill] sm:$0xff] %v3502_v60  ;;  %v3511_v63 = vld [vmem:[#allocation4] sm:$0xff] }
  0x3a   :  { %235 = vmatpush1.msra.mxu0 %v3455_v55  ;;  %v3488_v55 = vld [vmem:[#allocation4 + $0x40] sm:$0xff]  ;;  %306 = vmatpush1.msra.mxu1 %v3490_v56  ;;  %4647 = vst [vmem:[#allocation56_spill] sm:$0xff] %v3511_v63 }
  0x3b   :  { %236 = vmatprep.subr.mxu0 %v3461_v57  ;;  %4639 = vst [vmem:[#allocation48_spill] sm:$0xff] %v3488_v55  ;;  %v3493_v57 = vld [vmem:[#allocation4 + $0x28] sm:$0xff]  ;;  %307 = vmatprep.subr.mxu1 %v3496_v58  ;;  %v3531_v58 = vld [vmem:[#allocation4 + $0x38] sm:$0xff] }
  0x3c   :  { %237 = vmatpush1.msra.mxu0 %v3467_v59  ;;  %4641 = vst [vmem:[#allocation50_spill] sm:$0xff] %v3493_v57  ;;  %v3499_v59 = vld [vmem:[#allocation4 + $0x20] sm:$0xff]  ;;  %308 = vmatpush1.msra.mxu1 %v3502_v60  ;;  %v3534_v60 = vld [vmem:[#allocation4 + $0x30] sm:$0xff] }
  0x3d   :  { %271 = vmatmul.mubr.f32.vlgmr.msra.gmra.mxu0 %v4638_v53  ;;  %404 = vmatprep.subr.mxu0 %v3473_v61  ;;  %4643 = vst [vmem:[#allocation52_spill] sm:$0xff] %v3499_v59  ;;  %v3505_v61 = vld [vmem:[#allocation4 + $0x8] sm:$0xff] }
  0x3e   :  { %405 = vmatpush1.msra.mxu0 %v3477_v62  ;;  %444 = vmatprep.mubr.f32.mxu0 %v4638_v53  ;;  %4645 = vst [vmem:[#allocation54_spill] sm:$0xff] %v3505_v61  ;;  %v3508_v62 = vld [vmem:[#allocation4 + $0x78] sm:$0xff] }
  0x3f   :  { %406 = vmatprep.subr.mxu0 %v3483_v0  ;;  %4646 = vst [vmem:[#allocation55_spill] sm:$0xff] %v3508_v62  ;;  %v375_v0 = vld [vmem:[%s4424_s0] sm:$0xff]  ;;  %475 = vmatprep.subr.mxu1 %v3508_v62 }
  0x40   :  { %407 = vmatpush1.msra.mxu0 %v3488_v55  ;;  %v3519_v55 = vld [vmem:[#allocation4 + $0x70] sm:$0xff]  ;;  %342 = vmatmul.mubr.f32.vlgmr.msra.gmra.mxu1 %v4638_v53 }
  0x41   :  { %408 = vmatprep.subr.mxu0 %v3493_v57  ;;  %v3523_v57 = vld [vmem:[#allocation4 + $0x58] sm:$0xff]  ;;  %476 = vmatpush1.msra.mxu1 %v3519_v55 }
  0x42   :  { %409 = vmatpush1.msra.mxu0 %v3499_v59  ;;  %v3527_v59 = vld [vmem:[#allocation4 + $0x50] sm:$0xff]  ;;  %477 = vmatprep.subr.mxu1 %v3523_v57 }
  0x43   :  { %410 = vmatprep.subr.mxu0 %v3505_v61  ;;  %515 = vmatprep.mubr.f32.mxu1 %v4638_v53  ;;  %v3538_v61 = vld [vmem:[#allocation4 + $0x18] sm:$0xff] }
  0x44   :  { %411 = vmatpush1.msra.mxu0 %v3511_v63  ;;  %478 = vmatpush1.msra.mxu1 %v3527_v59  ;;  %v3542_v63 = vld [vmem:[#allocation4 + $0x10] sm:$0xff] }
  0x45   :  { %2944 = vmatmul.mubr.msk.f32.vlgmr.msra.gmra.mxu0 %vm376_vm0, %v375_v0  ;;  %557 = vmatprep.subr.mxu0 %v3298_v1 }
  0x46   :  { %479 = vmatprep.subr.mxu1 %v3531_v58  ;;  %558 = vmatpush1.msra.mxu0 %v3300_v2 }
  0x47   :  { %480 = vmatpush1.msra.mxu1 %v3534_v60  ;;  %559 = vmatprep.subr.mxu0 %v3302_v3 }
  0x48   :  { %481 = vmatprep.subr.mxu1 %v3538_v61  ;;  %560 = vmatpush1.msra.mxu0 %v3305_v4 }
  0x49   :  { %482 = vmatpush1.msra.mxu1 %v3542_v63  ;;  %561 = vmatprep.subr.mxu0 %v3308_v5 }
  0x4a   :  { %2945 = vmatmul.mubr.msk.f32.vlgmr.msra.gmra.mxu1 %vm376_vm0, %v375_v0  ;;  %628 = vmatprep.subr.mxu1 %v3316_v8  ;;  %v4648_v0 = vld [vmem:[#allocation36_spill] sm:$0xff] }
  0x4b   :  { %629 = vmatpush1.msra.mxu1 %v3318_v9  ;;  %562 = vmatpush1.msra.mxu0 %v3311_v6 }
  0x4c   :  { %630 = vmatprep.subr.mxu1 %v3324_v11  ;;  %563 = vmatprep.subr.mxu0 %v3314_v7 }
  0x4d   :  { %631 = vmatpush1.msra.mxu1 %v3330_v13  ;;  %564 = vmatpush1.msra.mxu0 %v3321_v10 }
  0x4e   :  { %632 = vmatprep.subr.mxu1 %v3332_v14  ;;  %565 = vmatprep.subr.mxu0 %v3327_v12 }
  0x4f   :  { %633 = vmatpush1.msra.mxu1 %v3338_v16  ;;  %566 = vmatpush1.msra.mxu0 %v3335_v15 }
  0x50   :  { %634 = vmatprep.subr.mxu1 %v3344_v18  ;;  %567 = vmatprep.subr.mxu0 %v3341_v17 }
  0x51   :  { %635 = vmatpush1.msra.mxu1 %v3350_v20  ;;  %568 = vmatpush1.msra.mxu0 %v3347_v19 }
  0x52   :  { %636 = vmatprep.subr.mxu1 %v3356_v22  ;;  %569 = vmatprep.subr.mxu0 %v3353_v21 }
  0x53   :  { %637 = vmatpush1.msra.mxu1 %v3362_v24  ;;  %570 = vmatpush1.msra.mxu0 %v3359_v23 }
  0x54   :  { %638 = vmatprep.subr.mxu1 %v3368_v26  ;;  %571 = vmatprep.subr.mxu0 %v3365_v25 }
  0x55   :  { %639 = vmatpush1.msra.mxu1 %v3374_v28  ;;  %572 = vmatpush1.msra.mxu0 %v3371_v27 }
  0x56   :  { %640 = vmatprep.subr.mxu1 %v3380_v30  ;;  %573 = vmatprep.subr.mxu0 %v3377_v29 }
  0x57   :  { %641 = vmatpush1.msra.mxu1 %v3386_v32  ;;  %574 = vmatpush1.msra.mxu0 %v3383_v31 }
  0x58   :  { %642 = vmatprep.subr.mxu1 %v3392_v34  ;;  %575 = vmatprep.subr.mxu0 %v3389_v33 }
  0x59   :  { %643 = vmatpush1.msra.mxu1 %v3398_v36  ;;  %576 = vmatpush1.msra.mxu0 %v3395_v35 }
  0x5a   :  { %644 = vmatprep.subr.mxu1 %v3404_v38  ;;  %577 = vmatprep.subr.mxu0 %v3401_v37 }
  0x5b   :  { %645 = vmatpush1.msra.mxu1 %v3410_v40  ;;  %578 = vmatpush1.msra.mxu0 %v3407_v39 }
  0x5c   :  { %646 = vmatprep.subr.mxu1 %v3416_v42  ;;  %579 = vmatprep.subr.mxu0 %v3413_v41  ;;  %v4650_v41 = vld [vmem:[#allocation38_spill] sm:$0xff] }
  0x5d   :  { %647 = vmatpush1.msra.mxu1 %v3422_v44  ;;  %580 = vmatpush1.msra.mxu0 %v3419_v43  ;;  %v4649_v43 = vld [vmem:[#allocation39_spill] sm:$0xff] }
  0x5e   :  { %648 = vmatprep.subr.mxu1 %v3428_v46  ;;  %581 = vmatprep.subr.mxu0 %v3425_v45  ;;  %v4651_v45 = vld [vmem:[#allocation41_spill] sm:$0xff] }
  0x5f   :  { %649 = vmatpush1.msra.mxu1 %v3434_v48  ;;  %582 = vmatpush1.msra.mxu0 %v3431_v47  ;;  %v4652_v48 = vld [vmem:[#allocation40_spill] sm:$0xff]  ;;  %v4653_v47 = vld [vmem:[#allocation43_spill] sm:$0xff] }
  0x60   :  { %650 = vmatprep.subr.mxu1 %v3440_v50  ;;  %583 = vmatprep.subr.mxu0 %v3437_v49  ;;  %v4654_v50 = vld [vmem:[#allocation42_spill] sm:$0xff] }
  0x61   :  { %651 = vmatpush1.msra.mxu1 %v3446_v52  ;;  %584 = vmatpush1.msra.mxu0 %v3443_v51  ;;  %v4655_v49 = vld [vmem:[#allocation46_spill] sm:$0xff]  ;;  %v4657_v51 = vld [vmem:[#allocation44_spill] sm:$0xff] }
  0x62   :  { %652 = vmatprep.subr.mxu1 %v3452_v54  ;;  %585 = vmatprep.subr.mxu0 %v4648_v0  ;;  %v4656_v0 = vld [vmem:[#allocation51_spill] sm:$0xff] }
  0x63   :  { %653 = vmatpush1.msra.mxu1 %v4649_v43  ;;  %586 = vmatpush1.msra.mxu0 %v4650_v41  ;;  %v4658_v41 = vld [vmem:[#allocation53_spill] sm:$0xff] }
  0x64   :  { %654 = vmatprep.subr.mxu1 %v4651_v45  ;;  %587 = vmatprep.subr.mxu0 %v4652_v48  ;;  %v349_v48 = vlaneseq }
  0x65   :  { %655 = vmatpush1.msra.mxu1 %v4653_v47  ;;  %588 = vmatpush1.msra.mxu0 %v4654_v50  ;;  %v185_v50 = vld [vmem:[%s4427_s3] sm:$0xf] }
  0x66   :  { %656 = vmatprep.subr.mxu1 %v4655_v49  ;;  %621 = vmatprep.mubr.f32.mxu0 %v4638_v53  ;;  %v350_v47 = vshrl.u32 %v349_v48, 7 }
  0x67   :  { %657 = vmatpush1.msra.mxu1 %v3490_v56  ;;  %692 = vmatprep.mubr.f32.mxu1 %v4638_v53 }
  0x68   :  { %658 = vmatprep.subr.mxu1 %v4656_v0  ;;  %733 = vmatprep.subr.mxu0 %v4657_v51  ;;  %v351_v45 = vsub.s32 0, %v350_v47  ;;  %v355_v49 = vsub.s32 1, %v350_v47 }
  0x69   :  { %659 = vmatpush1.msra.mxu1 %v4658_v41  ;;  %v359_v41 = vsub.s32 2, %v350_v47 }
  0x6a   :  { %804 = vmatprep.subr.mxu1 %v3508_v62  ;;  %v3618_v56 = vrot.slane %v185_v50, %v351_v45  ;;  %v3620_v54 = vrot.slane %v185_v50, %v355_v49  ;;  %v363_v45 = vsub.s32 3, %v350_v47 }
  0x6b   :  { %v3624_v35 = vrot.slane %v185_v50, %v359_v41 }
  0x6c   :  { %4659 = vst [vmem:[#allocation57_spill] sm:$0xff] %v3618_v56  ;;  %v3627_v40 = vrot.slane %v185_v50, %v363_v45 }
  0xfd   :  { %v272_v43 = vpop.f32.mrf.mxu0 }
  0xfe   :  { %v369_v51 = vadd.f32 %v3618_v56, %v272_v43 }
  0xff   :  { %v274_v0 = vpop.f32.mrf.mxu0 }
 0x100   :  { %v370_v62 = vadd.f32 %v3620_v54, %v274_v0  ;;  %v343_v44 = vpop.f32.mrf.mxu1 }
 0x101   :  { %v371_v33 = vadd.f32 %v3624_v35, %v343_v44 }
 0x102   :  { %v345_v49 = vpop.f32.mrf.mxu1 }
 0x103   :  { %v372_v0 = vadd.f32 %v3627_v40, %v345_v49 }
 0x105   :  { %v446_v52 = vpop.f32.mrf.mxu0 }
 0x106   :  { %v522_v39 = vadd.f32 %v446_v52, %v369_v51 }
 0x107   :  { %v448_v48 = vpop.f32.mrf.mxu0 }
 0x108   :  { %v2946_v46 = vmul.f32 -1.442695, %v522_v39  ;;  %v523_v37 = vadd.f32 %v448_v48, %v370_v62 }
 0x10a   :  { %3003 = vpow2.f32 %v2946_v46  ;;  %v2947_v42 = vmul.f32 -1.442695, %v523_v37  ;;  %v517_v43 = vpop.f32.mrf.mxu1 }
 0x10b   :  { %v524_v56 = vadd.f32 %v517_v43, %v371_v33 }
 0x10c   :  { %3005 = vpow2.f32 %v2947_v42  ;;  %v519_v51 = vpop.f32.mrf.mxu1 }
 0x10d   :  { %v2948_v52 = vmul.f32 -1.442695, %v524_v56  ;;  %v525_v62 = vadd.f32 %v519_v51, %v372_v0  ;;  %v4660_v51 = vld [vmem:[#allocation45_spill] sm:$0xff] }
 0x10f   :  { %3007 = vpow2.f32 %v2948_v52  ;;  %v4661_v52 = vld [vmem:[#allocation47_spill] sm:$0xff] }
 0x117   :  { %v3004_v39 = vpop.eup %3003 }
 0x118   :  { %v535_v48 = vadd.f32 1.0, %v3004_v39  ;;  %v4662_v39 = vld [vmem:[#allocation48_spill] sm:$0xff] }
 0x119   :  { %v3006_v41 = vpop.eup %3005 }
 0x11a   :  { %3009 = vrcp.f32 %v535_v48  ;;  %v536_v37 = vadd.f32 1.0, %v3006_v41  ;;  %v4664_v48 = vld [vmem:[#allocation52_spill] sm:$0xff]  ;;  %v4665_v41 = vld [vmem:[#allocation54_spill] sm:$0xff] }
 0x11b   :  { %3011 = vtanh.f32 %v525_v62  ;;  %v4663_v62 = vld [vmem:[#allocation50_spill] sm:$0xff] }
 0x11c   :  { %3013 = vrcp.f32 %v536_v37  ;;  %v3008_v42 = vpop.eup %3007  ;;  %v2949_v37 = vld [vmem:[%s4424_s0 + $0x8] sm:$0xff] }
 0x11d   :  { %v537_v50 = vadd.f32 1.0, %v3008_v42  ;;  %v4666_v42 = vld [vmem:[#allocation56_spill] sm:$0xff] }
 0x11f   :  { %3015 = vrcp.f32 %v537_v50  ;;  %v4670_v50 = vld [vmem:[#allocation18_spill] sm:$0xff] }
 0x127   :  { %v3010_v46 = vpop.eup %3009 }
 0x128   :  { %v3012_v44 = vpop.eup %3011 }
 0x129   :  { %v3014_v47 = vpop.eup %3013  ;;  %v546_v33 = vmul.f32 %v3012_v44, %v3010_v46  ;;  %v4667_v46 = vld [vmem:[#allocation23_spill] sm:$0xff]  ;;  %v4668_v44 = vld [vmem:[#allocation16_spill] sm:$0xff] }
 0x12a   :  { %v545_v45 = vmul.f32 0.0, %v3014_v47  ;;  %v4669_v47 = vld [vmem:[#allocation25_spill] sm:$0xff] }
 0x12c   :  { %v3630_v43 = vadd.f32 %v546_v33, %v545_v45  ;;  %v3016_v56 = vpop.eup %3015  ;;  %v4671_v45 = vld [vmem:[#allocation27_spill] sm:$0xff]  ;;  %v4672_v33 = vld [vmem:[#allocation20_spill] sm:$0xff] }
 0x12e   :  { %3017 = vtanh.f32 %v3630_v43 }
 0x13b   :  { %v3018_v49 = vpop.eup %3017 }
 0x13c   :  { %v549_v0 = vmul.f32 %v3018_v49, %v3016_v56  ;;  %v4673_v56 = vld [vmem:[#allocation29_spill] sm:$0xff]  ;;  %v4674_v49 = vld [vmem:[#allocation22_spill] sm:$0xff] }
 0x13e   :  { %553 = vst [vmem:[%s4428_s4] sm:$0xff] %v549_v0  ;;  %622 = vmatmul.mubr.f32.vlgmr.msra.gmra.mxu0 %v549_v0  ;;  %693 = vmatmul.mubr.f32.vlgmr.msra.gmra.mxu1 %v549_v0  ;;  %v4675_v0 = vld [vmem:[#allocation31_spill] sm:$0xff] }
 0x13f   :  { %734 = vmatpush1.msra.mxu0 %v4660_v51  ;;  %805 = vmatpush1.msra.mxu1 %v3519_v55 }
 0x140   :  { %735 = vmatprep.subr.mxu0 %v4661_v52  ;;  %806 = vmatprep.subr.mxu1 %v3523_v57 }
 0x141   :  { %736 = vmatpush1.msra.mxu0 %v4662_v39  ;;  %807 = vmatpush1.msra.mxu1 %v3527_v59 }
 0x142   :  { %737 = vmatprep.subr.mxu0 %v4663_v62  ;;  %808 = vmatprep.subr.mxu1 %v3531_v58 }
 0x143   :  { %738 = vmatpush1.msra.mxu0 %v4664_v48  ;;  %809 = vmatpush1.msra.mxu1 %v3534_v60 }
 0x144   :  { %739 = vmatprep.subr.mxu0 %v4665_v41  ;;  %810 = vmatprep.subr.mxu1 %v3538_v61 }
 0x145   :  { %740 = vmatpush1.msra.mxu0 %v4666_v42  ;;  %773 = vmatprep.mubr.f32.mxu0 %v4638_v53 }
 0x146   :  { %811 = vmatpush1.msra.mxu1 %v3542_v63  ;;  %844 = vmatprep.mubr.f32.mxu1 %v4638_v53 }
 0x147   :  { %2950 = vmatmul.mubr.msk.f32.vlgmr.msra.gmra.mxu0 %vm376_vm0, %v2949_v37  ;;  %2951 = vmatmul.mubr.msk.f32.vlgmr.msra.gmra.mxu1 %vm376_vm0, %v2949_v37  ;;  %v4676_v37 = vld [vmem:[#allocation24_spill] sm:$0xff] }
 0x148   :  { %886 = vmatprep.subr.mxu0 %v3298_v1  ;;  %957 = vmatprep.subr.mxu1 %v3316_v8 }
 0x149   :  { %887 = vmatpush1.msra.mxu0 %v3300_v2  ;;  %958 = vmatpush1.msra.mxu1 %v3318_v9 }
 0x14a   :  { %888 = vmatprep.subr.mxu0 %v3302_v3  ;;  %959 = vmatprep.subr.mxu1 %v3324_v11 }
 0x14b   :  { %889 = vmatpush1.msra.mxu0 %v3305_v4  ;;  %960 = vmatpush1.msra.mxu1 %v3330_v13 }
 0x14c   :  { %890 = vmatprep.subr.mxu0 %v3308_v5  ;;  %961 = vmatprep.subr.mxu1 %v3332_v14 }
 0x14d   :  { %891 = vmatpush1.msra.mxu0 %v3311_v6  ;;  %962 = vmatpush1.msra.mxu1 %v3338_v16 }
 0x14e   :  { %892 = vmatprep.subr.mxu0 %v3314_v7  ;;  %963 = vmatprep.subr.mxu1 %v3344_v18 }
 0x14f   :  { %893 = vmatpush1.msra.mxu0 %v3321_v10  ;;  %964 = vmatpush1.msra.mxu1 %v3350_v20 }
 0x150   :  { %894 = vmatprep.subr.mxu0 %v3327_v12  ;;  %965 = vmatprep.subr.mxu1 %v3356_v22 }
 0x151   :  { %895 = vmatpush1.msra.mxu0 %v3335_v15  ;;  %966 = vmatpush1.msra.mxu1 %v3362_v24 }
 0x152   :  { %896 = vmatprep.subr.mxu0 %v3341_v17  ;;  %967 = vmatprep.subr.mxu1 %v3368_v26 }
 0x153   :  { %897 = vmatpush1.msra.mxu0 %v3347_v19  ;;  %968 = vmatpush1.msra.mxu1 %v3374_v28 }
 0x154   :  { %898 = vmatprep.subr.mxu0 %v3353_v21  ;;  %969 = vmatprep.subr.mxu1 %v3380_v30 }
 0x155   :  { %899 = vmatpush1.msra.mxu0 %v3359_v23  ;;  %970 = vmatpush1.msra.mxu1 %v3386_v32 }
 0x156   :  { %900 = vmatprep.subr.mxu0 %v3365_v25  ;;  %971 = vmatprep.subr.mxu1 %v3392_v34 }
 0x157   :  { %901 = vmatpush1.msra.mxu0 %v3371_v27  ;;  %972 = vmatpush1.msra.mxu1 %v3398_v36 }
 0x158   :  { %902 = vmatprep.subr.mxu0 %v3377_v29  ;;  %973 = vmatprep.subr.mxu1 %v3404_v38 }
 0x159   :  { %903 = vmatpush1.msra.mxu0 %v3383_v31  ;;  %974 = vmatpush1.msra.mxu1 %v4667_v46  ;;  %v4677_v31 = vld [vmem:[#allocation33_spill] sm:$0xff]  ;;  %v4678_v46 = vld [vmem:[#allocation26_spill] sm:$0xff] }
 0x15a   :  { %904 = vmatprep.subr.mxu0 %v4668_v44  ;;  %975 = vmatprep.subr.mxu1 %v4669_v47  ;;  %v4679_v44 = vld [vmem:[#allocation35_spill] sm:$0xff]  ;;  %v4680_v47 = vld [vmem:[#allocation28_spill] sm:$0xff] }
 0x15b   :  { %905 = vmatpush1.msra.mxu0 %v4670_v50  ;;  %976 = vmatpush1.msra.mxu1 %v4671_v45  ;;  %v4681_v50 = vld [vmem:[#allocation37_spill] sm:$0xff]  ;;  %v4682_v45 = vld [vmem:[#allocation30_spill] sm:$0xff] }
 0x15c   :  { %906 = vmatprep.subr.mxu0 %v4672_v33  ;;  %977 = vmatprep.subr.mxu1 %v4673_v56  ;;  %v4683_v33 = vld [vmem:[#allocation39_spill] sm:$0xff]  ;;  %v4684_v56 = vld [vmem:[#allocation32_spill] sm:$0xff] }
 0x15d   :  { %907 = vmatpush1.msra.mxu0 %v4674_v49  ;;  %978 = vmatpush1.msra.mxu1 %v4675_v0  ;;  %v4685_v49 = vld [vmem:[#allocation41_spill] sm:$0xff]  ;;  %v4686_v0 = vld [vmem:[#allocation34_spill] sm:$0xff] }
 0x15e   :  { %908 = vmatprep.subr.mxu0 %v4676_v37  ;;  %979 = vmatprep.subr.mxu1 %v4677_v31  ;;  %v4687_v37 = vld [vmem:[#allocation43_spill] sm:$0xff]  ;;  %v4688_v31 = vld [vmem:[#allocation36_spill] sm:$0xff] }
 0x15f   :  { %909 = vmatpush1.msra.mxu0 %v4678_v46  ;;  %980 = vmatpush1.msra.mxu1 %v4679_v44  ;;  %v4689_v46 = vld [vmem:[#allocation46_spill] sm:$0xff] }
 0x160   :  { %910 = vmatprep.subr.mxu0 %v4680_v47  ;;  %981 = vmatprep.subr.mxu1 %v4681_v50  ;;  %v4690_v44 = vld [vmem:[#allocation38_spill] sm:$0xff]  ;;  %v4691_v47 = vld [vmem:[#allocation49_spill] sm:$0xff]  ;;  %v4692_v50 = vld [vmem:[#allocation40_spill] sm:$0xff] }
 0x161   :  { %911 = vmatpush1.msra.mxu0 %v4682_v45  ;;  %982 = vmatpush1.msra.mxu1 %v4683_v33  ;;  %v4693_v45 = vld [vmem:[#allocation51_spill] sm:$0xff]  ;;  %v4694_v33 = vld [vmem:[#allocation42_spill] sm:$0xff] }
 0x162   :  { %912 = vmatprep.subr.mxu0 %v4684_v56  ;;  %983 = vmatprep.subr.mxu1 %v4685_v49  ;;  %v4695_v56 = vld [vmem:[#allocation53_spill] sm:$0xff] }
 0x163   :  { %913 = vmatpush1.msra.mxu0 %v4686_v0  ;;  %984 = vmatpush1.msra.mxu1 %v4687_v37  ;;  %v4696_v37 = vld [vmem:[#allocation44_spill] sm:$0xff]  ;;  %v4698_v0 = vld [vmem:[#allocation57_spill] sm:$0xff] }
 0x164   :  { %914 = vmatprep.subr.mxu0 %v4688_v31  ;;  %985 = vmatprep.subr.mxu1 %v4689_v46  ;;  %v4697_v31 = vld [vmem:[#allocation55_spill] sm:$0xff] }
 0x165   :  { %915 = vmatpush1.msra.mxu0 %v4690_v44  ;;  %986 = vmatpush1.msra.mxu1 %v4691_v47 }
 0x166   :  { %916 = vmatprep.subr.mxu0 %v4692_v50  ;;  %987 = vmatprep.subr.mxu1 %v4693_v45 }
 0x167   :  { %917 = vmatpush1.msra.mxu0 %v4694_v33  ;;  %988 = vmatpush1.msra.mxu1 %v4695_v56 }
 0x168   :  { %950 = vmatprep.mubr.f32.mxu0 %v4638_v53  ;;  %1021 = vmatprep.mubr.f32.mxu1 %v4638_v53 }
 0x169   :  { %1062 = vmatprep.subr.mxu0 %v4696_v37  ;;  %1133 = vmatprep.subr.mxu1 %v4697_v31 }
 0x1fe   :  { %v623_v46 = vpop.f32.mrf.mxu0  ;;  %v694_v33 = vpop.f32.mrf.mxu1 }
 0x1ff   :  { %v699_v47 = vadd.f32 %v623_v46, %v4698_v0  ;;  %v701_v37 = vadd.f32 %v694_v33, %v3624_v35 }
 0x200   :  { %v625_v44 = vpop.f32.mrf.mxu0  ;;  %v696_v27 = vpop.f32.mrf.mxu1 }
 0x201   :  { %v700_v50 = vadd.f32 %v625_v44, %v3620_v54  ;;  %v702_v32 = vadd.f32 %v696_v27, %v3627_v40 }
 0x207   :  { %v775_v49 = vpop.f32.mrf.mxu0  ;;  %v846_v34 = vpop.f32.mrf.mxu1 }
 0x208   :  { %v851_v45 = vadd.f32 %v775_v49, %v699_v47  ;;  %v853_v31 = vadd.f32 %v846_v34, %v701_v37  ;;  %v4728_v37 = vld [vmem:[#allocation43_spill] sm:$0xff] }
 0x209   :  { %v777_v38 = vpop.f32.mrf.mxu0  ;;  %v848_v25 = vpop.f32.mrf.mxu1 }
 0x20a   :  { %v2952_v29 = vmul.f32 -1.442695, %v851_v45  ;;  %v852_v56 = vadd.f32 %v777_v38, %v700_v50  ;;  %v2954_v46 = vmul.f32 -1.442695, %v853_v31  ;;  %v854_v23 = vadd.f32 %v848_v25, %v702_v32  ;;  %v4725_v32 = vld [vmem:[#allocation32_spill] sm:$0xff] }
 0x20c   :  { %3019 = vpow2.f32 %v2952_v29  ;;  %v2953_v36 = vmul.f32 -1.442695, %v852_v56 }
 0x20e   :  { %3021 = vpow2.f32 %v2953_v36 }
 0x20f   :  { %3023 = vpow2.f32 %v2954_v46  ;;  %v4729_v46 = vld [vmem:[#allocation36_spill] sm:$0xff] }
 0x219   :  { %v3020_v0 = vpop.eup %3019 }
 0x21a   :  { %v864_v44 = vadd.f32 1.0, %v3020_v0  ;;  %v4727_v0 = vld [vmem:[#allocation34_spill] sm:$0xff] }
 0x21b   :  { %v3022_v47 = vpop.eup %3021 }
 0x21c   :  { %3025 = vrcp.f32 %v864_v44  ;;  %v865_v45 = vadd.f32 1.0, %v3022_v47  ;;  %v3024_v29 = vpop.eup %3023  ;;  %v4730_v44 = vld [vmem:[#allocation46_spill] sm:$0xff] }
 0x21d   :  { %3027 = vtanh.f32 %v854_v23  ;;  %v866_v56 = vadd.f32 1.0, %v3024_v29  ;;  %v2956_v23 = vld [vmem:[%s4424_s0 + $0x10] sm:$0xff]  ;;  %v4731_v47 = vld [vmem:[#allocation38_spill] sm:$0xff] }
 0x21e   :  { %3029 = vrcp.f32 %v865_v45  ;;  %v4732_v45 = vld [vmem:[#allocation49_spill] sm:$0xff]  ;;  %v4733_v29 = vld [vmem:[#allocation40_spill] sm:$0xff] }
 0x21f   :  { %3031 = vrcp.f32 %v866_v56  ;;  %v4737_v56 = vld [vmem:[#allocation44_spill] sm:$0xff] }
 0x229   :  { %v3026_v38 = vpop.eup %3025 }
 0x22a   :  { %v3028_v36 = vpop.eup %3027 }
 0x22b   :  { %v3030_v50 = vpop.eup %3029  ;;  %v875_v33 = vmul.f32 %v3028_v36, %v3026_v38  ;;  %v4734_v38 = vld [vmem:[#allocation51_spill] sm:$0xff]  ;;  %v4735_v36 = vld [vmem:[#allocation42_spill] sm:$0xff] }
 0x22c   :  { %v874_v34 = vmul.f32 %v3030_v50, %v3630_v43  ;;  %v3032_v25 = vpop.eup %3031  ;;  %v4726_v43 = vld [vmem:[#allocation41_spill] sm:$0xff] }
 0x22d   :  { %v4736_v50 = vld [vmem:[#allocation53_spill] sm:$0xff] }
 0x22e   :  { %v3730_v49 = vadd.f32 %v875_v33, %v874_v34  ;;  %v4738_v34 = vld [vmem:[#allocation55_spill] sm:$0xff] }
 0x230   :  { %3033 = vtanh.f32 %v3730_v49 }
 0x23d   :  { %v3034_v27 = vpop.eup %3033 }
 0x23e   :  { %v878_v31 = vmul.f32 %v3034_v27, %v3032_v25  ;;  %v4739_v27 = vld [vmem:[#allocation57_spill] sm:$0xff] }
 0x240   :  { %2955 = vst [vmem:[%s4428_s4 + $0x8] sm:$0xff] %v878_v31  ;;  %951 = vmatmul.mubr.f32.vlgmr.msra.gmra.mxu0 %v878_v31  ;;  %1022 = vmatmul.mubr.f32.vlgmr.msra.gmra.mxu1 %v878_v31 }
 0x241   :  { %1063 = vmatpush1.msra.mxu0 %v4660_v51  ;;  %1134 = vmatpush1.msra.mxu1 %v3519_v55 }
 0x242   :  { %1064 = vmatprep.subr.mxu0 %v4661_v52  ;;  %1135 = vmatprep.subr.mxu1 %v3523_v57 }
 0x243   :  { %1065 = vmatpush1.msra.mxu0 %v4662_v39  ;;  %1136 = vmatpush1.msra.mxu1 %v3527_v59 }
 0x244   :  { %1066 = vmatprep.subr.mxu0 %v4663_v62  ;;  %1137 = vmatprep.subr.mxu1 %v3531_v58 }
 0x245   :  { %1067 = vmatpush1.msra.mxu0 %v4664_v48  ;;  %1138 = vmatpush1.msra.mxu1 %v3534_v60 }
 0x246   :  { %1068 = vmatprep.subr.mxu0 %v4665_v41  ;;  %1139 = vmatprep.subr.mxu1 %v3538_v61 }
 0x247   :  { %1069 = vmatpush1.msra.mxu0 %v4666_v42  ;;  %1102 = vmatprep.mubr.f32.mxu0 %v4638_v53 }
 0x248   :  { %1140 = vmatpush1.msra.mxu1 %v3542_v63  ;;  %1173 = vmatprep.mubr.f32.mxu1 %v4638_v53 }
 0x249   :  { %2957 = vmatmul.mubr.msk.f32.vlgmr.msra.gmra.mxu0 %vm376_vm0, %v2956_v23  ;;  %2958 = vmatmul.mubr.msk.f32.vlgmr.msra.gmra.mxu1 %vm376_vm0, %v2956_v23 }
 0x24a   :  { %1215 = vmatprep.subr.mxu0 %v3298_v1  ;;  %1286 = vmatprep.subr.mxu1 %v3316_v8  ;;  %v4699_v1 = vld [vmem:[#allocation10_spill] sm:$0xff]  ;;  %v4706_v8 = vld [vmem:[#allocation21_spill] sm:$0xff] }
 0x24b   :  { %1216 = vmatpush1.msra.mxu0 %v3300_v2  ;;  %1287 = vmatpush1.msra.mxu1 %v3318_v9  ;;  %v4700_v2 = vld [vmem:[#allocation15_spill] sm:$0xff]  ;;  %v4707_v9 = vld [vmem:[#allocation14_spill] sm:$0xff] }
 0x24c   :  { %1217 = vmatprep.subr.mxu0 %v3302_v3  ;;  %1288 = vmatprep.subr.mxu1 %v3324_v11  ;;  %v4701_v3 = vld [vmem:[#allocation11_spill] sm:$0xff]  ;;  %v4709_v11 = vld [vmem:[#allocation16_spill] sm:$0xff] }
 0x24d   :  { %1218 = vmatpush1.msra.mxu0 %v3305_v4  ;;  %1289 = vmatpush1.msra.mxu1 %v3330_v13  ;;  %v4702_v4 = vld [vmem:[#allocation17_spill] sm:$0xff]  ;;  %v4711_v13 = vld [vmem:[#allocation18_spill] sm:$0xff] }
 0x24e   :  { %1219 = vmatprep.subr.mxu0 %v3308_v5  ;;  %1290 = vmatprep.subr.mxu1 %v3332_v14  ;;  %v4703_v5 = vld [vmem:[#allocation12_spill] sm:$0xff]  ;;  %v4712_v14 = vld [vmem:[#allocation27_spill] sm:$0xff] }
 0x24f   :  { %1220 = vmatpush1.msra.mxu0 %v3311_v6  ;;  %1291 = vmatpush1.msra.mxu1 %v3338_v16  ;;  %v4704_v6 = vld [vmem:[#allocation19_spill] sm:$0xff]  ;;  %v4714_v16 = vld [vmem:[#allocation29_spill] sm:$0xff] }
 0x250   :  { %1221 = vmatprep.subr.mxu0 %v3314_v7  ;;  %1292 = vmatprep.subr.mxu1 %v3344_v18  ;;  %v4705_v7 = vld [vmem:[#allocation13_spill] sm:$0xff]  ;;  %v4716_v18 = vld [vmem:[#allocation31_spill] sm:$0xff] }
 0x251   :  { %1222 = vmatpush1.msra.mxu0 %v3321_v10  ;;  %1293 = vmatpush1.msra.mxu1 %v3350_v20  ;;  %v4708_v10 = vld [vmem:[#allocation23_spill] sm:$0xff]  ;;  %v4718_v20 = vld [vmem:[#allocation33_spill] sm:$0xff] }
 0x252   :  { %1223 = vmatprep.subr.mxu0 %v3327_v12  ;;  %1294 = vmatprep.subr.mxu1 %v3356_v22  ;;  %v4710_v12 = vld [vmem:[#allocation25_spill] sm:$0xff]  ;;  %v4720_v22 = vld [vmem:[#allocation35_spill] sm:$0xff] }
 0x253   :  { %1224 = vmatpush1.msra.mxu0 %v3335_v15  ;;  %1295 = vmatpush1.msra.mxu1 %v3362_v24  ;;  %v4713_v15 = vld [vmem:[#allocation20_spill] sm:$0xff] }
 0x254   :  { %1225 = vmatprep.subr.mxu0 %v3341_v17  ;;  %1296 = vmatprep.subr.mxu1 %v3368_v26  ;;  %v4715_v17 = vld [vmem:[#allocation22_spill] sm:$0xff]  ;;  %v4721_v24 = vld [vmem:[#allocation28_spill] sm:$0xff]  ;;  %v4722_v26 = vld [vmem:[#allocation37_spill] sm:$0xff] }
 0x255   :  { %1226 = vmatpush1.msra.mxu0 %v3347_v19  ;;  %1297 = vmatpush1.msra.mxu1 %v3374_v28  ;;  %v4717_v19 = vld [vmem:[#allocation24_spill] sm:$0xff]  ;;  %v4723_v28 = vld [vmem:[#allocation30_spill] sm:$0xff] }
 0x256   :  { %1227 = vmatprep.subr.mxu0 %v3353_v21  ;;  %1298 = vmatprep.subr.mxu1 %v3380_v30  ;;  %v4719_v21 = vld [vmem:[#allocation26_spill] sm:$0xff]  ;;  %v4724_v30 = vld [vmem:[#allocation39_spill] sm:$0xff] }
 0x257   :  { %1228 = vmatpush1.msra.mxu0 %v4699_v1  ;;  %1299 = vmatpush1.msra.mxu1 %v4700_v2 }
 0x258   :  { %1229 = vmatprep.subr.mxu0 %v4701_v3  ;;  %1300 = vmatprep.subr.mxu1 %v4702_v4 }
 0x259   :  { %1230 = vmatpush1.msra.mxu0 %v4703_v5  ;;  %1301 = vmatpush1.msra.mxu1 %v4704_v6 }
 0x25a   :  { %1231 = vmatprep.subr.mxu0 %v4705_v7  ;;  %1302 = vmatprep.subr.mxu1 %v4706_v8 }
 0x25b   :  { %1232 = vmatpush1.msra.mxu0 %v4707_v9  ;;  %1303 = vmatpush1.msra.mxu1 %v4708_v10 }
 0x25c   :  { %1233 = vmatprep.subr.mxu0 %v4709_v11  ;;  %1304 = vmatprep.subr.mxu1 %v4710_v12 }
 0x25d   :  { %1234 = vmatpush1.msra.mxu0 %v4711_v13  ;;  %1305 = vmatpush1.msra.mxu1 %v4712_v14 }
 0x25e   :  { %1235 = vmatprep.subr.mxu0 %v4713_v15  ;;  %1306 = vmatprep.subr.mxu1 %v4714_v16 }
 0x25f   :  { %1236 = vmatpush1.msra.mxu0 %v4715_v17  ;;  %1307 = vmatpush1.msra.mxu1 %v4716_v18 }
 0x260   :  { %1237 = vmatprep.subr.mxu0 %v4717_v19  ;;  %1308 = vmatprep.subr.mxu1 %v4718_v20 }
 0x261   :  { %1238 = vmatpush1.msra.mxu0 %v4719_v21  ;;  %1309 = vmatpush1.msra.mxu1 %v4720_v22 }
 0x262   :  { %1239 = vmatprep.subr.mxu0 %v4721_v24  ;;  %1310 = vmatprep.subr.mxu1 %v4722_v26 }
 0x263   :  { %1240 = vmatpush1.msra.mxu0 %v4723_v28  ;;  %1311 = vmatpush1.msra.mxu1 %v4724_v30 }
 0x264   :  { %1241 = vmatprep.subr.mxu0 %v4725_v32  ;;  %1312 = vmatprep.subr.mxu1 %v4726_v43 }
 0x265   :  { %1242 = vmatpush1.msra.mxu0 %v4727_v0  ;;  %1313 = vmatpush1.msra.mxu1 %v4728_v37 }
 0x266   :  { %1243 = vmatprep.subr.mxu0 %v4729_v46  ;;  %1314 = vmatprep.subr.mxu1 %v4730_v44  ;;  %v3899_v46 = vld [vmem:[#allocation6 + $0x180] sm:$0xff]  ;;  %v3902_v44 = vld [vmem:[#allocation6 + $0x190] sm:$0xff] }
 0x267   :  { %1244 = vmatpush1.msra.mxu0 %v4731_v47  ;;  %1315 = vmatpush1.msra.mxu1 %v4732_v45  ;;  %v3905_v47 = vld [vmem:[#allocation6 + $0x168] sm:$0xff] }
 0x268   :  { %1245 = vmatprep.subr.mxu0 %v4733_v29  ;;  %1316 = vmatprep.subr.mxu1 %v4734_v38  ;;  %v3908_v29 = vld [vmem:[#allocation6 + $0x178] sm:$0xff] }
 0x269   :  { %1246 = vmatpush1.msra.mxu0 %v4735_v36  ;;  %1317 = vmatpush1.msra.mxu1 %v4736_v50  ;;  %v3911_v36 = vld [vmem:[#allocation6 + $0x160] sm:$0xff] }
 0x26a   :  { %1279 = vmatprep.mubr.f32.mxu0 %v4638_v53  ;;  %1350 = vmatprep.mubr.f32.mxu1 %v4638_v53 }
 0x26b   :  { %1391 = vmatprep.subr.mxu0 %v4737_v56  ;;  %1462 = vmatprep.subr.mxu1 %v4738_v34  ;;  %v3914_v56 = vld [vmem:[#allocation6 + $0x170] sm:$0xff] }
 0x300   :  { %v952_v33 = vpop.f32.mrf.mxu0  ;;  %v1023_v4 = vpop.f32.mrf.mxu1 }
 0x301   :  { %v1028_v31 = vadd.f32 %v952_v33, %v4739_v27  ;;  %v1030_v10 = vadd.f32 %v1023_v4, %v3624_v35  ;;  %v3917_v33 = vld [vmem:[#allocation6 + $0x148] sm:$0xff]  ;;  %v3938_v4 = vld [vmem:[#allocation6 + $0x130] sm:$0xff] }
 0x302   :  { %v954_v25 = vpop.f32.mrf.mxu0  ;;  %v1025_v8 = vpop.f32.mrf.mxu1  ;;  %4741 = vst [vmem:[#allocation47_spill] sm:$0xff] %v3938_v4 }
 0x303   :  { %v1029_v1 = vadd.f32 %v954_v25, %v3620_v54  ;;  %v1031_v13 = vadd.f32 %v1025_v8, %v3627_v40  ;;  %v3920_v25 = vld [vmem:[#allocation6 + $0x158] sm:$0xff]  ;;  %v3950_v8 = vld [vmem:[#allocation6 + $0x110] sm:$0xff] }
 0x304   :  { %4745 = vst [vmem:[#allocation54_spill] sm:$0xff] %v3950_v8 }
 0x309   :  { %v1104_v23 = vpop.f32.mrf.mxu0  ;;  %v1175_v9 = vpop.f32.mrf.mxu1 }
 0x30a   :  { %v1180_v2 = vadd.f32 %v1104_v23, %v1028_v31  ;;  %v1182_v11 = vadd.f32 %v1175_v9, %v1030_v10  ;;  %v3923_v31 = vld [vmem:[#allocation6 + $0x140] sm:$0xff]  ;;  %v3926_v23 = vld [vmem:[#allocation6 + $0x150] sm:$0xff]  ;;  %v3953_v9 = vld [vmem:[#allocation6 + $0xe8] sm:$0xff] }
 0x30b   :  { %v1106_v3 = vpop.f32.mrf.mxu0  ;;  %v1177_v12 = vpop.f32.mrf.mxu1  ;;  %4746 = vst [vmem:[#allocation56_spill] sm:$0xff] %v3953_v9  ;;  %v3956_v10 = vld [vmem:[#allocation6 + $0xf8] sm:$0xff] }
 0x30c   :  { %v2959_v5 = vmul.f32 -1.442695, %v1180_v2  ;;  %v1181_v6 = vadd.f32 %v1106_v3, %v1029_v1  ;;  %v2961_v14 = vmul.f32 -1.442695, %v1182_v11  ;;  %v1183_v16 = vadd.f32 %v1177_v12, %v1031_v13  ;;  %v3929_v1 = vld [vmem:[#allocation6 + $0x128] sm:$0xff]  ;;  %v3932_v2 = vld [vmem:[#allocation6 + $0x138] sm:$0xff] }
 0x30d   :  { %v3935_v3 = vld [vmem:[#allocation6 + $0x120] sm:$0xff]  ;;  %4747 = vst [vmem:[#allocation10_spill] sm:$0xff] %v3956_v10  ;;  %v3962_v12 = vld [vmem:[#allocation6 + $0xf0] sm:$0xff]  ;;  %v3965_v13 = vld [vmem:[#allocation6 + $0xc8] sm:$0xff] }
 0x30e   :  { %3035 = vpow2.f32 %v2959_v5  ;;  %v2960_v7 = vmul.f32 -1.442695, %v1181_v6  ;;  %4740 = vst [vmem:[#allocation45_spill] sm:$0xff] %v3935_v3  ;;  %v3941_v5 = vld [vmem:[#allocation6 + $0x108] sm:$0xff]  ;;  %v3944_v6 = vld [vmem:[#allocation6 + $0x118] sm:$0xff]  ;;  %v3959_v11 = vld [vmem:[#allocation6 + $0xe0] sm:$0xff] }
 0x30f   :  { %4742 = vst [vmem:[#allocation48_spill] sm:$0xff] %v3941_v5  ;;  %4743 = vst [vmem:[#allocation50_spill] sm:$0xff] %v3944_v6 }
 0x310   :  { %3037 = vpow2.f32 %v2960_v7  ;;  %v3947_v7 = vld [vmem:[#allocation6 + $0x100] sm:$0xff]  ;;  %4748 = vst [vmem:[#allocation15_spill] sm:$0xff] %v3959_v11  ;;  %4749 = vst [vmem:[#allocation11_spill] sm:$0xff] %v3962_v12 }
 0x311   :  { %3039 = vpow2.f32 %v2961_v14  ;;  %4744 = vst [vmem:[#allocation52_spill] sm:$0xff] %v3947_v7  ;;  %4750 = vst [vmem:[#allocation17_spill] sm:$0xff] %v3965_v13  ;;  %v3968_v14 = vld [vmem:[#allocation6 + $0xd8] sm:$0xff] }
 0x312   :  { %4751 = vst [vmem:[#allocation12_spill] sm:$0xff] %v3968_v14 }
 0x31b   :  { %v3036_v15 = vpop.eup %3035 }
 0x31c   :  { %v1193_v17 = vadd.f32 1.0, %v3036_v15  ;;  %v3971_v15 = vld [vmem:[#allocation6 + $0xc0] sm:$0xff] }
 0x31d   :  { %v3038_v18 = vpop.eup %3037  ;;  %4752 = vst [vmem:[#allocation19_spill] sm:$0xff] %v3971_v15 }
 0x31e   :  { %3041 = vrcp.f32 %v1193_v17  ;;  %v1194_v19 = vadd.f32 1.0, %v3038_v18  ;;  %v3040_v20 = vpop.eup %3039  ;;  %v3977_v17 = vld [vmem:[#allocation6 + $0xa8] sm:$0xff]  ;;  %v3980_v18 = vld [vmem:[#allocation6 + $0xb8] sm:$0xff] }
 0x31f   :  { %3043 = vtanh.f32 %v1183_v16  ;;  %v1195_v26 = vadd.f32 1.0, %v3040_v20  ;;  %v3974_v16 = vld [vmem:[#allocation6 + $0xd0] sm:$0xff]  ;;  %4754 = vst [vmem:[#allocation21_spill] sm:$0xff] %v3977_v17  ;;  %4755 = vst [vmem:[#allocation14_spill] sm:$0xff] %v3980_v18 }
 0x320   :  { %3045 = vrcp.f32 %v1194_v19  ;;  %4753 = vst [vmem:[#allocation13_spill] sm:$0xff] %v3974_v16  ;;  %v3983_v19 = vld [vmem:[#allocation6 + $0xa0] sm:$0xff]  ;;  %v3986_v20 = vld [vmem:[#allocation6 + $0xb0] sm:$0xff] }
 0x321   :  { %3047 = vrcp.f32 %v1195_v26  ;;  %4756 = vst [vmem:[#allocation23_spill] sm:$0xff] %v3983_v19  ;;  %4757 = vst [vmem:[#allocation16_spill] sm:$0xff] %v3986_v20  ;;  %v3998_v26 = vld [vmem:[#allocation6 + $0x90] sm:$0xff] }
 0x322   :  { %4761 = vst [vmem:[#allocation20_spill] sm:$0xff] %v3998_v26 }
 0x32b   :  { %v3042_v21 = vpop.eup %3041 }
 0x32c   :  { %v3044_v22 = vpop.eup %3043 }
 0x32d   :  { %v3046_v24 = vpop.eup %3045  ;;  %v1204_v30 = vmul.f32 %v3044_v22, %v3042_v21  ;;  %v3989_v21 = vld [vmem:[#allocation6 + $0x88] sm:$0xff]  ;;  %v3992_v22 = vld [vmem:[#allocation6 + $0x98] sm:$0xff] }
 0x32e   :  { %v1203_v28 = vmul.f32 %v3046_v24, %v3730_v49  ;;  %v3048_v43 = vpop.eup %3047  ;;  %v3896_v49 = vld [vmem:[#allocation6 + $0x198] sm:$0xff]  ;;  %4758 = vst [vmem:[#allocation25_spill] sm:$0xff] %v3989_v21  ;;  %4759 = vst [vmem:[#allocation18_spill] sm:$0xff] %v3992_v22  ;;  %v3995_v24 = vld [vmem:[#allocation6 + $0x80] sm:$0xff] }
 0x32f   :  { %4760 = vst [vmem:[#allocation27_spill] sm:$0xff] %v3995_v24 }
 0x330   :  { %v3830_v32 = vadd.f32 %v1204_v30, %v1203_v28  ;;  %v4001_v28 = vld [vmem:[#allocation6 + $0x68] sm:$0xff]  ;;  %v4004_v30 = vld [vmem:[#allocation6 + $0x78] sm:$0xff] }
 0x331   :  { %4762 = vst [vmem:[#allocation29_spill] sm:$0xff] %v4001_v28  ;;  %4763 = vst [vmem:[#allocation22_spill] sm:$0xff] %v4004_v30 }
 0x332   :  { %3049 = vtanh.f32 %v3830_v32 }
 0x33f   :  { %v3050_v0 = vpop.eup %3049 }
 0x340   :  { %v1207_v37 = vmul.f32 %v3050_v0, %v3048_v43  ;;  %v4007_v43 = vld [vmem:[#allocation6 + $0x60] sm:$0xff]  ;;  %v4010_v0 = vld [vmem:[#allocation6 + $0x70] sm:$0xff] }
 0x341   :  { %4764 = vst [vmem:[#allocation31_spill] sm:$0xff] %v4007_v43  ;;  %4765 = vst [vmem:[#allocation24_spill] sm:$0xff] %v4010_v0 }
 0x342   :  { %2962 = vst [vmem:[%s4428_s4 + $0x10] sm:$0xff] %v1207_v37  ;;  %1280 = vmatmul.mubr.f32.vlgmr.msra.gmra.mxu0 %v1207_v37  ;;  %1351 = vmatmul.mubr.f32.vlgmr.msra.gmra.mxu1 %v1207_v37  ;;  %v4013_v37 = vld [vmem:[#allocation6 + $0x48] sm:$0xff] }
 0x343   :  { %1392 = vmatpush1.msra.mxu0 %v4660_v51  ;;  %1463 = vmatpush1.msra.mxu1 %v3519_v55  ;;  %v2963_v55 = vld [vmem:[%s4424_s0 + $0x18] sm:$0xff]  ;;  %v3875_v51 = vld [vmem:[#allocation6 + $0x1c0] sm:$0xff]  ;;  %4766 = vst [vmem:[#allocation33_spill] sm:$0xff] %v4013_v37 }
 0x344   :  { %1393 = vmatprep.subr.mxu0 %v4661_v52  ;;  %1464 = vmatprep.subr.mxu1 %v3523_v57  ;;  %v3857_v57 = vld [vmem:[#allocation6 + $0x1e8] sm:$0xff]  ;;  %v3878_v52 = vld [vmem:[#allocation6 + $0x1d0] sm:$0xff] }
 0x345   :  { %1394 = vmatpush1.msra.mxu0 %v4662_v39  ;;  %1465 = vmatpush1.msra.mxu1 %v3527_v59  ;;  %v3863_v59 = vld [vmem:[#allocation6 + $0x1e0] sm:$0xff]  ;;  %v3881_v39 = vld [vmem:[#allocation6 + $0x1a8] sm:$0xff] }
 0x346   :  { %1395 = vmatprep.subr.mxu0 %v4663_v62  ;;  %1466 = vmatprep.subr.mxu1 %v3531_v58  ;;  %v3860_v58 = vld [vmem:[#allocation6 + $0x1f8] sm:$0xff] }
 0x347   :  { %1396 = vmatpush1.msra.mxu0 %v4664_v48  ;;  %1467 = vmatpush1.msra.mxu1 %v3534_v60  ;;  %v3866_v60 = vld [vmem:[#allocation6 + $0x1f0] sm:$0xff]  ;;  %v3884_v62 = vld [vmem:[#allocation6 + $0x1b8] sm:$0xff]  ;;  %v3887_v48 = vld [vmem:[#allocation6 + $0x1a0] sm:$0xff] }
 0x348   :  { %1397 = vmatprep.subr.mxu0 %v4665_v41  ;;  %1468 = vmatprep.subr.mxu1 %v3538_v61  ;;  %v3869_v61 = vld [vmem:[#allocation6 + $0x1c8] sm:$0xff]  ;;  %v3890_v41 = vld [vmem:[#allocation6 + $0x1b0] sm:$0xff] }
 0x349   :  { %1398 = vmatpush1.msra.mxu0 %v4666_v42  ;;  %1431 = vmatprep.mubr.f32.mxu0 %v4638_v53  ;;  %v3893_v42 = vld [vmem:[#allocation6 + $0x188] sm:$0xff] }
 0x34a   :  { %1469 = vmatpush1.msra.mxu1 %v3542_v63  ;;  %1502 = vmatprep.mubr.f32.mxu1 %v4638_v53  ;;  %v3872_v63 = vld [vmem:[#allocation6 + $0x1d8] sm:$0xff] }
 0x34b   :  { %2964 = vmatmul.mubr.msk.f32.vlgmr.msra.gmra.mxu0 %vm376_vm0, %v2963_v55  ;;  %2965 = vmatmul.mubr.msk.f32.vlgmr.msra.gmra.mxu1 %vm376_vm0, %v2963_v55  ;;  %v4016_v55 = vld [vmem:[#allocation6 + $0x58] sm:$0xff] }
 0x34c   :  { %1544 = vmatprep.subr.mxu0 %v3857_v57  ;;  %1615 = vmatprep.subr.mxu1 %v3860_v58  ;;  %4767 = vst [vmem:[#allocation26_spill] sm:$0xff] %v4016_v55 }
 0x34d   :  { %1545 = vmatpush1.msra.mxu0 %v3863_v59  ;;  %1616 = vmatpush1.msra.mxu1 %v3866_v60 }
 0x34e   :  { %1546 = vmatprep.subr.mxu0 %v3869_v61  ;;  %1617 = vmatprep.subr.mxu1 %v3872_v63 }
 0x34f   :  { %1547 = vmatpush1.msra.mxu0 %v3875_v51  ;;  %1618 = vmatpush1.msra.mxu1 %v3878_v52 }
 0x350   :  { %1548 = vmatprep.subr.mxu0 %v3881_v39  ;;  %1619 = vmatprep.subr.mxu1 %v3884_v62 }
 0x351   :  { %1549 = vmatpush1.msra.mxu0 %v3887_v48  ;;  %1620 = vmatpush1.msra.mxu1 %v3890_v41 }
 0x352   :  { %1550 = vmatprep.subr.mxu0 %v3893_v42  ;;  %1621 = vmatprep.subr.mxu1 %v3896_v49 }
 0x353   :  { %1551 = vmatpush1.msra.mxu0 %v3899_v46  ;;  %1622 = vmatpush1.msra.mxu1 %v3902_v44 }
 0x354   :  { %1552 = vmatprep.subr.mxu0 %v3905_v47  ;;  %1623 = vmatprep.subr.mxu1 %v3908_v29 }
 0x355   :  { %1553 = vmatpush1.msra.mxu0 %v3911_v36  ;;  %1624 = vmatpush1.msra.mxu1 %v3914_v56 }
 0x356   :  { %1554 = vmatprep.subr.mxu0 %v3917_v33  ;;  %1625 = vmatprep.subr.mxu1 %v3920_v25 }
 0x357   :  { %1555 = vmatpush1.msra.mxu0 %v3923_v31  ;;  %1626 = vmatpush1.msra.mxu1 %v3926_v23 }
 0x358   :  { %1556 = vmatprep.subr.mxu0 %v3929_v1  ;;  %1627 = vmatprep.subr.mxu1 %v3932_v2 }
 0x359   :  { %1557 = vmatpush1.msra.mxu0 %v3935_v3  ;;  %1628 = vmatpush1.msra.mxu1 %v3938_v4 }
 0x35a   :  { %1558 = vmatprep.subr.mxu0 %v3941_v5  ;;  %1629 = vmatprep.subr.mxu1 %v3944_v6 }
 0x35b   :  { %1559 = vmatpush1.msra.mxu0 %v3947_v7  ;;  %1630 = vmatpush1.msra.mxu1 %v3950_v8 }
 0x35c   :  { %1560 = vmatprep.subr.mxu0 %v3953_v9  ;;  %1631 = vmatprep.subr.mxu1 %v3956_v10 }
 0x35d   :  { %1561 = vmatpush1.msra.mxu0 %v3959_v11  ;;  %1632 = vmatpush1.msra.mxu1 %v3962_v12 }
 0x35e   :  { %1562 = vmatprep.subr.mxu0 %v3965_v13  ;;  %1633 = vmatprep.subr.mxu1 %v3968_v14 }
 0x35f   :  { %1563 = vmatpush1.msra.mxu0 %v3971_v15  ;;  %1634 = vmatpush1.msra.mxu1 %v3974_v16 }
 0x360   :  { %1564 = vmatprep.subr.mxu0 %v3977_v17  ;;  %1635 = vmatprep.subr.mxu1 %v3980_v18 }
 0x361   :  { %1565 = vmatpush1.msra.mxu0 %v3983_v19  ;;  %1636 = vmatpush1.msra.mxu1 %v3986_v20 }
 0x362   :  { %1566 = vmatprep.subr.mxu0 %v3989_v21  ;;  %1637 = vmatprep.subr.mxu1 %v3992_v22 }
 0x363   :  { %1567 = vmatpush1.msra.mxu0 %v3995_v24  ;;  %1638 = vmatpush1.msra.mxu1 %v3998_v26 }
 0x364   :  { %1568 = vmatprep.subr.mxu0 %v4001_v28  ;;  %1639 = vmatprep.subr.mxu1 %v4004_v30  ;;  %v4019_v28 = vld [vmem:[#allocation6 + $0x40] sm:$0xff]  ;;  %v4022_v30 = vld [vmem:[#allocation6 + $0x50] sm:$0xff] }
 0x365   :  { %1569 = vmatpush1.msra.mxu0 %v4007_v43  ;;  %1640 = vmatpush1.msra.mxu1 %v4010_v0  ;;  %4768 = vst [vmem:[#allocation35_spill] sm:$0xff] %v4019_v28  ;;  %4769 = vst [vmem:[#allocation28_spill] sm:$0xff] %v4022_v30  ;;  %v4025_v43 = vld [vmem:[#allocation6 + $0x28] sm:$0xff]  ;;  %v4028_v0 = vld [vmem:[#allocation6 + $0x38] sm:$0xff] }
 0x366   :  { %1570 = vmatprep.subr.mxu0 %v4013_v37  ;;  %1641 = vmatprep.subr.mxu1 %v4016_v55  ;;  %4770 = vst [vmem:[#allocation37_spill] sm:$0xff] %v4025_v43  ;;  %4771 = vst [vmem:[#allocation30_spill] sm:$0xff] %v4028_v0  ;;  %v4031_v37 = vld [vmem:[#allocation6 + $0x20] sm:$0xff]  ;;  %v4035_v55 = vld [vmem:[#allocation6 + $0x8] sm:$0xff] }
 0x367   :  { %1571 = vmatpush1.msra.mxu0 %v4019_v28  ;;  %1642 = vmatpush1.msra.mxu1 %v4022_v30  ;;  %4772 = vst [vmem:[#allocation39_spill] sm:$0xff] %v4031_v37  ;;  %4773 = vst [vmem:[#allocation32_spill] sm:$0xff] %v4035_v55  ;;  %v4039_v30 = vld [vmem:[#allocation6] sm:$0xff] }
 0x368   :  { %1572 = vmatprep.subr.mxu0 %v4025_v43  ;;  %1643 = vmatprep.subr.mxu1 %v4028_v0  ;;  %4774 = vst [vmem:[#allocation41_spill] sm:$0xff] %v4039_v30  ;;  %v4045_v0 = vld [vmem:[#allocation4 + $0x68] sm:$0xff] }
 0x369   :  { %1573 = vmatpush1.msra.mxu0 %v4031_v37  ;;  %1644 = vmatpush1.msra.mxu1 %v4732_v45  ;;  %4775 = vst [vmem:[#allocation34_spill] sm:$0xff] %v4045_v0 }
 0x36a   :  { %1574 = vmatprep.subr.mxu0 %v4035_v55  ;;  %1645 = vmatprep.subr.mxu1 %v4734_v38 }
 0x36b   :  { %1575 = vmatpush1.msra.mxu0 %v4039_v30  ;;  %1646 = vmatpush1.msra.mxu1 %v4736_v50 }
 0x36c   :  { %1608 = vmatprep.mubr.f32.mxu0 %v4638_v53  ;;  %1679 = vmatprep.mubr.f32.mxu1 %v4638_v53 }
 0x36d   :  { %1720 = vmatprep.subr.mxu0 %v4045_v0  ;;  %1791 = vmatprep.subr.mxu1 %v4738_v34 }
 0x402   :  { %v1281_v45 = vpop.f32.mrf.mxu0  ;;  %v1352_v50 = vpop.f32.mrf.mxu1 }
 0x403   :  { %v1357_v38 = vadd.f32 %v1281_v45, %v4739_v27  ;;  %v1359_v0 = vadd.f32 %v1352_v50, %v3624_v35  ;;  %v4069_v50 = vld [vmem:[#allocation4 + $0x58] sm:$0xff] }
 0x404   :  { %v1283_v55 = vpop.f32.mrf.mxu0  ;;  %v1354_v21 = vpop.f32.mrf.mxu1 }
 0x405   :  { %v1358_v43 = vadd.f32 %v1283_v55, %v3620_v54  ;;  %v1360_v18 = vadd.f32 %v1354_v21, %v3627_v40  ;;  %v4066_v21 = vld [vmem:[#allocation4 + $0x48] sm:$0xff] }
 0x40b   :  { %v1433_v37 = vpop.f32.mrf.mxu0  ;;  %v1504_v20 = vpop.f32.mrf.mxu1 }
 0x40c   :  { %v1509_v30 = vadd.f32 %v1433_v37, %v1357_v38  ;;  %v1511_v34 = vadd.f32 %v1504_v20, %v1359_v0 }
 0x40d   :  { %v1435_v28 = vpop.f32.mrf.mxu0  ;;  %v1506_v19 = vpop.f32.mrf.mxu1 }
 0x40e   :  { %v2966_v26 = vmul.f32 -1.442695, %v1509_v30  ;;  %v1510_v24 = vadd.f32 %v1435_v28, %v1358_v43  ;;  %v2968_v45 = vmul.f32 -1.442695, %v1511_v34  ;;  %v1512_v17 = vadd.f32 %v1506_v19, %v1360_v18  ;;  %v4072_v34 = vld [vmem:[#allocation4 + $0x40] sm:$0xff] }
 0x410   :  { %3051 = vpow2.f32 %v2966_v26  ;;  %v2967_v22 = vmul.f32 -1.442695, %v1510_v24 }
 0x412   :  { %3053 = vpow2.f32 %v2967_v22 }
 0x413   :  { %3055 = vpow2.f32 %v2968_v45  ;;  %v4075_v45 = vld [vmem:[#allocation4 + $0x50] sm:$0xff] }
 0x41d   :  { %v3052_v27 = vpop.eup %3051 }
 0x41e   :  { %v1522_v55 = vadd.f32 1.0, %v3052_v27 }
 0x41f   :  { %v3054_v37 = vpop.eup %3053 }
 0x420   :  { %3057 = vrcp.f32 %v1522_v55  ;;  %v1523_v30 = vadd.f32 1.0, %v3054_v37  ;;  %v3056_v24 = vpop.eup %3055  ;;  %v4078_v55 = vld [vmem:[#allocation4 + $0x28] sm:$0xff]  ;;  %v4081_v37 = vld [vmem:[#allocation4 + $0x38] sm:$0xff] }
 0x421   :  { %3059 = vtanh.f32 %v1512_v17  ;;  %v1524_v43 = vadd.f32 1.0, %v3056_v24  ;;  %v4060_v17 = vld [vmem:[#allocation4 + $0x60] sm:$0xff]  ;;  %v4087_v24 = vld [vmem:[#allocation4 + $0x30] sm:$0xff] }
 0x422   :  { %3061 = vrcp.f32 %v1523_v30  ;;  %v4084_v30 = vld [vmem:[#allocation4 + $0x20] sm:$0xff] }
 0x423   :  { %3063 = vrcp.f32 %v1524_v43  ;;  %v4099_v43 = vld [vmem:[#allocation4] sm:$0xff] }
 0x42d   :  { %v3058_v26 = vpop.eup %3057 }
 0x42e   :  { %v3060_v22 = vpop.eup %3059 }
 0x42f   :  { %v3062_v28 = vpop.eup %3061  ;;  %v1533_v0 = vmul.f32 %v3060_v22, %v3058_v26  ;;  %v4090_v26 = vld [vmem:[#allocation4 + $0x8] sm:$0xff]  ;;  %v4093_v22 = vld [vmem:[#allocation4 + $0x18] sm:$0xff] }
 0x430   :  { %v1532_v20 = vmul.f32 %v3062_v28, %v3830_v32  ;;  %v3064_v27 = vpop.eup %3063  ;;  %v4063_v32 = vld [vmem:[#allocation4 + $0x70] sm:$0xff]  ;;  %v2970_v28 = vld [vmem:[%s4424_s0 + $0x20] sm:$0xff] }
 0x432   :  { %v4054_v38 = vadd.f32 %v1533_v0, %v1532_v20  ;;  %v4103_v20 = vld [vmem:[#allocation4 + $0x10] sm:$0xff]  ;;  %v4776_v0 = vld [vmem:[#allocation21_spill] sm:$0xff] }
 0x434   :  { %3065 = vtanh.f32 %v4054_v38 }
 0x441   :  { %v3066_v18 = vpop.eup %3065 }
 0x442   :  { %v1536_v19 = vmul.f32 %v3066_v18, %v3064_v27  ;;  %v4777_v27 = vld [vmem:[#allocation14_spill] sm:$0xff]  ;;  %v4778_v18 = vld [vmem:[#allocation23_spill] sm:$0xff] }
 0x444   :  { %2969 = vst [vmem:[%s4428_s4 + $0x18] sm:$0xff] %v1536_v19  ;;  %1609 = vmatmul.mubr.f32.vlgmr.msra.gmra.mxu0 %v1536_v19  ;;  %1680 = vmatmul.mubr.f32.vlgmr.msra.gmra.mxu1 %v1536_v19  ;;  %v4779_v19 = vld [vmem:[#allocation16_spill] sm:$0xff] }
 0x445   :  { %1721 = vmatpush1.msra.mxu0 %v4060_v17  ;;  %1792 = vmatpush1.msra.mxu1 %v4063_v32 }
 0x446   :  { %1722 = vmatprep.subr.mxu0 %v4066_v21  ;;  %1793 = vmatprep.subr.mxu1 %v4069_v50 }
 0x447   :  { %1723 = vmatpush1.msra.mxu0 %v4072_v34  ;;  %1794 = vmatpush1.msra.mxu1 %v4075_v45 }
 0x448   :  { %1724 = vmatprep.subr.mxu0 %v4078_v55  ;;  %1795 = vmatprep.subr.mxu1 %v4081_v37 }
 0x449   :  { %1725 = vmatpush1.msra.mxu0 %v4084_v30  ;;  %1796 = vmatpush1.msra.mxu1 %v4087_v24 }
 0x44a   :  { %1726 = vmatprep.subr.mxu0 %v4090_v26  ;;  %1797 = vmatprep.subr.mxu1 %v4093_v22 }
 0x44b   :  { %1727 = vmatpush1.msra.mxu0 %v4099_v43  ;;  %1760 = vmatprep.mubr.f32.mxu0 %v4638_v53 }
 0x44c   :  { %1798 = vmatpush1.msra.mxu1 %v4103_v20  ;;  %1831 = vmatprep.mubr.f32.mxu1 %v4638_v53 }
 0x44d   :  { %2971 = vmatmul.mubr.msk.f32.vlgmr.msra.gmra.mxu0 %vm376_vm0, %v2970_v28  ;;  %2972 = vmatmul.mubr.msk.f32.vlgmr.msra.gmra.mxu1 %vm376_vm0, %v2970_v28  ;;  %v4780_v28 = vld [vmem:[#allocation25_spill] sm:$0xff] }
 0x44e   :  { %1873 = vmatprep.subr.mxu0 %v3857_v57  ;;  %1944 = vmatprep.subr.mxu1 %v3860_v58 }
 0x44f   :  { %1874 = vmatpush1.msra.mxu0 %v3863_v59  ;;  %1945 = vmatpush1.msra.mxu1 %v3866_v60 }
 0x450   :  { %1875 = vmatprep.subr.mxu0 %v3869_v61  ;;  %1946 = vmatprep.subr.mxu1 %v3872_v63 }
 0x451   :  { %1876 = vmatpush1.msra.mxu0 %v3875_v51  ;;  %1947 = vmatpush1.msra.mxu1 %v3878_v52 }
 0x452   :  { %1877 = vmatprep.subr.mxu0 %v3881_v39  ;;  %1948 = vmatprep.subr.mxu1 %v3884_v62 }
 0x453   :  { %1878 = vmatpush1.msra.mxu0 %v3887_v48  ;;  %1949 = vmatpush1.msra.mxu1 %v3890_v41 }
 0x454   :  { %1879 = vmatprep.subr.mxu0 %v3893_v42  ;;  %1950 = vmatprep.subr.mxu1 %v3896_v49 }
 0x455   :  { %1880 = vmatpush1.msra.mxu0 %v3899_v46  ;;  %1951 = vmatpush1.msra.mxu1 %v3902_v44 }
 0x456   :  { %1881 = vmatprep.subr.mxu0 %v3905_v47  ;;  %1952 = vmatprep.subr.mxu1 %v3908_v29 }
 0x457   :  { %1882 = vmatpush1.msra.mxu0 %v3911_v36  ;;  %1953 = vmatpush1.msra.mxu1 %v3914_v56 }
 0x458   :  { %1883 = vmatprep.subr.mxu0 %v3917_v33  ;;  %1954 = vmatprep.subr.mxu1 %v3920_v25 }
 0x459   :  { %1884 = vmatpush1.msra.mxu0 %v3923_v31  ;;  %1955 = vmatpush1.msra.mxu1 %v3926_v23 }
 0x45a   :  { %1885 = vmatprep.subr.mxu0 %v3929_v1  ;;  %1956 = vmatprep.subr.mxu1 %v3932_v2 }
 0x45b   :  { %1886 = vmatpush1.msra.mxu0 %v3935_v3  ;;  %1957 = vmatpush1.msra.mxu1 %v3938_v4 }
 0x45c   :  { %1887 = vmatprep.subr.mxu0 %v3941_v5  ;;  %1958 = vmatprep.subr.mxu1 %v3944_v6 }
 0x45d   :  { %1888 = vmatpush1.msra.mxu0 %v3947_v7  ;;  %1959 = vmatpush1.msra.mxu1 %v3950_v8 }
 0x45e   :  { %1889 = vmatprep.subr.mxu0 %v3953_v9  ;;  %1960 = vmatprep.subr.mxu1 %v3956_v10 }
 0x45f   :  { %1890 = vmatpush1.msra.mxu0 %v3959_v11  ;;  %1961 = vmatpush1.msra.mxu1 %v3962_v12  ;;  %v4781_v11 = vld [vmem:[#allocation18_spill] sm:$0xff]  ;;  %v4782_v12 = vld [vmem:[#allocation27_spill] sm:$0xff] }
 0x460   :  { %1891 = vmatprep.subr.mxu0 %v3965_v13  ;;  %1962 = vmatprep.subr.mxu1 %v3968_v14  ;;  %v4783_v13 = vld [vmem:[#allocation20_spill] sm:$0xff]  ;;  %v4784_v14 = vld [vmem:[#allocation29_spill] sm:$0xff] }
 0x461   :  { %1892 = vmatpush1.msra.mxu0 %v3971_v15  ;;  %1963 = vmatpush1.msra.mxu1 %v3974_v16  ;;  %v4785_v15 = vld [vmem:[#allocation22_spill] sm:$0xff]  ;;  %v4786_v16 = vld [vmem:[#allocation31_spill] sm:$0xff] }
 0x462   :  { %1893 = vmatprep.subr.mxu0 %v4776_v0  ;;  %1964 = vmatprep.subr.mxu1 %v4777_v27  ;;  %v4787_v0 = vld [vmem:[#allocation24_spill] sm:$0xff]  ;;  %v4788_v27 = vld [vmem:[#allocation33_spill] sm:$0xff] }
 0x463   :  { %1894 = vmatpush1.msra.mxu0 %v4778_v18  ;;  %1965 = vmatpush1.msra.mxu1 %v4779_v19  ;;  %v4789_v18 = vld [vmem:[#allocation26_spill] sm:$0xff]  ;;  %v4790_v19 = vld [vmem:[#allocation35_spill] sm:$0xff] }
 0x464   :  { %1895 = vmatprep.subr.mxu0 %v4780_v28  ;;  %1966 = vmatprep.subr.mxu1 %v4781_v11  ;;  %v4791_v28 = vld [vmem:[#allocation28_spill] sm:$0xff]  ;;  %v4792_v11 = vld [vmem:[#allocation37_spill] sm:$0xff] }
 0x465   :  { %1896 = vmatpush1.msra.mxu0 %v4782_v12  ;;  %1967 = vmatpush1.msra.mxu1 %v4783_v13  ;;  %v4793_v12 = vld [vmem:[#allocation30_spill] sm:$0xff]  ;;  %v4794_v13 = vld [vmem:[#allocation39_spill] sm:$0xff] }
 0x466   :  { %1897 = vmatprep.subr.mxu0 %v4784_v14  ;;  %1968 = vmatprep.subr.mxu1 %v4785_v15  ;;  %v4168_v14 = vld [vmem:[#allocation6 + $0x30] sm:$0xff] }
 0x467   :  { %1898 = vmatpush1.msra.mxu0 %v4786_v16  ;;  %1969 = vmatpush1.msra.mxu1 %v4787_v0  ;;  %4795 = vst [vmem:[#allocation43_spill] sm:$0xff] %v4168_v14  ;;  %v4796_v16 = vld [vmem:[#allocation32_spill] sm:$0xff]  ;;  %v4172_v0 = vld [vmem:[#allocation6 + $0x18] sm:$0xff] }
 0x468   :  { %1899 = vmatprep.subr.mxu0 %v4788_v27  ;;  %1970 = vmatprep.subr.mxu1 %v4789_v18  ;;  %4797 = vst [vmem:[#allocation36_spill] sm:$0xff] %v4172_v0  ;;  %v4798_v18 = vld [vmem:[#allocation41_spill] sm:$0xff] }
 0x469   :  { %1900 = vmatpush1.msra.mxu0 %v4790_v19  ;;  %1971 = vmatpush1.msra.mxu1 %v4791_v28  ;;  %v4176_v19 = vld [vmem:[#allocation6 + $0x10] sm:$0xff] }
 0x46a   :  { %1901 = vmatprep.subr.mxu0 %v4792_v11  ;;  %1972 = vmatprep.subr.mxu1 %v4793_v12  ;;  %4799 = vst [vmem:[#allocation46_spill] sm:$0xff] %v4176_v19  ;;  %v4182_v12 = vld [vmem:[#allocation4 + $0x78] sm:$0xff] }
 0x46b   :  { %1902 = vmatpush1.msra.mxu0 %v4794_v13  ;;  %1973 = vmatpush1.msra.mxu1 %v4168_v14  ;;  %v4800_v13 = vld [vmem:[#allocation34_spill] sm:$0xff]  ;;  %4801 = vst [vmem:[#allocation38_spill] sm:$0xff] %v4182_v12  ;;  %v4802_v11 = vld [vmem:[#allocation57_spill] sm:$0xff] }
 0x46c   :  { %1903 = vmatprep.subr.mxu0 %v4796_v16  ;;  %1974 = vmatprep.subr.mxu1 %v4172_v0 }
 0x46d   :  { %1904 = vmatpush1.msra.mxu0 %v4798_v18  ;;  %1975 = vmatpush1.msra.mxu1 %v4176_v19 }
 0x46e   :  { %1937 = vmatprep.mubr.f32.mxu0 %v4638_v53  ;;  %2008 = vmatprep.mubr.f32.mxu1 %v4638_v53 }
 0x46f   :  { %2049 = vmatprep.subr.mxu0 %v4800_v13  ;;  %2120 = vmatprep.subr.mxu1 %v4182_v12 }
 0x504   :  { %v1610_v16 = vpop.f32.mrf.mxu0  ;;  %v1681_v19 = vpop.f32.mrf.mxu1 }
 0x505   :  { %v1686_v0 = vadd.f32 %v1610_v16, %v4802_v11  ;;  %v1688_v6 = vadd.f32 %v1681_v19, %v3624_v35 }
 0x506   :  { %v1612_v14 = vpop.f32.mrf.mxu0  ;;  %v1683_v7 = vpop.f32.mrf.mxu1 }
 0x507   :  { %v1687_v18 = vadd.f32 %v1612_v14, %v3620_v54  ;;  %v1689_v4 = vadd.f32 %v1683_v7, %v3627_v40 }
 0x50d   :  { %v1762_v28 = vpop.f32.mrf.mxu0  ;;  %v1833_v13 = vpop.f32.mrf.mxu1 }
 0x50e   :  { %v1838_v27 = vadd.f32 %v1762_v28, %v1686_v0  ;;  %v1840_v12 = vadd.f32 %v1833_v13, %v1688_v6  ;;  %v4806_v28 = vld [vmem:[#allocation50_spill] sm:$0xff] }
 0x50f   :  { %v1764_v15 = vpop.f32.mrf.mxu0  ;;  %v1835_v5 = vpop.f32.mrf.mxu1 }
 0x510   :  { %v2973_v10 = vmul.f32 -1.442695, %v1838_v27  ;;  %v1839_v9 = vadd.f32 %v1764_v15, %v1687_v18  ;;  %v2975_v16 = vmul.f32 -1.442695, %v1840_v12  ;;  %v1841_v3 = vadd.f32 %v1835_v5, %v1689_v4  ;;  %v4804_v12 = vld [vmem:[#allocation47_spill] sm:$0xff] }
 0x512   :  { %3067 = vpow2.f32 %v2973_v10  ;;  %v2974_v8 = vmul.f32 -1.442695, %v1839_v9 }
 0x514   :  { %3069 = vpow2.f32 %v2974_v8 }
 0x515   :  { %3071 = vpow2.f32 %v2975_v16  ;;  %v4807_v16 = vld [vmem:[#allocation52_spill] sm:$0xff] }
 0x51f   :  { %v3068_v11 = vpop.eup %3067 }
 0x520   :  { %v1851_v14 = vadd.f32 1.0, %v3068_v11  ;;  %v4803_v11 = vld [vmem:[#allocation45_spill] sm:$0xff] }
 0x521   :  { %v3070_v0 = vpop.eup %3069 }
 0x522   :  { %3073 = vrcp.f32 %v1851_v14  ;;  %v1852_v27 = vadd.f32 1.0, %v3070_v0  ;;  %v3072_v9 = vpop.eup %3071  ;;  %v4808_v14 = vld [vmem:[#allocation54_spill] sm:$0xff]  ;;  %v4809_v0 = vld [vmem:[#allocation56_spill] sm:$0xff] }
 0x523   :  { %3075 = vtanh.f32 %v1841_v3  ;;  %v1853_v18 = vadd.f32 1.0, %v3072_v9  ;;  %v2977_v3 = vld [vmem:[%s4424_s0 + $0x28] sm:$0xff] }
 0x524   :  { %3077 = vrcp.f32 %v1852_v27  ;;  %v4810_v27 = vld [vmem:[#allocation10_spill] sm:$0xff]  ;;  %v4811_v9 = vld [vmem:[#allocation15_spill] sm:$0xff] }
 0x525   :  { %3079 = vrcp.f32 %v1853_v18  ;;  %v4815_v18 = vld [vmem:[#allocation19_spill] sm:$0xff] }
 0x52f   :  { %v3074_v10 = vpop.eup %3073 }
 0x530   :  { %v3076_v8 = vpop.eup %3075 }
 0x531   :  { %v3078_v15 = vpop.eup %3077  ;;  %v1862_v13 = vmul.f32 %v3076_v8, %v3074_v10  ;;  %v4812_v10 = vld [vmem:[#allocation11_spill] sm:$0xff]  ;;  %v4813_v8 = vld [vmem:[#allocation17_spill] sm:$0xff] }
 0x532   :  { %v1861_v6 = vmul.f32 %v3078_v15, %v4054_v38  ;;  %v3080_v4 = vpop.eup %3079  ;;  %v4805_v38 = vld [vmem:[#allocation48_spill] sm:$0xff] }
 0x533   :  { %v4814_v15 = vld [vmem:[#allocation12_spill] sm:$0xff] }
 0x534   :  { %v4190_v19 = vadd.f32 %v1862_v13, %v1861_v6  ;;  %v4816_v6 = vld [vmem:[#allocation13_spill] sm:$0xff] }
 0x535   :  { %v4817_v13 = vld [vmem:[#allocation21_spill] sm:$0xff] }
 0x536   :  { %3081 = vtanh.f32 %v4190_v19 }
 0x543   :  { %v3082_v5 = vpop.eup %3081 }
 0x544   :  { %v1865_v7 = vmul.f32 %v3082_v5, %v3080_v4  ;;  %v4818_v4 = vld [vmem:[#allocation14_spill] sm:$0xff]  ;;  %v4819_v5 = vld [vmem:[#allocation23_spill] sm:$0xff] }
 0x546   :  { %2976 = vst [vmem:[%s4428_s4 + $0x20] sm:$0xff] %v1865_v7  ;;  %1938 = vmatmul.mubr.f32.vlgmr.msra.gmra.mxu0 %v1865_v7  ;;  %2009 = vmatmul.mubr.f32.vlgmr.msra.gmra.mxu1 %v1865_v7  ;;  %v4820_v7 = vld [vmem:[#allocation16_spill] sm:$0xff] }
 0x547   :  { %2050 = vmatpush1.msra.mxu0 %v4060_v17  ;;  %2121 = vmatpush1.msra.mxu1 %v4063_v32 }
 0x548   :  { %2051 = vmatprep.subr.mxu0 %v4066_v21  ;;  %2122 = vmatprep.subr.mxu1 %v4069_v50 }
 0x549   :  { %2052 = vmatpush1.msra.mxu0 %v4072_v34  ;;  %2123 = vmatpush1.msra.mxu1 %v4075_v45 }
 0x54a   :  { %2053 = vmatprep.subr.mxu0 %v4078_v55  ;;  %2124 = vmatprep.subr.mxu1 %v4081_v37 }
 0x54b   :  { %2054 = vmatpush1.msra.mxu0 %v4084_v30  ;;  %2125 = vmatpush1.msra.mxu1 %v4087_v24 }
 0x54c   :  { %2055 = vmatprep.subr.mxu0 %v4090_v26  ;;  %2126 = vmatprep.subr.mxu1 %v4093_v22 }
 0x54d   :  { %2056 = vmatpush1.msra.mxu0 %v4099_v43  ;;  %2089 = vmatprep.mubr.f32.mxu0 %v4638_v53 }
 0x54e   :  { %2127 = vmatpush1.msra.mxu1 %v4103_v20  ;;  %2160 = vmatprep.mubr.f32.mxu1 %v4638_v53 }
 0x54f   :  { %2978 = vmatmul.mubr.msk.f32.vlgmr.msra.gmra.mxu0 %vm376_vm0, %v2977_v3  ;;  %2979 = vmatmul.mubr.msk.f32.vlgmr.msra.gmra.mxu1 %vm376_vm0, %v2977_v3  ;;  %v4821_v3 = vld [vmem:[#allocation25_spill] sm:$0xff] }
 0x550   :  { %2202 = vmatprep.subr.mxu0 %v3857_v57  ;;  %2273 = vmatprep.subr.mxu1 %v3860_v58 }
 0x551   :  { %2203 = vmatpush1.msra.mxu0 %v3863_v59  ;;  %2274 = vmatpush1.msra.mxu1 %v3866_v60 }
 0x552   :  { %2204 = vmatprep.subr.mxu0 %v3869_v61  ;;  %2275 = vmatprep.subr.mxu1 %v3872_v63 }
 0x553   :  { %2205 = vmatpush1.msra.mxu0 %v3875_v51  ;;  %2276 = vmatpush1.msra.mxu1 %v3878_v52 }
 0x554   :  { %2206 = vmatprep.subr.mxu0 %v3881_v39  ;;  %2277 = vmatprep.subr.mxu1 %v3884_v62 }
 0x555   :  { %2207 = vmatpush1.msra.mxu0 %v3887_v48  ;;  %2278 = vmatpush1.msra.mxu1 %v3890_v41 }
 0x556   :  { %2208 = vmatprep.subr.mxu0 %v3893_v42  ;;  %2279 = vmatprep.subr.mxu1 %v3896_v49 }
 0x557   :  { %2209 = vmatpush1.msra.mxu0 %v3899_v46  ;;  %2280 = vmatpush1.msra.mxu1 %v3902_v44 }
 0x558   :  { %2210 = vmatprep.subr.mxu0 %v3905_v47  ;;  %2281 = vmatprep.subr.mxu1 %v3908_v29 }
 0x559   :  { %2211 = vmatpush1.msra.mxu0 %v3911_v36  ;;  %2282 = vmatpush1.msra.mxu1 %v3914_v56 }
 0x55a   :  { %2212 = vmatprep.subr.mxu0 %v3917_v33  ;;  %2283 = vmatprep.subr.mxu1 %v3920_v25 }
 0x55b   :  { %2213 = vmatpush1.msra.mxu0 %v3923_v31  ;;  %2284 = vmatpush1.msra.mxu1 %v3926_v23 }
 0x55c   :  { %2214 = vmatprep.subr.mxu0 %v3929_v1  ;;  %2285 = vmatprep.subr.mxu1 %v3932_v2 }
 0x55d   :  { %2215 = vmatpush1.msra.mxu0 %v4803_v11  ;;  %2286 = vmatpush1.msra.mxu1 %v4804_v12 }
 0x55e   :  { %2216 = vmatprep.subr.mxu0 %v4805_v38  ;;  %2287 = vmatprep.subr.mxu1 %v4806_v28 }
 0x55f   :  { %2217 = vmatpush1.msra.mxu0 %v4807_v16  ;;  %2288 = vmatpush1.msra.mxu1 %v4808_v14 }
 0x560   :  { %2218 = vmatprep.subr.mxu0 %v4809_v0  ;;  %2289 = vmatprep.subr.mxu1 %v4810_v27 }
 0x561   :  { %2219 = vmatpush1.msra.mxu0 %v4811_v9  ;;  %2290 = vmatpush1.msra.mxu1 %v4812_v10  ;;  %v4822_v9 = vld [vmem:[#allocation18_spill] sm:$0xff]  ;;  %v4823_v10 = vld [vmem:[#allocation27_spill] sm:$0xff] }
 0x562   :  { %2220 = vmatprep.subr.mxu0 %v4813_v8  ;;  %2291 = vmatprep.subr.mxu1 %v4814_v15  ;;  %v4824_v8 = vld [vmem:[#allocation20_spill] sm:$0xff]  ;;  %v4825_v15 = vld [vmem:[#allocation29_spill] sm:$0xff] }
 0x563   :  { %2221 = vmatpush1.msra.mxu0 %v4815_v18  ;;  %2292 = vmatpush1.msra.mxu1 %v4816_v6  ;;  %v4826_v18 = vld [vmem:[#allocation22_spill] sm:$0xff]  ;;  %v4827_v6 = vld [vmem:[#allocation31_spill] sm:$0xff] }
 0x564   :  { %2222 = vmatprep.subr.mxu0 %v4817_v13  ;;  %2293 = vmatprep.subr.mxu1 %v4818_v4  ;;  %v4828_v13 = vld [vmem:[#allocation24_spill] sm:$0xff]  ;;  %v4829_v4 = vld [vmem:[#allocation33_spill] sm:$0xff] }
 0x565   :  { %2223 = vmatpush1.msra.mxu0 %v4819_v5  ;;  %2294 = vmatpush1.msra.mxu1 %v4820_v7  ;;  %v4830_v5 = vld [vmem:[#allocation26_spill] sm:$0xff]  ;;  %v4831_v7 = vld [vmem:[#allocation35_spill] sm:$0xff] }
 0x566   :  { %2224 = vmatprep.subr.mxu0 %v4821_v3  ;;  %2295 = vmatprep.subr.mxu1 %v4822_v9  ;;  %v4832_v3 = vld [vmem:[#allocation28_spill] sm:$0xff]  ;;  %v4833_v9 = vld [vmem:[#allocation37_spill] sm:$0xff] }
 0x567   :  { %2225 = vmatpush1.msra.mxu0 %v4823_v10  ;;  %2296 = vmatpush1.msra.mxu1 %v4824_v8  ;;  %v4834_v10 = vld [vmem:[#allocation30_spill] sm:$0xff]  ;;  %v4835_v8 = vld [vmem:[#allocation39_spill] sm:$0xff] }
 0x568   :  { %2226 = vmatprep.subr.mxu0 %v4825_v15  ;;  %2297 = vmatprep.subr.mxu1 %v4826_v18  ;;  %v4836_v15 = vld [vmem:[#allocation43_spill] sm:$0xff]  ;;  %v4837_v18 = vld [vmem:[#allocation32_spill] sm:$0xff] }
 0x569   :  { %2227 = vmatpush1.msra.mxu0 %v4827_v6  ;;  %2298 = vmatpush1.msra.mxu1 %v4828_v13  ;;  %v4838_v6 = vld [vmem:[#allocation36_spill] sm:$0xff]  ;;  %v4839_v13 = vld [vmem:[#allocation41_spill] sm:$0xff] }
 0x56a   :  { %2228 = vmatprep.subr.mxu0 %v4829_v4  ;;  %2299 = vmatprep.subr.mxu1 %v4830_v5  ;;  %v4840_v4 = vld [vmem:[#allocation46_spill] sm:$0xff] }
 0x56b   :  { %2229 = vmatpush1.msra.mxu0 %v4831_v7  ;;  %2300 = vmatpush1.msra.mxu1 %v4832_v3  ;;  %v4841_v3 = vld [vmem:[#allocation34_spill] sm:$0xff]  ;;  %v4843_v7 = vld [vmem:[#allocation57_spill] sm:$0xff] }
 0x56c   :  { %2230 = vmatprep.subr.mxu0 %v4833_v9  ;;  %2301 = vmatprep.subr.mxu1 %v4834_v10  ;;  %v4842_v9 = vld [vmem:[#allocation38_spill] sm:$0xff] }
 0x56d   :  { %2231 = vmatpush1.msra.mxu0 %v4835_v8  ;;  %2302 = vmatpush1.msra.mxu1 %v4836_v15 }
 0x56e   :  { %2232 = vmatprep.subr.mxu0 %v4837_v18  ;;  %2303 = vmatprep.subr.mxu1 %v4838_v6 }
 0x56f   :  { %2233 = vmatpush1.msra.mxu0 %v4839_v13  ;;  %2304 = vmatpush1.msra.mxu1 %v4840_v4 }
 0x570   :  { %2266 = vmatprep.mubr.f32.mxu0 %v4638_v53  ;;  %2337 = vmatprep.mubr.f32.mxu1 %v4638_v53 }
 0x571   :  { %2378 = vmatprep.subr.mxu0 %v4841_v3  ;;  %2449 = vmatprep.subr.mxu1 %v4842_v9 }
 0x606   :  { %v1939_v10 = vpop.f32.mrf.mxu0  ;;  %v2010_v13 = vpop.f32.mrf.mxu1 }
 0x607   :  { %v2015_v15 = vadd.f32 %v1939_v10, %v4843_v7  ;;  %v2017_v3 = vadd.f32 %v2010_v13, %v3624_v35 }
 0x608   :  { %v1941_v8 = vpop.f32.mrf.mxu0  ;;  %v2012_v16 = vpop.f32.mrf.mxu1 }
 0x609   :  { %v2016_v18 = vadd.f32 %v1941_v8, %v3620_v54  ;;  %v2018_v12 = vadd.f32 %v2012_v16, %v3627_v40 }
 0x60f   :  { %v2091_v5 = vpop.f32.mrf.mxu0  ;;  %v2162_v28 = vpop.f32.mrf.mxu1 }
 0x610   :  { %v2167_v6 = vadd.f32 %v2091_v5, %v2015_v15  ;;  %v2169_v9 = vadd.f32 %v2162_v28, %v2017_v3  ;;  %v4873_v3 = vld [vmem:[#allocation28_spill] sm:$0xff] }
 0x611   :  { %v2093_v27 = vpop.f32.mrf.mxu0  ;;  %v2164_v38 = vpop.f32.mrf.mxu1 }
 0x612   :  { %v2980_v0 = vmul.f32 -1.442695, %v2167_v6  ;;  %v2168_v4 = vadd.f32 %v2093_v27, %v2016_v18  ;;  %v2982_v10 = vmul.f32 -1.442695, %v2169_v9  ;;  %v2170_v11 = vadd.f32 %v2164_v38, %v2018_v12  ;;  %v4871_v9 = vld [vmem:[#allocation26_spill] sm:$0xff] }
 0x614   :  { %3083 = vpow2.f32 %v2980_v0  ;;  %v2981_v14 = vmul.f32 -1.442695, %v2168_v4 }
 0x616   :  { %3085 = vpow2.f32 %v2981_v14 }
 0x617   :  { %3087 = vpow2.f32 %v2982_v10  ;;  %v4874_v10 = vld [vmem:[#allocation37_spill] sm:$0xff] }
 0x621   :  { %v3084_v7 = vpop.eup %3083 }
 0x622   :  { %v2180_v8 = vadd.f32 1.0, %v3084_v7  ;;  %v4872_v7 = vld [vmem:[#allocation35_spill] sm:$0xff] }
 0x623   :  { %v3086_v15 = vpop.eup %3085 }
 0x624   :  { %3089 = vrcp.f32 %v2180_v8  ;;  %v2181_v6 = vadd.f32 1.0, %v3086_v15  ;;  %v3088_v0 = vpop.eup %3087  ;;  %v4875_v8 = vld [vmem:[#allocation30_spill] sm:$0xff]  ;;  %v4876_v15 = vld [vmem:[#allocation39_spill] sm:$0xff] }
 0x625   :  { %3091 = vtanh.f32 %v2170_v11  ;;  %v2182_v4 = vadd.f32 1.0, %v3088_v0  ;;  %v4870_v11 = vld [vmem:[#allocation33_spill] sm:$0xff]  ;;  %v4878_v0 = vld [vmem:[#allocation32_spill] sm:$0xff] }
 0x626   :  { %3093 = vrcp.f32 %v2181_v6  ;;  %v4877_v6 = vld [vmem:[#allocation43_spill] sm:$0xff] }
 0x627   :  { %3095 = vrcp.f32 %v2182_v4  ;;  %v4882_v4 = vld [vmem:[#allocation34_spill] sm:$0xff] }
 0x631   :  { %v3090_v27 = vpop.eup %3089 }
 0x632   :  { %v3092_v14 = vpop.eup %3091 }
 0x633   :  { %v3094_v18 = vpop.eup %3093  ;;  %v2191_v13 = vmul.f32 %v3092_v14, %v3090_v27  ;;  %v4879_v27 = vld [vmem:[#allocation36_spill] sm:$0xff]  ;;  %v4880_v14 = vld [vmem:[#allocation41_spill] sm:$0xff] }
 0x634   :  { %v2190_v28 = vmul.f32 %v3094_v18, %v4190_v19  ;;  %v3096_v12 = vpop.eup %3095  ;;  %v2984_v19 = vld [vmem:[%s4424_s0 + $0x30] sm:$0xff]  ;;  %v4881_v18 = vld [vmem:[#allocation46_spill] sm:$0xff] }
 0x636   :  { %v4290_v5 = vadd.f32 %v2191_v13, %v2190_v28  ;;  %v4883_v28 = vld [vmem:[#allocation38_spill] sm:$0xff] }
 0x638   :  { %3097 = vtanh.f32 %v4290_v5 }
 0x645   :  { %v3098_v38 = vpop.eup %3097 }
 0x646   :  { %v2194_v16 = vmul.f32 %v3098_v38, %v3096_v12  ;;  %v4884_v38 = vld [vmem:[#allocation57_spill] sm:$0xff] }
 0x648   :  { %2983 = vst [vmem:[%s4428_s4 + $0x28] sm:$0xff] %v2194_v16  ;;  %2267 = vmatmul.mubr.f32.vlgmr.msra.gmra.mxu0 %v2194_v16  ;;  %2338 = vmatmul.mubr.f32.vlgmr.msra.gmra.mxu1 %v2194_v16 }
 0x649   :  { %2379 = vmatpush1.msra.mxu0 %v4060_v17  ;;  %2450 = vmatpush1.msra.mxu1 %v4063_v32 }
 0x64a   :  { %2380 = vmatprep.subr.mxu0 %v4066_v21  ;;  %2451 = vmatprep.subr.mxu1 %v4069_v50 }
 0x64b   :  { %2381 = vmatpush1.msra.mxu0 %v4072_v34  ;;  %2452 = vmatpush1.msra.mxu1 %v4075_v45 }
 0x64c   :  { %2382 = vmatprep.subr.mxu0 %v4078_v55  ;;  %2453 = vmatprep.subr.mxu1 %v4081_v37 }
 0x64d   :  { %2383 = vmatpush1.msra.mxu0 %v4084_v30  ;;  %2454 = vmatpush1.msra.mxu1 %v4087_v24 }
 0x64e   :  { %2384 = vmatprep.subr.mxu0 %v4090_v26  ;;  %2455 = vmatprep.subr.mxu1 %v4093_v22 }
 0x64f   :  { %2385 = vmatpush1.msra.mxu0 %v4099_v43  ;;  %2418 = vmatprep.mubr.f32.mxu0 %v4638_v53 }
 0x650   :  { %2456 = vmatpush1.msra.mxu1 %v4103_v20  ;;  %2489 = vmatprep.mubr.f32.mxu1 %v4638_v53 }
 0x651   :  { %2985 = vmatmul.mubr.msk.f32.vlgmr.msra.gmra.mxu0 %vm376_vm0, %v2984_v19  ;;  %2986 = vmatmul.mubr.msk.f32.vlgmr.msra.gmra.mxu1 %vm376_vm0, %v2984_v19 }
 0x652   :  { %2531 = vmatprep.subr.mxu0 %v3857_v57  ;;  %2602 = vmatprep.subr.mxu1 %v3860_v58  ;;  %v4844_v57 = vld [vmem:[#allocation45_spill] sm:$0xff]  ;;  %v4845_v58 = vld [vmem:[#allocation47_spill] sm:$0xff] }
 0x653   :  { %2532 = vmatpush1.msra.mxu0 %v3863_v59  ;;  %2603 = vmatpush1.msra.mxu1 %v3866_v60  ;;  %v4846_v59 = vld [vmem:[#allocation48_spill] sm:$0xff]  ;;  %v4847_v60 = vld [vmem:[#allocation50_spill] sm:$0xff] }
 0x654   :  { %2533 = vmatprep.subr.mxu0 %v3869_v61  ;;  %2604 = vmatprep.subr.mxu1 %v3872_v63  ;;  %v4848_v61 = vld [vmem:[#allocation52_spill] sm:$0xff]  ;;  %v4849_v63 = vld [vmem:[#allocation54_spill] sm:$0xff] }
 0x655   :  { %2534 = vmatpush1.msra.mxu0 %v3875_v51  ;;  %2605 = vmatpush1.msra.mxu1 %v3878_v52  ;;  %v4850_v51 = vld [vmem:[#allocation56_spill] sm:$0xff]  ;;  %v4851_v52 = vld [vmem:[#allocation10_spill] sm:$0xff] }
 0x656   :  { %2535 = vmatprep.subr.mxu0 %v3881_v39  ;;  %2606 = vmatprep.subr.mxu1 %v3884_v62  ;;  %v4852_v39 = vld [vmem:[#allocation15_spill] sm:$0xff] }
 0x657   :  { %2536 = vmatpush1.msra.mxu0 %v3887_v48  ;;  %2607 = vmatpush1.msra.mxu1 %v3890_v41  ;;  %v4853_v62 = vld [vmem:[#allocation11_spill] sm:$0xff]  ;;  %v4854_v48 = vld [vmem:[#allocation17_spill] sm:$0xff]  ;;  %v4855_v41 = vld [vmem:[#allocation12_spill] sm:$0xff] }
 0x658   :  { %2537 = vmatprep.subr.mxu0 %v3893_v42  ;;  %2608 = vmatprep.subr.mxu1 %v3896_v49  ;;  %v4856_v42 = vld [vmem:[#allocation19_spill] sm:$0xff]  ;;  %v4857_v49 = vld [vmem:[#allocation13_spill] sm:$0xff] }
 0x659   :  { %2538 = vmatpush1.msra.mxu0 %v3899_v46  ;;  %2609 = vmatpush1.msra.mxu1 %v3902_v44  ;;  %v4858_v46 = vld [vmem:[#allocation21_spill] sm:$0xff]  ;;  %v4859_v44 = vld [vmem:[#allocation14_spill] sm:$0xff] }
 0x65a   :  { %2539 = vmatprep.subr.mxu0 %v3905_v47  ;;  %2610 = vmatprep.subr.mxu1 %v3908_v29  ;;  %v4860_v47 = vld [vmem:[#allocation23_spill] sm:$0xff]  ;;  %v4861_v29 = vld [vmem:[#allocation16_spill] sm:$0xff] }
 0x65b   :  { %2540 = vmatpush1.msra.mxu0 %v3911_v36  ;;  %2611 = vmatpush1.msra.mxu1 %v3914_v56  ;;  %v4862_v36 = vld [vmem:[#allocation25_spill] sm:$0xff]  ;;  %v4863_v56 = vld [vmem:[#allocation18_spill] sm:$0xff] }
 0x65c   :  { %2541 = vmatprep.subr.mxu0 %v3917_v33  ;;  %2612 = vmatprep.subr.mxu1 %v3920_v25  ;;  %v4864_v33 = vld [vmem:[#allocation27_spill] sm:$0xff]  ;;  %v4865_v25 = vld [vmem:[#allocation20_spill] sm:$0xff] }
 0x65d   :  { %2542 = vmatpush1.msra.mxu0 %v3923_v31  ;;  %2613 = vmatpush1.msra.mxu1 %v3926_v23  ;;  %v4866_v31 = vld [vmem:[#allocation29_spill] sm:$0xff]  ;;  %v4867_v23 = vld [vmem:[#allocation22_spill] sm:$0xff] }
 0x65e   :  { %2543 = vmatprep.subr.mxu0 %v3929_v1  ;;  %2614 = vmatprep.subr.mxu1 %v3932_v2  ;;  %v4868_v1 = vld [vmem:[#allocation31_spill] sm:$0xff]  ;;  %v4869_v2 = vld [vmem:[#allocation24_spill] sm:$0xff] }
 0x65f   :  { %2544 = vmatpush1.msra.mxu0 %v4844_v57  ;;  %2615 = vmatpush1.msra.mxu1 %v4845_v58 }
 0x660   :  { %2545 = vmatprep.subr.mxu0 %v4846_v59  ;;  %2616 = vmatprep.subr.mxu1 %v4847_v60 }
 0x661   :  { %2546 = vmatpush1.msra.mxu0 %v4848_v61  ;;  %2617 = vmatpush1.msra.mxu1 %v4849_v63 }
 0x662   :  { %2547 = vmatprep.subr.mxu0 %v4850_v51  ;;  %2618 = vmatprep.subr.mxu1 %v4851_v52 }
 0x663   :  { %2548 = vmatpush1.msra.mxu0 %v4852_v39  ;;  %2619 = vmatpush1.msra.mxu1 %v4853_v62 }
 0x664   :  { %2549 = vmatprep.subr.mxu0 %v4854_v48  ;;  %2620 = vmatprep.subr.mxu1 %v4855_v41 }
 0x665   :  { %2550 = vmatpush1.msra.mxu0 %v4856_v42  ;;  %2621 = vmatpush1.msra.mxu1 %v4857_v49 }
 0x666   :  { %2551 = vmatprep.subr.mxu0 %v4858_v46  ;;  %2622 = vmatprep.subr.mxu1 %v4859_v44 }
 0x667   :  { %2552 = vmatpush1.msra.mxu0 %v4860_v47  ;;  %2623 = vmatpush1.msra.mxu1 %v4861_v29 }
 0x668   :  { %2553 = vmatprep.subr.mxu0 %v4862_v36  ;;  %2624 = vmatprep.subr.mxu1 %v4863_v56 }
 0x669   :  { %2554 = vmatpush1.msra.mxu0 %v4864_v33  ;;  %2625 = vmatpush1.msra.mxu1 %v4865_v25 }
 0x66a   :  { %2555 = vmatprep.subr.mxu0 %v4866_v31  ;;  %2626 = vmatprep.subr.mxu1 %v4867_v23 }
 0x66b   :  { %2556 = vmatpush1.msra.mxu0 %v4868_v1  ;;  %2627 = vmatpush1.msra.mxu1 %v4869_v2 }
 0x66c   :  { %2557 = vmatprep.subr.mxu0 %v4870_v11  ;;  %2628 = vmatprep.subr.mxu1 %v4871_v9 }
 0x66d   :  { %2558 = vmatpush1.msra.mxu0 %v4872_v7  ;;  %2629 = vmatpush1.msra.mxu1 %v4873_v3 }
 0x66e   :  { %2559 = vmatprep.subr.mxu0 %v4874_v10  ;;  %2630 = vmatprep.subr.mxu1 %v4875_v8 }
 0x66f   :  { %2560 = vmatpush1.msra.mxu0 %v4876_v15  ;;  %2631 = vmatpush1.msra.mxu1 %v4877_v6 }
 0x670   :  { %2561 = vmatprep.subr.mxu0 %v4878_v0  ;;  %2632 = vmatprep.subr.mxu1 %v4879_v27 }
 0x671   :  { %2562 = vmatpush1.msra.mxu0 %v4880_v14  ;;  %2633 = vmatpush1.msra.mxu1 %v4881_v18 }
 0x672   :  { %2595 = vmatprep.mubr.f32.mxu0 %v4638_v53  ;;  %2666 = vmatprep.mubr.f32.mxu1 %v4638_v53 }
 0x673   :  { %2707 = vmatprep.subr.mxu0 %v4882_v4  ;;  %2778 = vmatprep.subr.mxu1 %v4883_v28 }
 0x708   :  { %v2268_v13 = vpop.f32.mrf.mxu0  ;;  %v2339_v60 = vpop.f32.mrf.mxu1 }
 0x709   :  { %v2344_v16 = vadd.f32 %v2268_v13, %v4884_v38  ;;  %v2346_v62 = vadd.f32 %v2339_v60, %v3624_v35 }
 0x70a   :  { %v2270_v12 = vpop.f32.mrf.mxu0  ;;  %v2341_v52 = vpop.f32.mrf.mxu1 }
 0x70b   :  { %v2345_v57 = vadd.f32 %v2270_v12, %v3620_v54  ;;  %v2347_v42 = vadd.f32 %v2341_v52, %v3627_v40 }
 0x711   :  { %v2420_v19 = vpop.f32.mrf.mxu0  ;;  %v2491_v39 = vpop.f32.mrf.mxu1 }
 0x712   :  { %v2496_v58 = vadd.f32 %v2420_v19, %v2344_v16  ;;  %v2498_v48 = vadd.f32 %v2491_v39, %v2346_v62 }
 0x713   :  { %v2422_v59 = vpop.f32.mrf.mxu0  ;;  %v2493_v41 = vpop.f32.mrf.mxu1 }
 0x714   :  { %v2987_v61 = vmul.f32 -1.442695, %v2496_v58  ;;  %v2497_v63 = vadd.f32 %v2422_v59, %v2345_v57  ;;  %v2989_v49 = vmul.f32 -1.442695, %v2498_v48  ;;  %v2499_v44 = vadd.f32 %v2493_v41, %v2347_v42 }
 0x716   :  { %3099 = vpow2.f32 %v2987_v61  ;;  %v2988_v51 = vmul.f32 -1.442695, %v2497_v63 }
 0x718   :  { %3101 = vpow2.f32 %v2988_v51 }
 0x719   :  { %3103 = vpow2.f32 %v2989_v49 }
 0x723   :  { %v3100_v46 = vpop.eup %3099 }
 0x724   :  { %v2509_v47 = vadd.f32 1.0, %v3100_v46 }
 0x725   :  { %v3102_v29 = vpop.eup %3101 }
 0x726   :  { %3105 = vrcp.f32 %v2509_v47  ;;  %v2510_v36 = vadd.f32 1.0, %v3102_v29  ;;  %v3104_v56 = vpop.eup %3103 }
 0x727   :  { %3107 = vtanh.f32 %v2499_v44  ;;  %v2511_v23 = vadd.f32 1.0, %v3104_v56 }
 0x728   :  { %3109 = vrcp.f32 %v2510_v36 }
 0x729   :  { %3111 = vrcp.f32 %v2511_v23 }
 0x733   :  { %v3106_v33 = vpop.eup %3105 }
 0x734   :  { %v3108_v25 = vpop.eup %3107 }
 0x735   :  { %v3110_v31 = vpop.eup %3109  ;;  %v2520_v2 = vmul.f32 %v3108_v25, %v3106_v33 }
 0x736   :  { %v2519_v1 = vmul.f32 %v3110_v31, %v4290_v5  ;;  %v3112_v9 = vpop.eup %3111 }
 0x738   :  { %v2521_v11 = vadd.f32 %v2520_v2, %v2519_v1 }
 0x73a   :  { %3113 = vtanh.f32 %v2521_v11 }
 0x747   :  { %v3114_v7 = vpop.eup %3113 }
 0x748   :  { %v2523_v3 = vmul.f32 %v3114_v7, %v3112_v9 }
 0x74a   :  { %2990 = vst [vmem:[%s4428_s4 + $0x30] sm:$0xff] %v2523_v3  ;;  %2596 = vmatmul.mubr.f32.vlgmr.msra.gmra.mxu0 %v2523_v3  ;;  %2667 = vmatmul.mubr.f32.vlgmr.msra.gmra.mxu1 %v2523_v3 }
 0x74b   :  { %2708 = vmatpush1.msra.mxu0 %v4060_v17  ;;  %2779 = vmatpush1.msra.mxu1 %v4063_v32  ;;  %v2991_v17 = vld [vmem:[%s4424_s0 + $0x38] sm:$0xff] }
 0x74c   :  { %2709 = vmatprep.subr.mxu0 %v4066_v21  ;;  %2780 = vmatprep.subr.mxu1 %v4069_v50 }
 0x74d   :  { %2710 = vmatpush1.msra.mxu0 %v4072_v34  ;;  %2781 = vmatpush1.msra.mxu1 %v4075_v45 }
 0x74e   :  { %2711 = vmatprep.subr.mxu0 %v4078_v55  ;;  %2782 = vmatprep.subr.mxu1 %v4081_v37 }
 0x74f   :  { %2712 = vmatpush1.msra.mxu0 %v4084_v30  ;;  %2783 = vmatpush1.msra.mxu1 %v4087_v24 }
 0x750   :  { %2713 = vmatprep.subr.mxu0 %v4090_v26  ;;  %2784 = vmatprep.subr.mxu1 %v4093_v22 }
 0x751   :  { %2714 = vmatpush1.msra.mxu0 %v4099_v43  ;;  %2747 = vmatprep.mubr.f32.mxu0 %v4638_v53 }
 0x752   :  { %2785 = vmatpush1.msra.mxu1 %v4103_v20  ;;  %2818 = vmatprep.mubr.f32.mxu1 %v4638_v53 }
 0x753   :  { %2992 = vmatmul.mubr.msk.f32.vlgmr.msra.gmra.mxu0 %vm376_vm0, %v2991_v17  ;;  %2993 = vmatmul.mubr.msk.f32.vlgmr.msra.gmra.mxu1 %vm376_vm0, %v2991_v17 }
 0x80a   :  { %v2597_v32 = vpop.f32.mrf.mxu0  ;;  %v2668_v30 = vpop.f32.mrf.mxu1 }
 0x80b   :  { %v2673_v50 = vadd.f32 %v2597_v32, %v4884_v38  ;;  %v2675_v20 = vadd.f32 %v2668_v30, %v3624_v35 }
 0x80c   :  { %v2599_v21 = vpop.f32.mrf.mxu0  ;;  %v2670_v43 = vpop.f32.mrf.mxu1 }
 0x80d   :  { %v2674_v45 = vadd.f32 %v2599_v21, %v3620_v54  ;;  %v2676_v8 = vadd.f32 %v2670_v43, %v3627_v40 }
 0x813   :  { %v2749_v34 = vpop.f32.mrf.mxu0  ;;  %v2820_v53 = vpop.f32.mrf.mxu1 }
 0x814   :  { %v2825_v55 = vadd.f32 %v2749_v34, %v2673_v50  ;;  %v2827_v5 = vadd.f32 %v2820_v53, %v2675_v20 }
 0x815   :  { %v2751_v37 = vpop.f32.mrf.mxu0  ;;  %v2822_v10 = vpop.f32.mrf.mxu1 }
 0x816   :  { %v2994_v24 = vmul.f32 -1.442695, %v2825_v55  ;;  %v2826_v26 = vadd.f32 %v2751_v37, %v2674_v45  ;;  %v2996_v15 = vmul.f32 -1.442695, %v2827_v5  ;;  %v2828_v0 = vadd.f32 %v2822_v10, %v2676_v8 }
 0x818   :  { %3115 = vpow2.f32 %v2994_v24  ;;  %v2995_v22 = vmul.f32 -1.442695, %v2826_v26 }
 0x81a   :  { %3117 = vpow2.f32 %v2995_v22 }
 0x81b   :  { %3119 = vpow2.f32 %v2996_v15 }
 0x825   :  { %v3116_v6 = vpop.eup %3115 }
 0x826   :  { %v2838_v54 = vadd.f32 1.0, %v3116_v6 }
 0x827   :  { %v3118_v27 = vpop.eup %3117 }
 0x828   :  { %3121 = vrcp.f32 %v2838_v54  ;;  %v2839_v14 = vadd.f32 1.0, %v3118_v27  ;;  %v3120_v18 = vpop.eup %3119 }
 0x829   :  { %3123 = vtanh.f32 %v2828_v0  ;;  %v2840_v12 = vadd.f32 1.0, %v3120_v18 }
 0x82a   :  { %3125 = vrcp.f32 %v2839_v14 }
 0x82b   :  { %3127 = vrcp.f32 %v2840_v12 }
 0x835   :  { %v3122_v4 = vpop.eup %3121 }
 0x836   :  { %v3124_v28 = vpop.eup %3123 }
 0x837   :  { %v3126_v13 = vpop.eup %3125  ;;  %v2849_v38 = vmul.f32 %v3124_v28, %v3122_v4 }
 0x838   :  { %v2848_v35 = vmul.f32 %v3126_v13, %v2521_v11  ;;  %v3128_v40 = vpop.eup %3127 }
 0x83a   :  { %v2850_v16 = vadd.f32 %v2849_v38, %v2848_v35 }
 0x83c   :  { %3129 = vtanh.f32 %v2850_v16  ;;  %2861 = vst [vmem:[%s4429_s5] sm:$0xff] %v2850_v16 }
 0x849   :  { %v3130_v19 = vpop.eup %3129 }
 0x84a   :  { %v2852_v57 = vmul.f32 %v3130_v19, %v3128_v40 }
 0x84c   :  { %2997 = vst [vmem:[%s4428_s4 + $0x38] sm:$0xff] %v2852_v57 }
 0x84d   :  { %2896 = vsyncpa [#allocation5], 1 }
 0x84e   :  { %2897 = vsyncpa [#allocation7], 1 }

</bundles_post_ra>
